<compile_context>
chip_gen: v7x
topology: tpu7x:2x2x1
jax: 0.10.0
libtpu: 0.0.40
codegen_flags: <defaults>
</compile_context>

<pallas_src>
import jax
import jax.numpy as jnp
from jax import lax
from jax.experimental import pallas as pl
from jax.experimental.pallas import tpu as pltpu

LANE = 128


def make_divisible(v, divisor=8):
    new_v = max(divisor, int(v + divisor / 2) // divisor * divisor)
    if new_v < 0.9 * v:
        new_v += divisor
    return new_v


def round_up(v, m):
    return ((v + m - 1) // m) * m


# ----------------------------------------------------------------------------
# Pallas kernel: one full bottleneck block, one image per grid step.
# All activation tensors are flat (H*W, Cpad) with channels on the lane axis.
# ----------------------------------------------------------------------------
def make_bottleneck_kernel(H, W, cin_p, cmid_p, cout_p, ksize, has_proj):
    HW = H * W
    pad = ksize // 2

    def kernel(*refs):
        if has_proj:
            (x_ref, w1, s1, b1, w2, s2, b2, w3, s3, b3,
             ws, ss, bs, o_ref) = refs
        else:
            (x_ref, w1, s1, b1, w2, s2, b2, w3, s3, b3, o_ref) = refs

        xf = x_ref[...]                                    # (HW, cin_p) bf16

        # ---- conv1: 1x1 + folded BN + ReLU (f32 epilogue) -------------------
        y1 = jnp.dot(xf, w1[...], preferred_element_type=jnp.float32)
        y1 = jnp.maximum(y1 * s1[...] + b1[...], 0.0)      # (HW, cmid_p) f32

        # ---- conv2: kxk, stride 1 -------------------------------------------
        # kw taps: sublane roll of y1 (+ W-boundary mask), concatenated on the
        # lane axis -> one fat K = ksize*cmid_p matmul per kh; the kh (row)
        # shift is applied to the product with an aligned roll + row mask.
        w_idx = lax.broadcasted_iota(jnp.int32, (HW, cmid_p), 0) % W
        r_idx = lax.broadcasted_iota(jnp.int32, (HW, cmid_p), 0)

        taps = []
        for kw in range(ksize):
            dw = kw - pad
            if dw == 0:
                taps.append(y1)
            else:
                rolled = pltpu.roll(y1, shift=(-dw) % HW, axis=0)
                if dw < 0:
                    mask = w_idx >= (-dw)
                else:
                    mask = w_idx < (W - dw)
                taps.append(jnp.where(mask, rolled, 0.0))
        slab = jnp.concatenate(taps, axis=1).astype(jnp.bfloat16)  # (HW, k*cmid_p)

        acc = jnp.zeros((HW, cmid_p), jnp.float32)
        for kh in range(ksize):
            p_kh = jnp.dot(slab, w2[kh], preferred_element_type=jnp.float32)
            dh = kh - pad
            if dh == 0:
                acc = acc + p_kh
            else:
                rolled = pltpu.roll(p_kh, shift=(-dh * W) % HW, axis=0)
                if dh < 0:
                    mask = r_idx >= (-dh) * W
                else:
                    mask = r_idx < (HW - dh * W)
                acc = acc + jnp.where(mask, rolled, 0.0)
        y2 = jnp.maximum(acc * s2[...] + b2[...], 0.0).astype(jnp.bfloat16)

        # ---- conv3: 1x1 + folded BN (no activation) --------------------------
        y3 = jnp.dot(y2, w3[...], preferred_element_type=jnp.float32)
        y3 = y3 * s3[...] + b3[...]

        # ---- shortcut: identity, or 1x1 conv + BN projection ------------------
        if has_proj:
            sc = jnp.dot(xf, ws[...], preferred_element_type=jnp.float32)
            sc = sc * ss[...] + bs[...]
        else:
            sc = xf.astype(jnp.float32)

        o_ref[...] = jnp.maximum(y3 + sc, 0.0).astype(jnp.bfloat16)

    return kernel


def bottleneck_block_pallas(x, p, H, W):
    """x: (N, H*W, Cin_p) bf16 (lane-padded) -> (N, H*W, Cout_p) bf16."""
    N, HW, cin_p = x.shape
    assert HW == H * W
    ksize = p['ksize']
    cmid_p = p['w1'].shape[1]
    cout_p = p['w3'].shape[1]
    has_proj = 'ws' in p

    args = [x, p['w1'], p['s1'], p['b1'], p['w2'], p['s2'], p['b2'],
            p['w3'], p['s3'], p['b3']]
    if has_proj:
        args += [p['ws'], p['ss'], p['bs']]

    def full_spec(a):
        nd = a.ndim
        return pl.BlockSpec(a.shape, lambda n, _nd=nd: (0,) * _nd)

    in_specs = ([pl.BlockSpec((None, HW, cin_p), lambda n: (n, 0, 0))]
                + [full_spec(a) for a in args[1:]])
    out_spec = pl.BlockSpec((None, HW, cout_p), lambda n: (n, 0, 0))

    kernel = make_bottleneck_kernel(H, W, cin_p, cmid_p, cout_p, ksize, has_proj)

    flops = 2 * N * HW * (cin_p * cmid_p + ksize * ksize * cmid_p * cmid_p
                          + cmid_p * cout_p
                          + (cin_p * cout_p if has_proj else 0))
    bytes_accessed = (sum(int(a.size) * a.dtype.itemsize for a in args)
                      + N * HW * cout_p * 2)
    cost = pl.CostEstimate(flops=flops, transcendentals=0,
                           bytes_accessed=bytes_accessed)

    return pl.pallas_call(
        kernel,
        out_shape=jax.ShapeDtypeStruct((N, HW, cout_p), jnp.bfloat16),
        grid_spec=pltpu.PrefetchScalarGridSpec(
            num_scalar_prefetch=0,
            grid=(N,),
            in_specs=in_specs,
            out_specs=out_spec,
        ),
        compiler_params=pltpu.CompilerParams(
            dimension_semantics=("parallel",),
            vmem_limit_bytes=32 * 1024 * 1024,
        ),
        cost_estimate=cost,
    )(*args)


def byob_block_forward(x_nchw, prepared_params):
    """ByobBlock.forward: sequential bottleneck blocks. NCHW f32 in/out."""
    N, C, H, W = x_nchw.shape
    cin_p = round_up(C, LANE)
    x = jnp.transpose(x_nchw, (0, 2, 3, 1)).reshape(N, H * W, C)
    x = jnp.pad(x, [(0, 0), (0, 0), (0, cin_p - C)]).astype(jnp.bfloat16)
    for q in prepared_params:
        x = bottleneck_block_pallas(x, q, H, W)
    cout = prepared_params[-1]['cout']
    out = x[:, :, :cout].astype(jnp.float32).reshape(N, H, W, cout)
    return jnp.transpose(out, (0, 3, 1, 2))


# ----------------------------------------------------------------------------
# Parameter prep: pad channels to the 128-lane grid, bf16 weights, f32 BN fold.
# ----------------------------------------------------------------------------
def prepare_block_params(p):
    ksize = p['ksize']
    cin, cmid = p['w1'].shape
    cout = p['w3'].shape[1]
    cin_p, cmid_p, cout_p = (round_up(c, LANE) for c in (cin, cmid, cout))

    def padw(a, shape):
        pads = [(0, s - d) for d, s in zip(a.shape, shape)]
        return jnp.pad(a, pads).astype(jnp.bfloat16)

    def padv(a, cp):
        return jnp.pad(a.reshape(-1), (0, cp - a.size)).reshape(1, cp).astype(jnp.float32)

    q = {'ksize': ksize, 'cin': cin, 'cout': cout}
    q['w1'] = padw(p['w1'], (cin_p, cmid_p))
    q['s1'], q['b1'] = padv(p['s1'], cmid_p), padv(p['b1'], cmid_p)
    w2 = jnp.pad(p['w2'], [(0, 0), (0, 0), (0, cmid_p - cmid), (0, cmid_p - cmid)])
    q['w2'] = w2.reshape(ksize, ksize * cmid_p, cmid_p).astype(jnp.bfloat16)
    q['s2'], q['b2'] = padv(p['s2'], cmid_p), padv(p['b2'], cmid_p)
    q['w3'] = padw(p['w3'], (cmid_p, cout_p))
    q['s3'], q['b3'] = padv(p['s3'], cout_p), padv(p['b3'], cout_p)
    if 'ws' in p:
        q['ws'] = padw(p['ws'], (cin_p, cout_p))
        q['ss'], q['bs'] = padv(p['ss'], cout_p), padv(p['bs'], cout_p)
    return q


# ----------------------------------------------------------------------------
# Deterministic synthetic init (conv weights + eval-mode BN folding)
# ----------------------------------------------------------------------------
def init_bn_fold(key, c, eps=1e-5):
    k1, k2, k3, k4 = jax.random.split(key, 4)
    gamma = jax.random.uniform(k1, (c,), jnp.float32, 0.5, 1.5)
    beta = jax.random.normal(k2, (c,), jnp.float32) * 0.1
    mean = jax.random.normal(k3, (c,), jnp.float32) * 0.1
    var = jax.random.uniform(k4, (c,), jnp.float32, 0.5, 1.5)
    scale = gamma / jnp.sqrt(var + eps)
    bias = beta - mean * scale
    return scale, bias


def init_bottleneck_params(key, cin, cout, ksize=3, bottle_ratio=4):
    cmid = make_divisible(cout * bottle_ratio)
    keys = jax.random.split(key, 8)

    def conv_w(k, shape, fan_in):
        return jax.random.normal(k, shape, jnp.float32) / jnp.sqrt(float(fan_in))

    p = {'ksize': ksize}
    p['w1'] = conv_w(keys[0], (cin, cmid), cin)
    p['s1'], p['b1'] = init_bn_fold(keys[1], cmid)
    p['w2'] = conv_w(keys[2], (ksize, ksize, cmid, cmid), ksize * ksize * cmid)
    p['s2'], p['b2'] = init_bn_fold(keys[3], cmid)
    p['w3'] = conv_w(keys[4], (cmid, cout), cmid)
    p['s3'], p['b3'] = init_bn_fold(keys[5], cout)
    if cin != cout:
        p['ws'] = conv_w(keys[6], (cin, cout), cin)
        p['ss'], p['bs'] = init_bn_fold(keys[7], cout)
    return p


# ----------------------------------------------------------------------------
# Pure-JAX reference (NHWC, unpadded channels) mirroring the kernel's
# bf16-input / f32-accumulate precision points.
# ----------------------------------------------------------------------------
def ref_bottleneck(x_bf16, p):
    def conv(inp, w, padding):
        return lax.conv_general_dilated(
            inp.astype(jnp.bfloat16), w.astype(jnp.bfloat16),
            window_strides=(1, 1), padding=padding,
            dimension_numbers=('NHWC', 'HWIO', 'NHWC'),
            preferred_element_type=jnp.float32)

    def affine(y, s, b):
        return y * s.reshape(1, 1, 1, -1) + b.reshape(1, 1, 1, -1)

    y = jnp.maximum(affine(conv(x_bf16, p['w1'][None, None], 'VALID'),
                           p['s1'], p['b1']), 0.0).astype(jnp.bfloat16)
    y = jnp.maximum(affine(conv(y, p['w2'], 'SAME'),
                           p['s2'], p['b2']), 0.0).astype(jnp.bfloat16)
    y = affine(conv(y, p['w3'][None, None], 'VALID'), p['s3'], p['b3'])
    if 'ws' in p:
        sc = affine(conv(x_bf16, p['ws'][None, None], 'VALID'), p['ss'], p['bs'])
    else:
        sc = x_bf16.astype(jnp.float32)
    return jnp.maximum(y + sc, 0.0).astype(jnp.bfloat16)


if __name__ == "__main__":
    key = jax.random.PRNGKey(0)
    N, in_chs, out_chs, H, W = 2, 4, 8, 16, 16
    layer_num, ksize, bottle_ratio = 2, 3, 4

    kx, kp = jax.random.split(key)
    x_nchw = jax.random.normal(kx, (N, in_chs, H, W), jnp.float32)

    block_keys = jax.random.split(kp, layer_num)
    # ByobBlock: (layer_num - 1) blocks in_chs -> in_chs, then last_conv in_chs -> out_chs
    raw_params = [init_bottleneck_params(block_keys[i], in_chs, in_chs, ksize, bottle_ratio)
                  for i in range(layer_num - 1)]
    raw_params.append(init_bottleneck_params(block_keys[-1], in_chs, out_chs,
                                             ksize, bottle_ratio))
    prepared = [prepare_block_params(p) for p in raw_params]

    out_nchw = byob_block_forward(x_nchw, prepared)
    out_nchw = jax.block_until_ready(out_nchw)
    assert out_nchw.shape == (N, out_chs, H, W)

    # reference check (bf16-matched tolerance)
    ref = jnp.transpose(x_nchw, (0, 2, 3, 1)).astype(jnp.bfloat16)
    for p in raw_params:
        ref = ref_bottleneck(ref, p)
    ref_nchw = jnp.transpose(ref.astype(jnp.float32), (0, 3, 1, 2))

    err = float(jnp.max(jnp.abs(out_nchw - ref_nchw)))
    scale = float(jnp.max(jnp.abs(ref_nchw))) + 1e-6
    if err / scale < 3e-2:
        print("KERNEL_OK")
    else:
        print("MISMATCH", err, err / scale)
</pallas_src>

<mosaic_0001>
module attributes {stable_mosaic.version = 11 : i64} {
  func.func @kernel(%arg0: i32, %arg1: memref<1x256x128xbf16, #tpu.memory_space<vmem>>, %arg2: memref<128x128xbf16, #tpu.memory_space<vmem>>, %arg3: memref<1x128xf32, #tpu.memory_space<vmem>>, %arg4: memref<1x128xf32, #tpu.memory_space<vmem>>, %arg5: memref<3x384x128xbf16, #tpu.memory_space<vmem>>, %arg6: memref<1x128xf32, #tpu.memory_space<vmem>>, %arg7: memref<1x128xf32, #tpu.memory_space<vmem>>, %arg8: memref<128x128xbf16, #tpu.memory_space<vmem>>, %arg9: memref<1x128xf32, #tpu.memory_space<vmem>>, %arg10: memref<1x128xf32, #tpu.memory_space<vmem>>, %arg11: memref<1x256x128xbf16, #tpu.memory_space<vmem>>) attributes {dimension_semantics = [#tpu.dimension_semantics<parallel>], iteration_bounds = array<i64: 2>, scalar_prefetch = 0 : i64, scratch_operands = 0 : i64, tpu.core_type = #tpu.core_type<tc>, window_params = [{transform_indices = @transform_0, window_bounds = array<i64: 1, 256, 128>}, {pipeline_mode = #tpu.pipeline_mode<synchronous>, transform_indices = @transform_1, window_bounds = array<i64: 128, 128>}, {pipeline_mode = #tpu.pipeline_mode<synchronous>, transform_indices = @transform_2, window_bounds = array<i64: 1, 128>}, {pipeline_mode = #tpu.pipeline_mode<synchronous>, transform_indices = @transform_3, window_bounds = array<i64: 1, 128>}, {pipeline_mode = #tpu.pipeline_mode<synchronous>, transform_indices = @transform_4, window_bounds = array<i64: 3, 384, 128>}, {pipeline_mode = #tpu.pipeline_mode<synchronous>, transform_indices = @transform_5, window_bounds = array<i64: 1, 128>}, {pipeline_mode = #tpu.pipeline_mode<synchronous>, transform_indices = @transform_6, window_bounds = array<i64: 1, 128>}, {pipeline_mode = #tpu.pipeline_mode<synchronous>, transform_indices = @transform_7, window_bounds = array<i64: 128, 128>}, {pipeline_mode = #tpu.pipeline_mode<synchronous>, transform_indices = @transform_8, window_bounds = array<i64: 1, 128>}, {pipeline_mode = #tpu.pipeline_mode<synchronous>, transform_indices = @transform_9, window_bounds = array<i64: 1, 128>}, {transform_indices = @transform_10, window_bounds = array<i64: 1, 256, 128>}]} {
    %c0 = arith.constant 0 : index
    %c0_0 = arith.constant 0 : index
    %c0_1 = arith.constant 0 : index
    %0 = vector.load %arg1[%c0, %c0_0, %c0_1] : memref<1x256x128xbf16, #tpu.memory_space<vmem>>, vector<1x256x128xbf16>
    %1 = vector.shape_cast %0 : vector<1x256x128xbf16> to vector<256x128xbf16>
    %c0_2 = arith.constant 0 : index
    %c0_3 = arith.constant 0 : index
    %2 = vector.load %arg2[%c0_2, %c0_3] : memref<128x128xbf16, #tpu.memory_space<vmem>>, vector<128x128xbf16>
    %cst = arith.constant dense<0.000000e+00> : vector<256x128xf32>
    %3 = tpu.matmul %1, %2, %cst {dimension_numbers = #tpu.dot_dimension_numbers<[1], [0], [0], [1], [0, 0, 1, 1], [], []>} : vector<256x128xbf16>, vector<128x128xbf16>, vector<256x128xf32> -> vector<256x128xf32>
    %c0_4 = arith.constant 0 : index
    %c0_5 = arith.constant 0 : index
    %4 = vector.load %arg3[%c0_4, %c0_5] : memref<1x128xf32, #tpu.memory_space<vmem>>, vector<1x128xf32>
    %5 = vector.broadcast %4 : vector<1x128xf32> to vector<256x128xf32>
    %6 = arith.mulf %3, %5 : vector<256x128xf32>
    %c0_6 = arith.constant 0 : index
    %c0_7 = arith.constant 0 : index
    %7 = vector.load %arg4[%c0_6, %c0_7] : memref<1x128xf32, #tpu.memory_space<vmem>>, vector<1x128xf32>
    %8 = vector.broadcast %7 : vector<1x128xf32> to vector<256x128xf32>
    %9 = arith.addf %6, %8 : vector<256x128xf32>
    %cst_8 = arith.constant 0.000000e+00 : f32
    %10 = vector.broadcast %cst_8 : f32 to vector<256x128xf32>
    %11 = arith.maximumf %9, %10 : vector<256x128xf32>
    %12 = tpu.iota {dimensions = array<i32: 0>} : vector<256x128xi32>
    %c16_i32 = arith.constant 16 : i32
    %c0_i32 = arith.constant 0 : i32
    %13 = arith.cmpi eq, %c16_i32, %c0_i32 : i32
    %c1_i32 = arith.constant 1 : i32
    %14 = arith.select %13, %c1_i32, %c16_i32 : i32
    %15 = vector.broadcast %14 : i32 to vector<256x128xi32>
    %16 = arith.remsi %12, %15 : vector<256x128xi32>
    %c0_i32_9 = arith.constant 0 : i32
    %17 = vector.broadcast %c0_i32_9 : i32 to vector<256x128xi32>
    %18 = arith.cmpi ne, %16, %17 : vector<256x128xi32>
    %c0_i32_10 = arith.constant 0 : i32
    %19 = vector.broadcast %c0_i32_10 : i32 to vector<256x128xi32>
    %20 = arith.cmpi slt, %16, %19 : vector<256x128xi32>
    %c0_i32_11 = arith.constant 0 : i32
    %21 = arith.cmpi slt, %14, %c0_i32_11 : i32
    %22 = vector.broadcast %21 : i1 to vector<256x128xi1>
    %23 = vector.broadcast %22 : vector<256x128xi1> to vector<256x128xi1>
    %24 = arith.xori %20, %23 : vector<256x128xi1>
    %25 = arith.andi %24, %18 : vector<256x128xi1>
    %26 = vector.broadcast %14 : i32 to vector<256x128xi32>
    %27 = arith.addi %16, %26 : vector<256x128xi32>
    %28 = arith.select %25, %27, %16 : vector<256x128xi1>, vector<256x128xi32>
    %29 = tpu.iota {dimensions = array<i32: 0>} : vector<256x128xi32>
    %c1_i32_12 = arith.constant 1 : i32
    %30 = tpu.dynamic_rotate %11 by %c1_i32_12 dim 0 : vector<256x128xf32>, i32 -> vector<256x128xf32>
    %c1_i32_13 = arith.constant 1 : i32
    %31 = vector.broadcast %c1_i32_13 : i32 to vector<256x128xi32>
    %32 = arith.cmpi sge, %28, %31 : vector<256x128xi32>
    %cst_14 = arith.constant 0.000000e+00 : f32
    %33 = vector.broadcast %cst_14 : f32 to vector<256x128xf32>
    %34 = arith.select %32, %30, %33 : vector<256x128xi1>, vector<256x128xf32>
    %c255_i32 = arith.constant 255 : i32
    %35 = tpu.dynamic_rotate %11 by %c255_i32 dim 0 : vector<256x128xf32>, i32 -> vector<256x128xf32>
    %c15_i32 = arith.constant 15 : i32
    %36 = vector.broadcast %c15_i32 : i32 to vector<256x128xi32>
    %37 = arith.cmpi slt, %28, %36 : vector<256x128xi32>
    %cst_15 = arith.constant 0.000000e+00 : f32
    %38 = vector.broadcast %cst_15 : f32 to vector<256x128xf32>
    %39 = arith.select %37, %35, %38 : vector<256x128xi1>, vector<256x128xf32>
    %40 = tpu.concatenate %34, %11, %39 in 1 : vector<256x128xf32>, vector<256x128xf32>, vector<256x128xf32> -> vector<256x384xf32>
    %41 = arith.truncf %40 : vector<256x384xf32> to vector<256x384xbf16>
    %cst_16 = arith.constant 0.000000e+00 : f32
    %42 = vector.broadcast %cst_16 : f32 to vector<256x128xf32>
    %c0_17 = arith.constant 0 : index
    %c0_18 = arith.constant 0 : index
    %c0_19 = arith.constant 0 : index
    %43 = vector.load %arg5[%c0_17, %c0_18, %c0_19] : memref<3x384x128xbf16, #tpu.memory_space<vmem>>, vector<1x384x128xbf16>
    %44 = vector.shape_cast %43 : vector<1x384x128xbf16> to vector<384x128xbf16>
    %cst_20 = arith.constant dense<0.000000e+00> : vector<256x128xf32>
    %45 = tpu.matmul %41, %44, %cst_20 {dimension_numbers = #tpu.dot_dimension_numbers<[1], [0], [0], [1], [0, 0, 1, 1], [], []>} : vector<256x384xbf16>, vector<384x128xbf16>, vector<256x128xf32> -> vector<256x128xf32>
    %c16_i32_21 = arith.constant 16 : i32
    %46 = tpu.dynamic_rotate %45 by %c16_i32_21 dim 0 : vector<256x128xf32>, i32 -> vector<256x128xf32>
    %c16_i32_22 = arith.constant 16 : i32
    %47 = vector.broadcast %c16_i32_22 : i32 to vector<256x128xi32>
    %48 = arith.cmpi sge, %29, %47 : vector<256x128xi32>
    %cst_23 = arith.constant 0.000000e+00 : f32
    %49 = vector.broadcast %cst_23 : f32 to vector<256x128xf32>
    %50 = arith.select %48, %46, %49 : vector<256x128xi1>, vector<256x128xf32>
    %51 = arith.addf %42, %50 : vector<256x128xf32>
    %c1 = arith.constant 1 : index
    %c0_24 = arith.constant 0 : index
    %c0_25 = arith.constant 0 : index
    %52 = vector.load %arg5[%c1, %c0_24, %c0_25] : memref<3x384x128xbf16, #tpu.memory_space<vmem>>, vector<1x384x128xbf16>
    %53 = vector.shape_cast %52 : vector<1x384x128xbf16> to vector<384x128xbf16>
    %cst_26 = arith.constant dense<0.000000e+00> : vector<256x128xf32>
    %54 = tpu.matmul %41, %53, %cst_26 {dimension_numbers = #tpu.dot_dimension_numbers<[1], [0], [0], [1], [0, 0, 1, 1], [], []>} : vector<256x384xbf16>, vector<384x128xbf16>, vector<256x128xf32> -> vector<256x128xf32>
    %55 = arith.addf %51, %54 : vector<256x128xf32>
    %c2 = arith.constant 2 : index
    %c0_27 = arith.constant 0 : index
    %c0_28 = arith.constant 0 : index
    %56 = vector.load %arg5[%c2, %c0_27, %c0_28] : memref<3x384x128xbf16, #tpu.memory_space<vmem>>, vector<1x384x128xbf16>
    %57 = vector.shape_cast %56 : vector<1x384x128xbf16> to vector<384x128xbf16>
    %cst_29 = arith.constant dense<0.000000e+00> : vector<256x128xf32>
    %58 = tpu.matmul %41, %57, %cst_29 {dimension_numbers = #tpu.dot_dimension_numbers<[1], [0], [0], [1], [0, 0, 1, 1], [], []>} : vector<256x384xbf16>, vector<384x128xbf16>, vector<256x128xf32> -> vector<256x128xf32>
    %c240_i32 = arith.constant 240 : i32
    %59 = tpu.dynamic_rotate %58 by %c240_i32 dim 0 : vector<256x128xf32>, i32 -> vector<256x128xf32>
    %c240_i32_30 = arith.constant 240 : i32
    %60 = vector.broadcast %c240_i32_30 : i32 to vector<256x128xi32>
    %61 = arith.cmpi slt, %29, %60 : vector<256x128xi32>
    %cst_31 = arith.constant 0.000000e+00 : f32
    %62 = vector.broadcast %cst_31 : f32 to vector<256x128xf32>
    %63 = arith.select %61, %59, %62 : vector<256x128xi1>, vector<256x128xf32>
    %64 = arith.addf %55, %63 : vector<256x128xf32>
    %c0_32 = arith.constant 0 : index
    %c0_33 = arith.constant 0 : index
    %65 = vector.load %arg6[%c0_32, %c0_33] : memref<1x128xf32, #tpu.memory_space<vmem>>, vector<1x128xf32>
    %66 = vector.broadcast %65 : vector<1x128xf32> to vector<256x128xf32>
    %67 = arith.mulf %64, %66 : vector<256x128xf32>
    %c0_34 = arith.constant 0 : index
    %c0_35 = arith.constant 0 : index
    %68 = vector.load %arg7[%c0_34, %c0_35] : memref<1x128xf32, #tpu.memory_space<vmem>>, vector<1x128xf32>
    %69 = vector.broadcast %68 : vector<1x128xf32> to vector<256x128xf32>
    %70 = arith.addf %67, %69 : vector<256x128xf32>
    %cst_36 = arith.constant 0.000000e+00 : f32
    %71 = vector.broadcast %cst_36 : f32 to vector<256x128xf32>
    %72 = arith.maximumf %70, %71 : vector<256x128xf32>
    %73 = arith.truncf %72 : vector<256x128xf32> to vector<256x128xbf16>
    %c0_37 = arith.constant 0 : index
    %c0_38 = arith.constant 0 : index
    %74 = vector.load %arg8[%c0_37, %c0_38] : memref<128x128xbf16, #tpu.memory_space<vmem>>, vector<128x128xbf16>
    %cst_39 = arith.constant dense<0.000000e+00> : vector<256x128xf32>
    %75 = tpu.matmul %73, %74, %cst_39 {dimension_numbers = #tpu.dot_dimension_numbers<[1], [0], [0], [1], [0, 0, 1, 1], [], []>} : vector<256x128xbf16>, vector<128x128xbf16>, vector<256x128xf32> -> vector<256x128xf32>
    %c0_40 = arith.constant 0 : index
    %c0_41 = arith.constant 0 : index
    %76 = vector.load %arg9[%c0_40, %c0_41] : memref<1x128xf32, #tpu.memory_space<vmem>>, vector<1x128xf32>
    %77 = vector.broadcast %76 : vector<1x128xf32> to vector<256x128xf32>
    %78 = arith.mulf %75, %77 : vector<256x128xf32>
    %c0_42 = arith.constant 0 : index
    %c0_43 = arith.constant 0 : index
    %79 = vector.load %arg10[%c0_42, %c0_43] : memref<1x128xf32, #tpu.memory_space<vmem>>, vector<1x128xf32>
    %80 = vector.broadcast %79 : vector<1x128xf32> to vector<256x128xf32>
    %81 = arith.addf %78, %80 : vector<256x128xf32>
    %82 = arith.extf %1 : vector<256x128xbf16> to vector<256x128xf32>
    %83 = arith.addf %81, %82 : vector<256x128xf32>
    %cst_44 = arith.constant 0.000000e+00 : f32
    %84 = vector.broadcast %cst_44 : f32 to vector<256x128xf32>
    %85 = arith.maximumf %83, %84 : vector<256x128xf32>
    %86 = arith.truncf %85 : vector<256x128xf32> to vector<256x128xbf16>
    %c0_45 = arith.constant 0 : index
    %c0_46 = arith.constant 0 : index
    %c0_47 = arith.constant 0 : index
    %87 = vector.load %arg11[%c0_45, %c0_46, %c0_47] : memref<1x256x128xbf16, #tpu.memory_space<vmem>>, vector<1x256x128xbf16>
    %88 = vector.shape_cast %87 : vector<1x256x128xbf16> to vector<256x128xbf16>
    %89 = vector.shape_cast %86 : vector<256x128xbf16> to vector<1x256x128xbf16>
    tpu.vector_store %arg11[%c0_45, %c0_46, %c0_47], %89 {strides = array<i32>} : memref<1x256x128xbf16, #tpu.memory_space<vmem>>, vector<1x256x128xbf16>,
    return
  }
  func.func @transform_0(%arg0: i32) -> (i32, i32, i32) {
    %c0_i32 = arith.constant 0 : i32
    %c0_i32_0 = arith.constant 0 : i32
    %c0_i32_1 = arith.constant 0 : i32
    return %arg0, %c0_i32, %c0_i32_0 : i32, i32, i32
  }
  func.func @transform_1(%arg0: i32) -> (i32, i32) {
    %c0_i32 = arith.constant 0 : i32
    %c0_i32_0 = arith.constant 0 : i32
    %c0_i32_1 = arith.constant 0 : i32
    return %c0_i32, %c0_i32_0 : i32, i32
  }
  func.func @transform_2(%arg0: i32) -> (i32, i32) {
    %c0_i32 = arith.constant 0 : i32
    %c0_i32_0 = arith.constant 0 : i32
    %c0_i32_1 = arith.constant 0 : i32
    return %c0_i32, %c0_i32_0 : i32, i32
  }
  func.func @transform_3(%arg0: i32) -> (i32, i32) {
    %c0_i32 = arith.constant 0 : i32
    %c0_i32_0 = arith.constant 0 : i32
    %c0_i32_1 = arith.constant 0 : i32
    return %c0_i32, %c0_i32_0 : i32, i32
  }
  func.func @transform_4(%arg0: i32) -> (i32, i32, i32) {
    %c0_i32 = arith.constant 0 : i32
    %c0_i32_0 = arith.constant 0 : i32
    %c0_i32_1 = arith.constant 0 : i32
    %c0_i32_2 = arith.constant 0 : i32
    return %c0_i32, %c0_i32_0, %c0_i32_1 : i32, i32, i32
  }
  func.func @transform_5(%arg0: i32) -> (i32, i32) {
    %c0_i32 = arith.constant 0 : i32
    %c0_i32_0 = arith.constant 0 : i32
    %c0_i32_1 = arith.constant 0 : i32
    return %c0_i32, %c0_i32_0 : i32, i32
  }
  func.func @transform_6(%arg0: i32) -> (i32, i32) {
    %c0_i32 = arith.constant 0 : i32
    %c0_i32_0 = arith.constant 0 : i32
    %c0_i32_1 = arith.constant 0 : i32
    return %c0_i32, %c0_i32_0 : i32, i32
  }
  func.func @transform_7(%arg0: i32) -> (i32, i32) {
    %c0_i32 = arith.constant 0 : i32
    %c0_i32_0 = arith.constant 0 : i32
    %c0_i32_1 = arith.constant 0 : i32
    return %c0_i32, %c0_i32_0 : i32, i32
  }
  func.func @transform_8(%arg0: i32) -> (i32, i32) {
    %c0_i32 = arith.constant 0 : i32
    %c0_i32_0 = arith.constant 0 : i32
    %c0_i32_1 = arith.constant 0 : i32
    return %c0_i32, %c0_i32_0 : i32, i32
  }
  func.func @transform_9(%arg0: i32) -> (i32, i32) {
    %c0_i32 = arith.constant 0 : i32
    %c0_i32_0 = arith.constant 0 : i32
    %c0_i32_1 = arith.constant 0 : i32
    return %c0_i32, %c0_i32_0 : i32, i32
  }
  func.func @transform_10(%arg0: i32) -> (i32, i32, i32) {
    %c0_i32 = arith.constant 0 : i32
    %c0_i32_0 = arith.constant 0 : i32
    %c0_i32_1 = arith.constant 0 : i32
    return %arg0, %c0_i32, %c0_i32_0 : i32, i32, i32
  }
}

</mosaic_0001>

<bundles_post_ra>
// kernel: tpu_custom_call.1
= control target key start
LH: loop header
LB: loop body
LE: loop exit
PB: predicated region body
PF: predicated region fallthrough
CT: control target
= control target key end

     0   :  { %s8181_s0 = inlined_call_operand.hbm [shape: bf16[2,256,128], index: 0, kind: input, shape index: {}]   ;;  %s8182_s1 = inlined_call_operand.hbm [shape: bf16[128,128], index: 1, kind: input, shape index: {}]   ;;  %s8183_s2 = inlined_call_operand.vmem [shape: f32[1,128], index: 2, kind: input, shape index: {}]   ;;  %s8184_s3 = inlined_call_operand.vmem [shape: f32[1,128], index: 3, kind: input, shape index: {}]   ;;  %s8185_s4 = inlined_call_operand.hbm [shape: bf16[3,384,128], index: 4, kind: input, shape index: {}]   ;;  %s8186_s5 = inlined_call_operand.vmem [shape: f32[1,128], index: 5, kind: input, shape index: {}]   ;;  %s8187_s6 = inlined_call_operand.vmem [shape: f32[1,128], index: 6, kind: input, shape index: {}]   ;;  %s8188_s7 = inlined_call_operand.hbm [shape: bf16[128,128], index: 7, kind: input, shape index: {}]   ;;  %s8189_s8 = inlined_call_operand.vmem [shape: f32[1,128], index: 8, kind: input, shape index: {}]   ;;  %s8190_s9 = inlined_call_operand.vmem [shape: f32[1,128], index: 9, kind: input, shape index: {}]   ;;  %s8191_s10 = inlined_call_operand.hbm [shape: bf16[2,256,128], index: 10, kind: output, shape index: {}]  }
   0x1   :  { %8311 = sst [smem:[#allocation53_spill]] %s8190_s9 }
   0x2   :  { %8312 = sst [smem:[#allocation54_spill]] %s8191_s10 }
   0x3   :  { %15 = vsyncpa [#allocation3], 0 }
   0x4   :  { %17 = vsyncpa [#allocation3 + $0x1], 0 }
   0x5   :  { %18 = vsyncpa [#allocation6], 0 }
   0x6   :  { %19 = vsyncpa [#allocation9], 0 }
   0x7   :  { %20 = vsyncpa [#allocation4], 0 }
   0x8   :  { %22 = vsyncpa [#allocation4 + $0x1], 0  ;;  %s5942_s13 = smov 0   ;;  %s5944_s14 = smov 0  }
   0x9   :  { %s5946_s15 = smov 0   ;;  %s5948_s16 = smov 0  }
   0xa LB: > { %8313 = sst [smem:[#allocation15_spill]] %s5863_s13  ;;  %s5963_s17 = sadd.s32 4294967295, %s5875_s16   ;;  %s5875_s16 = sphi %s5948_s16, %s8673_s16   ;;  %s5871_s15 = sphi %s5946_s15, %s8672_s15   ;;  %s5867_s14 = sphi %s5944_s14, %s8671_s14   ;;  %s5863_s13 = sphi %s5942_s13, %s8670_s13  }
   0xb   : > { %s4178_s18 = sadd.s32 4294967294, %s5875_s16   ;;  %p48_p0 = scmp.ne.s32.totalorder %s5867_s14, %s5863_s13 }
   0xc   : > { %p8192_p1 = scmp.eq.s32.totalorder %s5963_s17, 0  ;;  %p267_p3 = scmp.eq.s32.totalorder %s4178_s18, 1 }
   0xd   : > { %p4179_p5 = scmp.ge.s32.totalorder %s5875_s16, 1  ;;  %p274_p7 = scmp.lt.s32.totalorder %s5875_s16, 3 }
   0xe   : > { %p5972_p4 = por %p8192_p1, %p48_p0  ;;  %p5977_p6 = por %p267_p3, %p48_p0 }
   0xf   : > { %p5982_p8 = pnand %p4179_p5, %p274_p7  ;;  %s5877_s22 = smov [#allocation5]  }
  0x10   : > { %s8314_s19 = scalar_select %p5972_p4, 1, 0 }
  0x11   : > { %s8315_s20 = scalar_select %p5977_p6, 1, 0 }
  0x12   : > { %s8317_s21 = scalar_select %p5982_p8, 1, 0 }
  0x13   : > { %8316 = sst [smem:[#allocation16_spill]] %s8315_s20  ;;  %s286_s23 = sshll.u32 %s5877_s22, 4  ;;  %s5986_s23 = int_to_ptr.vmem [resolvable:$true] %s286_s23 }
  0x14   : > { %p5485_p9 = pneg %p5982_p8  ;;  %s5878_s25 = smov [#allocation7]  }
  0x15   : > { %s305_s26 = sshll.u32 %s5878_s25, 4  ;;  %s5879_s27 = smov [#allocation8]   ;;  %s5997_s26 = int_to_ptr.vmem [resolvable:$true] %s305_s26 }
  0x16   : > { %p5993_p11 = pnand %p5485_p9, %p8192_p1  ;;  %s5999_s28 = sshll.u32 %s5879_s27, 4  ;;  %s325_s28 = int_to_ptr.vmem [resolvable:$true] %s5999_s28 }
  0x17   : > { %s5687_s11 = scalar_lea.hbm %s8182_s1, 1024 }
  0x18   : > { %p5688_p12 = scmp.ne.s32.totalorder %s8182_s1, %s5687_s11  ;;  %p6009_p13 = pneg %p5993_p11 }
  0x19   : > { %p5694_p5 = scmp.lt.u32.totalorder %s5687_s11, %s8182_s1 }
  0x1a   : > { %p5690_p0 = pnand %p6009_p13, %p5688_p12 }
  0x1c   : > { %p5691_p3 = pneg %p5690_p0 }
  0x1e   : > { %p5696_p7 = pnand %p5694_p5, %p5691_p3 }
  0x20   : > { %5699 = shalt.err (!%p5696_p7)
}
  0x21   : > { %s5700_s29 = scalar_lea.vmem %s5986_s23, 1024  ;;  %p5708_p2 = scmp.lt.s32.totalorder %s5986_s23, %s5986_s23 }
  0x22   : > { %p5701_p9 = scmp.ne.s32.totalorder %s5986_s23, %s5700_s29  ;;  %p5709_p6 = scmp.lt.s32.totalorder %s5700_s29, %s5700_s29 }
  0x24   : > { %p5703_p10 = pnand %p5701_p9, %p6009_p13  ;;  %p5710_p12 = por %p5709_p6, %p5708_p2 }
  0x26   : > { %p5704_p1 = pneg %p5703_p10 }
  0x28   : > { %p5711_p0 = pnand %p5710_p12, %p5704_p1 }
  0x2a   : > { %5714 = shalt.err (!%p5711_p0)
}
  0x2b   : > { %s5880_s30 = smov 64   ;;  %s5881_s11 = smov 4  }
  0x2c   : > { %5488 = dma.hbm_to_vmem [thread:$0]  (!%p5993_p11), %s8182_s1, 1024, %s5986_s23, [#allocation6], %s5880_s30, %s5880_s30, %s5881_s11  }
  0x2d   : > { %s5715_s29 = scalar_lea.hbm %s8185_s4, 9216 }
  0x2e   : > { %p5716_p1 = scmp.ne.s32.totalorder %s8185_s4, %s5715_s29  ;;  %p5722_p10 = scmp.lt.u32.totalorder %s5715_s29, %s8185_s4 }
  0x30   : > { %p5718_p2 = pnand %p5716_p1, %p6009_p13 }
  0x32   : > { %p5719_p6 = pneg %p5718_p2 }
  0x34   : > { %p5724_p3 = pnand %p5722_p10, %p5719_p6 }
  0x36   : > { %5727 = shalt.err (!%p5724_p3)
}
  0x37   : > { %s5728_s23 = scalar_lea.vmem %s5997_s26, 9216  ;;  %p5736_p12 = scmp.lt.s32.totalorder %s5997_s26, %s5997_s26 }
  0x38   : > { %p5729_p5 = scmp.ne.s32.totalorder %s5997_s26, %s5728_s23  ;;  %p5737_p0 = scmp.lt.s32.totalorder %s5728_s23, %s5728_s23 }
  0x3a   : > { %p5731_p7 = pnand %p5729_p5, %p6009_p13  ;;  %p5738_p1 = por %p5737_p0, %p5736_p12 }
  0x3c   : > { %p5732_p9 = pneg %p5731_p7 }
  0x3e   : > { %p5739_p2 = pnand %p5738_p1, %p5732_p9 }
  0x40   : > { %5742 = shalt.err (!%p5739_p2)
}
  0x41   : > { %5491 = dma.hbm_to_vmem [thread:$0]  (!%p5993_p11), %s8185_s4, 9216, %s5997_s26, [#allocation6], %s5880_s30, %s5880_s30, %s5881_s11  }
  0x42   : > { %s5743_s12 = scalar_lea.hbm %s8188_s7, 1024 }
  0x43   : > { %p5744_p6 = scmp.ne.s32.totalorder %s8188_s7, %s5743_s12  ;;  %p5750_p5 = scmp.lt.u32.totalorder %s5743_s12, %s8188_s7 }
  0x45   : > { %p5746_p10 = pnand %p5744_p6, %p6009_p13 }
  0x47   : > { %p5747_p3 = pneg %p5746_p10 }
  0x49   : > { %p5752_p7 = pnand %p5750_p5, %p5747_p3 }
  0x4b   : > { %5755 = shalt.err (!%p5752_p7)
}
  0x4c   : > { %s5756_s23 = scalar_lea.vmem %s325_s28, 1024  ;;  %p5764_p1 = scmp.lt.s32.totalorder %s325_s28, %s325_s28 }
  0x4d   : > { %p5757_p9 = scmp.ne.s32.totalorder %s325_s28, %s5756_s23  ;;  %p5765_p2 = scmp.lt.s32.totalorder %s5756_s23, %s5756_s23 }
  0x4f   : > { %p5759_p12 = pnand %p5757_p9, %p6009_p13  ;;  %p5766_p4 = por %p5765_p2, %p5764_p1 }
  0x51   : > { %p5760_p0 = pneg %p5759_p12 }
  0x53   : > { %p5767_p8 = pnand %p5766_p4, %p5760_p0 }
  0x55   : > { %5770 = shalt.err (!%p5767_p8)
}
  0x56   : > { %5494 = dma.hbm_to_vmem [thread:$0]  (!%p5993_p11), %s8188_s7, 1024, %s325_s28, [#allocation9], %s5880_s30, %s5880_s30, %s5881_s11  }
  0x57   : > { %s6082_s22 = sadd.s32 1, %s5875_s16   ;;  %s35_s10 = sadd.s32 1, %s5871_s15 }
  0x58   : > { %s32_s24 = ssub.s32 %s5875_s16, %s6082_s22  ;;  %p42_p8 = scmp.ne.s32.totalorder %s5871_s15, %s5867_s14 }
  0x59   : > { %p33_p4 = scmp.eq.s32.totalorder %s32_s24, 0  ;;  %p43_p13 = scmp.eq.s32.totalorder %s5875_s16, 0 }
  0x5a   : > { %p5506_p6 = scmp.lt.s32.totalorder %s5875_s16, 2  ;;  %p8320_p3 = scmp.eq.s32.totalorder %s5963_s17, 1 }
  0x5b   : > { %s6092_s13 = scalar_select %p33_p4, %s5871_s15, %s35_s10  }
  0x5c   : > { %p44_p10 = por %p43_p13, %p42_p8  ;;  %p6096_p5 = por %p8320_p3, %p42_p8 }
  0x5d   : > { %s344_s12 = sand.u32 1, %s5871_s15   ;;  %s4628_s18 = sshll.u32 %s5875_s16, 11 }
  0x5e   : > { %s4184_s28 = sshll.u32 %s344_s12, 7  ;;  %s6105_s29 = scalar_lea.hbm %s8181_s0, %s4628_s18 }
  0x5f   : > { %s348_s23 = scalar_lea.vmem [#allocation2], %s4184_s28  ;;  %p6107_p11 = pnand %p5506_p6, %p44_p10 }
  0x60   : > { %s355_s26 = sshll.u32 %s348_s23, 4  ;;  %s6113_s24 = scalar_lea.sflag [#allocation3], %s344_s12  ;;  %s6111_s26 = int_to_ptr.vmem [resolvable:$true] %s355_s26 }
  0x61   : > { %s5771_s10 = scalar_lea.hbm %s6105_s29, 2048  ;;  %p5773_p9 = pneg %p6107_p11 }
  0x62   : > { %p5772_p7 = scmp.ne.s32.totalorder %s6105_s29, %s5771_s10  ;;  %s5776_s25 = scalar_lea.hbm %s8181_s0, 4096 }
  0x63   : > { %p5777_p1 = scmp.lt.u32.totalorder %s6105_s29, %s8181_s0  ;;  %p5778_p2 = scmp.lt.u32.totalorder %s5776_s25, %s5771_s10 }
  0x64   : > { %p5774_p12 = pnand %p5773_p9, %p5772_p7  ;;  %p5780_p8 = scmp.lt.u32.totalorder %s5771_s10, %s6105_s29 }
  0x65   : > { %p5779_p4 = por %p5778_p2, %p5777_p1 }
  0x66   : > { %p5775_p0 = pneg %p5774_p12 }
  0x67   : > { %p5781_p13 = por %p5780_p8, %p5779_p4 }
  0x69   : > { %p5782_p6 = pnand %p5781_p13, %p5775_p0 }
  0x6b   : > { %5785 = shalt.err (!%p5782_p6)
}
  0x6c   : > { %s5786_s12 = scalar_lea.vmem %s6111_s26, 2048  ;;  %s5882_s18 = smov [#allocation2]  }
  0x6d   : > { %p5787_p10 = scmp.ne.s32.totalorder %s6111_s26, %s5786_s12  ;;  %s5791_s28 = sshll.u32 %s5882_s18, 4  ;;  %s5792_s28 = int_to_ptr.vmem [resolvable:$false] %s5791_s28 }
  0x6e   : > { %s5793_s27 = scalar_lea.vmem %s5792_s28, 4096  ;;  %p5794_p12 = scmp.lt.s32.totalorder %s6111_s26, %s5792_s28 }
  0x6f   : > { %p5789_p3 = pnand %p5787_p10, %p5773_p9  ;;  %p5795_p1 = scmp.lt.s32.totalorder %s5793_s27, %s5786_s12 }
  0x71   : > { %p5790_p7 = pneg %p5789_p3  ;;  %p5796_p2 = por %p5795_p1, %p5794_p12 }
  0x73   : > { %p5797_p4 = pnand %p5796_p2, %p5790_p7 }
  0x75   : > { %5800 = shalt.err (!%p5797_p4)
}
  0x76   : > { %5498 = dma.hbm_to_vmem [thread:$0]  (!%p6107_p11), %s6105_s29, 2048, %s6111_s26, %s6113_s24, %s5880_s30, %s5880_s30, %s5881_s11  }
  0x77   : > { %p8323_p9 = scmp.ne.s32.totalorder %s8317_s21, 0 }
  0x79   : > { %367 = sbr.rel (%p8323_p9) target bundleno = 1235 (0x4d3), region = 60 }
  0x80   : > { %s6147_s10 = sand.u32 1, %s5867_s14   ;;  %p8324_p0 = scmp.ne.s32.totalorder %s8314_s19, 0 }
  0x81   : > { %s4188_s25 = sshll.u32 %s6147_s10, 7  ;;  %s370_s23 = scalar_lea.sflag [#allocation3], %s6147_s10 }
  0x82   : > { %s6153_s9 = scalar_lea.vmem [#allocation2], %s4188_s25 }
  0x83   : > { %5846 = dma.done.wait (%p8324_p0), %s370_s23, 2048  }
  0x84   : > { %5848 = vsyncadd (%p8324_p0), %s370_s23, 4294965248  ;;  %p8325_p11 = scmp.eq.s32.totalorder %s5963_s17, 0 }
  0x86   : > { %5850 = dma.done.wait (%p8325_p11), [#allocation6], 10240   ;;  %p8326_p8 = pmov %p8325_p11 }
  0x88   : > { %5852 = vsyncadd (%p8326_p8), [#allocation6], 4294957056  ;;  %p8327_p13 = pmov %p8326_p8 }
  0x89   : > { %p8328_p6 = pmov %p8326_p8 }
  0x8a   : > { %5854 = dma.done.wait (%p8327_p13), [#allocation9], 1024  }
  0x8b   : > { %5856 = vsyncadd (%p8328_p6), [#allocation9], 4294966272  ;;  %v5551_v0 = vld [vmem:[#allocation5] sm:$0xff]   ;;  %v5552_v1 = vld [vmem:[#allocation5 + $0x8] sm:$0xff]   ;;  %v886_v50 = vlaneseq  ;;  %vm8234_vm4 = vmmov 1   ;;  %s8663_s19 = sld [smem:[#allocation53_spill]] }
  0x8c   : > { %5213 = vmatprep.subr.bf16.mxu0 %v5551_v0  ;;  %5453 = vmatprep.subr.bf16.mxu1 %v5551_v0  ;;  %v5553_v2 = vld [vmem:[#allocation5 + $0x10] sm:$0xff]   ;;  %v5554_v3 = vld [vmem:[#allocation5 + $0x18] sm:$0xff]   ;;  %v423_v4 = vld [vmem:[%s6153_s9] sm:$0xff]   ;;  %s8042_s21 = scalar_lea.vmem [#allocation10], %s4188_s25  ;;  %s4661_s25 = sshll.u32 %s5963_s17, 11 }
  0x8d   : > { %5214 = vmatpush3.bf16.msra.mxu0 %v5551_v0  ;;  %5461 = vmatpush3.bf16.msra.mxu1 %v5551_v0  ;;  %v439_v5 = vld [vmem:[%s6153_s9 + $0x40] sm:$0xff]   ;;  %v5556_v7 = vld [vmem:[#allocation5 + $0x28] sm:$0xff]   ;;  %v5557_v8 = vld [vmem:[#allocation5 + $0x30] sm:$0xff]   ;;  %v6186_v51 = vshrl.u32 %v886_v50, 7  ;;  %s8664_s29 = sld [smem:[#allocation54_spill]]  ;;  %s4063_s17 = scalar_lea.sflag [#allocation4], %s6147_s10 }
  0x8e   : > { %5215 = vmatprep.subr.bf16.mxu0 %v5552_v1  ;;  %5454 = vmatprep.subr.bf16.mxu1 %v5552_v1  ;;  %v5555_v6 = vld [vmem:[#allocation5 + $0x20] sm:$0xff]   ;;  %v5558_v9 = vld [vmem:[#allocation5 + $0x38] sm:$0xff]   ;;  %v425_v10 = vld [vmem:[%s6153_s9 + $0x8] sm:$0xff]   ;;  %s5884_s12 = smov [#allocation10]  }
  0x8f   : > { %5229 = vmatprep.mubr.bf16.mxu0 %v423_v4  ;;  %5245 = vmatprep.mubr.bf16.mxu1 %v439_v5  ;;  %v441_v11 = vld [vmem:[%s6153_s9 + $0x48] sm:$0xff]   ;;  %v427_v12 = vld [vmem:[%s6153_s9 + $0x10] sm:$0xff]   ;;  %v5575_v14 = vld [vmem:[#allocation7 + $0x80] sm:$0xff]   ;;  %v6189_v52 = vadd.s32 8, %v6186_v51  ;;  %v6192_v53 = vadd.s32 24, %v6186_v51  ;;  %v6195_v54 = vadd.s32 40, %v6186_v51 }
  0x90   : > { %v443_v13 = vld [vmem:[%s6153_s9 + $0x50] sm:$0xff]   ;;  %v5576_v15 = vld [vmem:[#allocation7 + $0x88] sm:$0xff]   ;;  %v429_v16 = vld [vmem:[%s6153_s9 + $0x18] sm:$0xff]   ;;  %v6198_v55 = vadd.s32 56, %v6186_v51  ;;  %v6201_v56 = vadd.s32 72, %v6186_v51  ;;  %v6204_v57 = vadd.s32 88, %v6186_v51 }
  0x91   : > { %5216 = vmatpush3.bf16.msra.mxu0 %v5552_v1  ;;  %5462 = vmatpush3.bf16.msra.mxu1 %v5552_v1  ;;  %v445_v17 = vld [vmem:[%s6153_s9 + $0x58] sm:$0xff]   ;;  %v431_v18 = vld [vmem:[%s6153_s9 + $0x20] sm:$0xff]   ;;  %v5577_v20 = vld [vmem:[#allocation7 + $0x90] sm:$0xff]   ;;  %v6207_v58 = vadd.s32 104, %v6186_v51  ;;  %v6210_v59 = vadd.s32 120, %v6186_v51  ;;  %v6213_v60 = vadd.s32 16, %v6186_v51 }
  0x92   : > { %5217 = vmatprep.subr.bf16.mxu0 %v5553_v2  ;;  %5455 = vmatprep.subr.bf16.mxu1 %v5553_v2  ;;  %v447_v19 = vld [vmem:[%s6153_s9 + $0x60] sm:$0xff]   ;;  %v433_v21 = vld [vmem:[%s6153_s9 + $0x28] sm:$0xff]   ;;  %v435_v23 = vld [vmem:[%s6153_s9 + $0x30] sm:$0xff]   ;;  %v930_v62 = vand.u32 15, %v6189_v52  ;;  %v944_v63 = vand.u32 15, %v6192_v53  ;;  %vm1464_vm0 = vcmp.lt.s32.totalorder %v6186_v51, 7 }
  0x93   : > { %v449_v22 = vld [vmem:[%s6153_s9 + $0x68] sm:$0xff]   ;;  %v451_v24 = vld [vmem:[%s6153_s9 + $0x70] sm:$0xff]   ;;  %v437_v25 = vld [vmem:[%s6153_s9 + $0x38] sm:$0xff]   ;;  %vm8246_vm1 = vcmp.lt.s32.totalorder %v6186_v51, 1  ;;  %s8133_s26 = scalar_lea.hbm %s8664_s29, %s4661_s25  ;;  %s5805_s18 = sshll.u32 %s5884_s12, 4  ;;  %s5806_s18 = int_to_ptr.vmem [resolvable:$false] %s5805_s18 }
  0x94   : > { %v453_v26 = vld [vmem:[%s6153_s9 + $0x78] sm:$0xff]   ;;  %v5580_v28 = vld [vmem:[#allocation7 + $0xa0] sm:$0xff]   ;;  %v5583_v31 = vld [vmem:[#allocation7 + $0xa8] sm:$0xff]   ;;  %vm6345_vm2 = vcmp.lt.s32.totalorder %v930_v62, 15  ;;  %vm6356_vm3 = vcmp.lt.s32.totalorder %v944_v63, 15  ;;  %s5807_s28 = scalar_lea.vmem %s5806_s18, 4096 }
  0x95   : > { %5218 = vmatpush3.bf16.msra.mxu0 %v5553_v2  ;;  %5463 = vmatpush3.bf16.msra.mxu1 %v5553_v2  ;;  %v5578_v27 = vld [vmem:[#allocation7 + $0x98] sm:$0xff]   ;;  %v5579_v29 = vld [vmem:[#allocation7 + $0x40] sm:$0xff]   ;;  %v5582_v32 = vld [vmem:[#allocation7 + $0x48] sm:$0xff]  }
  0x96   : > { %5219 = vmatprep.subr.bf16.mxu0 %v5554_v3  ;;  %5456 = vmatprep.subr.bf16.mxu1 %v5554_v3  ;;  %v5581_v30 = vld [vmem:[#allocation7] sm:$0xff]   ;;  %v5584_v33 = vld [vmem:[#allocation7 + $0x8] sm:$0xff]   ;;  %v5586_v34 = vld [vmem:[#allocation7 + $0xb0] sm:$0xff]  }
  0x97   : > { %v5585_v35 = vld [vmem:[#allocation7 + $0x50] sm:$0xff]   ;;  %v5589_v37 = vld [vmem:[#allocation7 + $0xb8] sm:$0xff]   ;;  %v5591_v40 = vld [vmem:[#allocation7 + $0x60] sm:$0xff]  }
  0x98   : > { %v5587_v36 = vld [vmem:[#allocation7 + $0x10] sm:$0xff]   ;;  %v5588_v38 = vld [vmem:[#allocation7 + $0x58] sm:$0xff]   ;;  %v5592_v41 = vld [vmem:[#allocation7 + $0x20] sm:$0xff]  }
  0x99   : > { %5220 = vmatpush3.bf16.msra.mxu0 %v5554_v3  ;;  %5464 = vmatpush3.bf16.msra.mxu1 %v5554_v3  ;;  %v5590_v39 = vld [vmem:[#allocation7 + $0x18] sm:$0xff]   ;;  %v5593_v42 = vld [vmem:[#allocation7 + $0x68] sm:$0xff]   ;;  %v5595_v44 = vld [vmem:[#allocation7 + $0x70] sm:$0xff]  }
  0x9a   : > { %5221 = vmatprep.subr.bf16.mxu0 %v5555_v6  ;;  %5457 = vmatprep.subr.bf16.mxu1 %v5555_v6  ;;  %v5594_v43 = vld [vmem:[#allocation7 + $0x28] sm:$0xff]   ;;  %v5596_v45 = vld [vmem:[#allocation7 + $0x30] sm:$0xff]   ;;  %v5597_v46 = vld [vmem:[#allocation7 + $0x78] sm:$0xff]  }
  0x9b   : > { %v5598_v47 = vld [vmem:[#allocation7 + $0x38] sm:$0xff]   ;;  %v6183_v48 = vld [vmem:[#allocation7 + $0x140] sm:$0xff]   ;;  %vm6422_vm5 = vmpackc.low %vm6345_vm2, %vm8234_vm4 }
  0x9c   : > { %v5600_v49 = vld [vmem:[#allocation7 + $0x100] sm:$0xff]   ;;  %vm6432_vm6 = vmpackc.low %vm6356_vm3, %vm8234_vm4 }
  0x9d   : > { %5222 = vmatpush3.bf16.msra.mxu0 %v5555_v6  ;;  %5465 = vmatpush3.bf16.msra.mxu1 %v5555_v6  ;;  %v6218_v61 = vld [vmem:[%s8183_s2] ss:$0 sm:$0xff] }
  0x9e   : > { %5223 = vmatprep.subr.bf16.mxu0 %v5556_v7  ;;  %5458 = vmatprep.subr.bf16.mxu1 %v5556_v7  ;;  %v6227_v2 = vld [vmem:[%s8184_s3] ss:$0 sm:$0xff] }
  0xa1   : > { %5224 = vmatpush3.bf16.msra.mxu0 %v5556_v7  ;;  %5466 = vmatpush3.bf16.msra.mxu1 %v5556_v7 }
  0xa2   : > { %5225 = vmatprep.subr.bf16.mxu0 %v5557_v8  ;;  %5459 = vmatprep.subr.bf16.mxu1 %v5557_v8 }
  0xa5   : > { %5226 = vmatpush3.bf16.msra.mxu0 %v5557_v8  ;;  %5467 = vmatpush3.bf16.msra.mxu1 %v5557_v8 }
  0xa6   : > { %5227 = vmatprep.subr.bf16.mxu0 %v5558_v9  ;;  %5460 = vmatprep.subr.bf16.mxu1 %v5558_v9 }
  0xa9   : > { %5228 = vmatpush3.bf16.msra.mxu0 %v5558_v9  ;;  %5468 = vmatpush3.bf16.msra.mxu1 %v5558_v9 }
  0xaa   : > { %5261 = vmatprep.subr.bf16.mxu0 %v5575_v14  ;;  %4781 = vmatprep.subr.bf16.mxu1 %v5579_v29 }
  0xac   : > { %5230 = vmatmul.mubr.bf16.vlgmr.msra.gmra.mrb[0].mxu0 %v425_v10  ;;  %5246 = vmatmul.mubr.bf16.vlgmr.msra.gmra.mrb[0].mxu1 %v441_v11  ;;  %v6236_v11 = vadd.s32 136, %v6186_v51 }
  0xad   : > { %5233 = vmatprep.mubr.bf16.mxu0 %v427_v12  ;;  %5249 = vmatprep.mubr.bf16.mxu1 %v443_v13  ;;  %v6239_v12 = vadd.s32 152, %v6186_v51 }
  0xae   : > { %5262 = vmatpush3.bf16.msra.mxu0 %v5575_v14  ;;  %4782 = vmatpush3.bf16.msra.mxu1 %v5581_v30 }
  0xaf   : > { %5263 = vmatprep.subr.bf16.mxu0 %v5576_v15  ;;  %4783 = vmatprep.subr.bf16.mxu1 %v5582_v32 }
  0xb2   : > { %5264 = vmatpush3.bf16.msra.mxu0 %v5576_v15  ;;  %4784 = vmatpush3.bf16.msra.mxu1 %v5584_v33 }
  0xb3   : > { %5265 = vmatprep.subr.bf16.mxu0 %v5577_v20  ;;  %4785 = vmatprep.subr.bf16.mxu1 %v5585_v35 }
  0xb4   : > { %5234 = vmatmul.mubr.bf16.gmra.mrb[4].mxu0 %v429_v16  ;;  %5250 = vmatmul.mubr.bf16.gmra.mrb[4].mxu1 %v445_v17  ;;  %v6244_v17 = vadd.s32 32, %v6186_v51 }
  0xb5   : > { %5237 = vmatprep.mubr.bf16.mxu0 %v431_v18  ;;  %5253 = vmatprep.mubr.bf16.mxu1 %v447_v19  ;;  %v6247_v18 = vadd.s32 168, %v6186_v51 }
  0xb6   : > { %5266 = vmatpush3.bf16.msra.mxu0 %v5577_v20  ;;  %4786 = vmatpush3.bf16.msra.mxu1 %v5587_v36 }
  0xb7   : > { %5267 = vmatprep.subr.bf16.mxu0 %v5578_v27  ;;  %4787 = vmatprep.subr.bf16.mxu1 %v5588_v38 }
  0xba   : > { %5268 = vmatpush3.bf16.msra.mxu0 %v5578_v27  ;;  %4788 = vmatpush3.bf16.msra.mxu1 %v5590_v39 }
  0xbb   : > { %5269 = vmatprep.subr.bf16.mxu0 %v5580_v28  ;;  %4789 = vmatprep.subr.bf16.mxu1 %v5591_v40 }
  0xbc   : > { %5238 = vmatmul.mubr.bf16.gmra.mrb[8].mxu0 %v433_v21  ;;  %5254 = vmatmul.mubr.bf16.gmra.mrb[8].mxu1 %v449_v22 }
  0xbd   : > { %5241 = vmatprep.mubr.bf16.mxu0 %v435_v23  ;;  %5257 = vmatprep.mubr.bf16.mxu1 %v451_v24  ;;  %v6252_v23 = vadd.s32 184, %v6186_v51  ;;  %v6255_v24 = vadd.s32 48, %v6186_v51 }
  0xbe   : > { %5270 = vmatpush3.bf16.msra.mxu0 %v5580_v28  ;;  %4790 = vmatpush3.bf16.msra.mxu1 %v5592_v41 }
  0xbf   : > { %5271 = vmatprep.subr.bf16.mxu0 %v5583_v31  ;;  %4791 = vmatprep.subr.bf16.mxu1 %v5593_v42  ;;  %8329 = vst [vmem:[#allocation17_spill] sm:$0xff] %v6252_v23  ;;  %8330 = vst [vmem:[#allocation18_spill] sm:$0xff] %v6255_v24 }
  0xc2   : > { %5272 = vmatpush3.bf16.msra.mxu0 %v5583_v31  ;;  %4792 = vmatpush3.bf16.msra.mxu1 %v5594_v43  ;;  %v8345_v43 = vand.u32 15, %v6195_v54 }
  0xc3   : > { %5273 = vmatprep.subr.bf16.mxu0 %v5586_v34  ;;  %4793 = vmatprep.subr.bf16.mxu1 %v5595_v44 }
  0xc4   : > { %5242 = vmatmul.mubr.bf16.gmra.mrb[12].mxu0 %v437_v25  ;;  %5258 = vmatmul.mubr.bf16.gmra.mrb[12].mxu1 %v453_v26  ;;  %vm6440_vm7 = vcmp.lt.s32.totalorder %v8345_v43, 15  ;;  %v8349_v43 = vand.u32 15, %v6198_v55 }
  0xc5   : > { %vm6542_vm12 = vmpackc.low %vm6440_vm7, %vm8234_vm4 }
  0xc6   : > { %5274 = vmatpush3.bf16.msra.mxu0 %v5586_v34  ;;  %4794 = vmatpush3.bf16.msra.mxu1 %v5596_v45  ;;  %v6265_v34 = vadd.s32 200, %v6186_v51  ;;  %vm6460_vm8 = vcmp.lt.s32.totalorder %v8349_v43, 15  ;;  %v5605_v43 = vld [vmem:[#allocation7 + $0x110] sm:$0xff]  }
  0xc7   : > { %5275 = vmatprep.subr.bf16.mxu0 %v5589_v37  ;;  %4795 = vmatprep.subr.bf16.mxu1 %v5597_v46  ;;  %vm6574_vm14 = vmpackc.low %vm6460_vm8, %vm8234_vm4 }
  0xc8   : > { %8331 = vst [vmem:[#allocation19_spill] sm:$0xff] %v6265_v34 }
  0xca   : > { %5276 = vmatpush3.bf16.msra.mxu0 %v5589_v37  ;;  %4796 = vmatpush3.bf16.msra.mxu1 %v5598_v47 }
  0xcb   : > { %5309 = vmatprep.subr.bf16.mxu1 %v6183_v48  ;;  %4917 = vmatprep.subr.bf16.mxu0 %v5600_v49 }
 0x17f   : > { %v5247_v7 = vpop.f32.mrb[0].mxu1  ;;  %v5231_v8 = vpop.f32.mrb[0].mxu0 }
 0x180   : > { %v801_v13 = vmul.f32 %v5247_v7, %v6218_v61  ;;  %v713_v14 = vpop.f32.mrb[1].mxu1  ;;  %v785_v15 = vmul.f32 %v5231_v8, %v6218_v61  ;;  %v649_v16 = vpop.f32.mrb[1].mxu0 }
 0x181   : > { %v799_v19 = vmul.f32 %v6218_v61, %v713_v14  ;;  %v5248_v20 = vpop.f32.mrb[2].mxu1  ;;  %v783_v21 = vmul.f32 %v6218_v61, %v649_v16  ;;  %v5232_v22 = vpop.f32.mrb[2].mxu0 }
 0x182   : > { %v840_v25 = vadd.f32 %v6227_v2, %v801_v13  ;;  %v802_v26 = vmul.f32 %v5248_v20, %v6218_v61  ;;  %v716_v27 = vpop.f32.mrb[3].mxu1  ;;  %v824_v28 = vadd.f32 %v6227_v2, %v785_v15  ;;  %v786_v29 = vmul.f32 %v5232_v22, %v6218_v61  ;;  %v652_v30 = vpop.f32.mrb[3].mxu0 }
 0x183   : > { %v838_v31 = vadd.f32 %v6227_v2, %v799_v19  ;;  %v822_v32 = vadd.f32 %v6227_v2, %v783_v21  ;;  %v784_v33 = vmul.f32 %v6218_v61, %v652_v30  ;;  %v800_v37 = vmul.f32 %v6218_v61, %v716_v27 }
 0x184   : > { %v6267_v35 = vmax.f32 %v840_v25, 0.0  ;;  %v841_v36 = vadd.f32 %v6227_v2, %v802_v26  ;;  %v6274_v39 = vmax.f32 %v824_v28, 0.0  ;;  %v825_v40 = vadd.f32 %v6227_v2, %v786_v29 }
 0x185   : > { %v823_v41 = vadd.f32 %v6227_v2, %v784_v33  ;;  %v6283_v47 = vmax.f32 %v838_v31, 0.0  ;;  %v6285_v49 = vmax.f32 %v822_v32, 0.0  ;;  %v6289_v13 = vadd.s32 64, %v6186_v51 }
 0x186   : > { %v6293_v16 = vmax.f32 %v841_v36, 0.0  ;;  %v839_v19 = vadd.f32 %v6227_v2, %v800_v37  ;;  %v1434_v22 = vrot.slane %v6274_v39, 1  ;;  %v6298_v26 = vmax.f32 %v825_v40, 0.0 }
 0x187   : > { %v5235_v50 = vpop.f32.mrb[4].mxu0  ;;  %v5251_v7 = vpop.f32.mrb[4].mxu1  ;;  %8332 = vst [vmem:[#allocation20_spill] sm:$0xff] %v6289_v13  ;;  %v8199_v25 = vrot.slane %v6285_v49, 7  ;;  %v6300_v27 = vmax.f32 %v823_v41, 0.0  ;;  %v8202_v38 = vrot.slane %v6285_v49, 1 }
 0x188   : > { %v665_v20 = vpop.f32.mrb[5].mxu0  ;;  %v729_v21 = vpop.f32.mrb[5].mxu1  ;;  %v789_v30 = vmul.f32 %v5235_v50, %v6218_v61  ;;  %v805_v31 = vmul.f32 %v5251_v7, %v6218_v61  ;;  %v1435_v40 = vrot.slane %v6298_v26, 1  ;;  %v6311_v46 = vmax.f32 %v839_v19, 0.0  ;;  %v5603_v13 = vld [vmem:[#allocation7 + $0x108] sm:$0xff]  }
 0x189   : > { %v5252_v28 = vpop.f32.mrb[6].mxu1  ;;  %v5236_v29 = vpop.f32.mrb[6].mxu0  ;;  %v787_v32 = vmul.f32 %v6218_v61, %v665_v20  ;;  %v803_v33 = vmul.f32 %v6218_v61, %v729_v21  ;;  %v8198_v41 = vrot.slane %v6300_v27, 7 }
 0x18a   : > { %v732_v36 = vpop.f32.mrb[7].mxu1  ;;  %v668_v37 = vpop.f32.mrb[7].mxu0  ;;  %v828_v50 = vadd.f32 %v6227_v2, %v789_v30  ;;  %v1493_v20 = vsel %vm1464_vm0, %v1434_v22, %v1435_v40  ;;  %v844_v19 = vadd.f32 %v6227_v2, %v805_v31  ;;  %v806_v8 = vmul.f32 %v5252_v28, %v6218_v61 }
 0x18b   : > { %v826_v7 = vadd.f32 %v6227_v2, %v787_v32  ;;  %v6325_v21 = vsel %vm8246_vm1, %v8199_v25, %v8198_v41  ;;  %v842_v44 = vadd.f32 %v6227_v2, %v803_v33  ;;  %v804_v42 = vmul.f32 %v6218_v61, %v732_v36 }
 0x18c   : > { %v790_v15 = vmul.f32 %v5236_v29, %v6218_v61  ;;  %v788_v41 = vmul.f32 %v6218_v61, %v668_v37  ;;  %v845_v33 = vadd.f32 %v6227_v2, %v806_v8  ;;  %v1433_v37 = vrot.slane %v6300_v27, 1 }
 0x18d   : > { %v6330_v32 = vmax.f32 %v826_v7, 0.0  ;;  %v6340_v7 = vmax.f32 %v828_v50, 0.0  ;;  %v6351_v14 = vmax.f32 %v844_v19, 0.0  ;;  %v6361_v30 = vmax.f32 %v842_v44, 0.0 }
 0x18e   : > { %v843_v29 = vadd.f32 %v6227_v2, %v804_v42  ;;  %v829_v25 = vadd.f32 %v6227_v2, %v790_v15  ;;  %v827_v63 = vadd.f32 %v6227_v2, %v788_v41  ;;  %v6375_v42 = vmax.f32 %v845_v33, 0.0 }
 0x18f   : > { %v5239_v45 = vpop.f32.mrb[8].mxu0  ;;  %v5255_v31 = vpop.f32.mrb[8].mxu1  ;;  %v8200_v28 = vrot.slane %v6330_v32, 1  ;;  %v8374_v34 = vrot.slane %v6340_v7, 1 }
 0x190   : > { %v681_v9 = vpop.f32.mrb[9].mxu0  ;;  %v745_v36 = vpop.f32.mrb[9].mxu1  ;;  %v793_v6 = vmul.f32 %v5239_v45, %v6218_v61  ;;  %v809_v4 = vmul.f32 %v5255_v31, %v6218_v61 }
 0x191   : > { %v5256_v50 = vpop.f32.mrb[10].mxu1  ;;  %v5240_v52 = vpop.f32.mrb[10].mxu0  ;;  %v1492_v53 = vsel %vm1464_vm0, %v1435_v40, %v8200_v28  ;;  %v791_v15 = vmul.f32 %v6218_v61, %v681_v9  ;;  %v6383_v28 = vmax.f32 %v843_v29, 0.0  ;;  %v807_v31 = vmul.f32 %v6218_v61, %v745_v36 }
 0x192   : > { %v748_v19 = vpop.f32.mrb[11].mxu1  ;;  %v684_v10 = vpop.f32.mrb[11].mxu0  ;;  %v6373_v62 = vpack.c.bf16 %v1492_v53, %v1493_v20  ;;  %v832_v41 = vadd.f32 %v6227_v2, %v793_v6  ;;  %v810_v20 = vmul.f32 %v5256_v50, %v6218_v61  ;;  %v6388_v53 = vmax.f32 %v829_v25, 0.0 }
 0x193   : > { %v6390_v9 = vmax.f32 %v827_v63, 0.0  ;;  %v848_v5 = vadd.f32 %v6227_v2, %v809_v4  ;;  %v830_v36 = vadd.f32 %v6227_v2, %v791_v15  ;;  %v846_v33 = vadd.f32 %v6227_v2, %v807_v31 }
 0x194   : > { %8337 = vst [vmem:[#allocation21_spill] sm:$0xff] %v6373_v62  ;;  %v6395_v29 = vmax.f32 %v832_v41, 0.0  ;;  %v808_v25 = vmul.f32 %v6218_v61, %v748_v19  ;;  %v1494_v4 = vsel %vm1464_vm0, %v1433_v37, %v1434_v22  ;;  %v1495_v63 = vsel %vm1464_vm0, %v8202_v38, %v1433_v37 }
 0x195   : > { %v849_v19 = vadd.f32 %v6227_v2, %v810_v20  ;;  %v6417_v37 = vmax.f32 %v848_v5, 0.0  ;;  %v8338_v15 = vmov 0  ;;  %v6427_v38 = vpack.c.bf16 %v1494_v4, %v1495_v63 }
 0x196   : > { %v8339_v15 = vsel %vm6422_vm5, 4294967295, %v8338_v15  ;;  %v847_v20 = vadd.f32 %v6227_v2, %v808_v25  ;;  %v8342_v31 = vmov 0  ;;  %v794_v5 = vmul.f32 %v5240_v52, %v6218_v61  ;;  %v5602_v25 = vld [vmem:[#allocation7 + $0xc0] sm:$0xff]  }
 0x197   : > { %v5243_v3 = vpop.f32.mrb[12].mxu0  ;;  %v5259_v40 = vpop.f32.mrb[12].mxu1  ;;  %8340 = vst [vmem:[#allocation22_spill] sm:$0xff] %v8339_v15  ;;  %8341 = vst [vmem:[#allocation23_spill] sm:$0xff] %v6427_v38  ;;  %v8343_v31 = vsel %vm6432_vm6, 4294967295, %v8342_v31  ;;  %v792_v45 = vmul.f32 %v6218_v61, %v684_v10  ;;  %v6446_v8 = vmax.f32 %v830_v36, 0.0  ;;  %5277 = vmatprep.mubr.msk.bf16.mxu0 %vm6422_vm5, %v6427_v38 }
 0x198   : > { %v697_v44 = vpop.f32.mrb[13].mxu0  ;;  %v761_v50 = vpop.f32.mrb[13].mxu1  ;;  %8344 = vst [vmem:[#allocation24_spill] sm:$0xff] %v8343_v31  ;;  %v6448_v22 = vmax.f32 %v846_v33, 0.0  ;;  %v6450_v23 = vmax.f32 %v849_v19, 0.0  ;;  %v833_v54 = vadd.f32 %v6227_v2, %v794_v5  ;;  %v797_v52 = vmul.f32 %v5243_v3, %v6218_v61  ;;  %5278 = vmatmul.mubr.msk.bf16.vlgmr.msra.gmra.mrb[16].mxu0 %vm6432_vm6, %v6373_v62 }
 0x199   : > { %v5244_v41 = vpop.f32.mrb[14].mxu0  ;;  %v5260_v6 = vpop.f32.mrb[14].mxu1  ;;  %v831_v10 = vadd.f32 %v6227_v2, %v792_v45  ;;  %v6464_v33 = vmax.f32 %v847_v20, 0.0  ;;  %v813_v19 = vmul.f32 %v5259_v40, %v6218_v61  ;;  %v795_v5 = vmul.f32 %v6218_v61, %v697_v44  ;;  %4918 = vmatpush3.bf16.msra.mxu0 %v5602_v25  ;;  %v5604_v20 = vld [vmem:[#allocation7 + $0xc8] sm:$0xff]  }
 0x19a   : > { %v764_v1 = vpop.f32.mrb[15].mxu1  ;;  %v6412_v0 = vpop.f32.mrb[15].mxu0  ;;  %8348 = vst [vmem:[#allocation25_spill] sm:$0xff] %v6450_v23  ;;  %v811_v45 = vmul.f32 %v6218_v61, %v761_v50  ;;  %v798_v4 = vmul.f32 %v5244_v41, %v6218_v61  ;;  %v6476_v63 = vmax.f32 %v833_v54, 0.0  ;;  %v836_v31 = vadd.f32 %v6227_v2, %v797_v52  ;;  %4919 = vmatprep.subr.bf16.mxu0 %v5603_v13 }
 0x19b   : > { %v852_v40 = vadd.f32 %v6227_v2, %v813_v19  ;;  %v834_v44 = vadd.f32 %v6227_v2, %v795_v5  ;;  %v8353_v50 = vand.u32 15, %v6201_v56  ;;  %v1440_v41 = vrot.slane %v6446_v8, 1  ;;  %v5606_v56 = vld [vmem:[#allocation7 + $0xd0] sm:$0xff]  }
 0x19c   : > { %8352 = vst [vmem:[#allocation26_spill] sm:$0xff] %v6476_v63  ;;  %v6489_v54 = vmax.f32 %v831_v10, 0.0  ;;  %v850_v52 = vadd.f32 %v6227_v2, %v811_v45  ;;  %v8356_v19 = vand.u32 15, %v6186_v51  ;;  %v837_v25 = vadd.f32 %v6227_v2, %v798_v4 }
 0x19d   : > { %vm6483_vm9 = vcmp.lt.s32.totalorder %v8353_v50, 15  ;;  %v6501_v55 = vmax.f32 %v834_v44, 0.0  ;;  %v814_v10 = vmul.f32 %v5260_v6, %v6218_v61  ;;  %v812_v45 = vmul.f32 %v6218_v61, %v764_v1  ;;  %4920 = vmatpush3.bf16.msra.mxu0 %v5604_v20  ;;  %v5607_v6 = vld [vmem:[#allocation7 + $0x118] sm:$0xff]  }
 0x19e   : > { %vm6494_vm10 = vcmp.ge.s32.totalorder %v8356_v19, 1  ;;  %v8359_v62 = vrot.slane %v6340_v7, 1  ;;  %v8360_v19 = vrot.slane %v6390_v9, 1  ;;  %v1443_v44 = vrot.slane %v6476_v63, 1  ;;  %4921 = vmatprep.subr.bf16.mxu0 %v5605_v43  ;;  %vm6614_vm2 = vmpackc.low %vm6483_vm9, %vm8234_vm4 }
 0x19f   : > { %v6514_v13 = vmax.f32 %v836_v31, 0.0  ;;  %v6516_v4 = vmax.f32 %v852_v40, 0.0  ;;  %v1441_v38 = vrot.slane %v6489_v54, 1  ;;  %v1444_v24 = vrot.slane %v6501_v55, 1  ;;  %vm6637_vm3 = vmpackc.low %vm8234_vm4, %vm6494_vm10 }
 0x1a0   : > { %v1490_v15 = vsel %vm1464_vm0, %v8360_v19, %v8359_v62  ;;  %v6521_v23 = vmax.f32 %v850_v52, 0.0  ;;  %v8361_v62 = vand.u32 15, %v6204_v57  ;;  %v6529_v31 = vmax.f32 %v837_v25, 0.0 }
 0x1a1   : > { %v853_v40 = vadd.f32 %v6227_v2, %v814_v10  ;;  %v851_v43 = vadd.f32 %v6227_v2, %v812_v45  ;;  %v8364_v50 = vrot.slane %v6330_v32, 1  ;;  %v8365_v57 = vmov 0  ;;  %4922 = vmatpush3.bf16.msra.mxu0 %v5606_v56 }
 0x1a2   : > { %vm6525_vm11 = vcmp.lt.s32.totalorder %v8361_v62, 15  ;;  %v8366_v57 = vsel %vm6542_vm12, 4294967295, %v8365_v57  ;;  %v8368_v25 = vand.u32 15, %v6207_v58  ;;  %v8372_v62 = vrot.slane %v6388_v53, 1  ;;  %4923 = vmatprep.subr.bf16.mxu0 %v5607_v6 }
 0x1a3   : > { %v1491_v52 = vsel %vm1464_vm0, %v8364_v50, %v8360_v19  ;;  %8367 = vst [vmem:[#allocation27_spill] sm:$0xff] %v8366_v57  ;;  %v796_v58 = vmul.f32 %v6218_v61, %v6412_v0  ;;  %v6569_v63 = vmax.f32 %v853_v40, 0.0  ;;  %v6586_v56 = vpack.c.bf16 %v6300_v27, %v6285_v49  ;;  %vm6704_vm9 = vmpackc.low %vm6525_vm11, %vm8234_vm4 }
 0x1a4   : > { %vm6548_vm13 = vcmp.lt.s32.totalorder %v8368_v25, 15  ;;  %v6552_v45 = vpack.c.bf16 %v1490_v15, %v1491_v52  ;;  %v1488_v50 = vsel %vm1464_vm0, %v8372_v62, %v1440_v41  ;;  %v8373_v19 = vmov %v8372_v62  ;;  %v5609_v15 = vld [vmem:[#allocation7 + $0x120] sm:$0xff]  }
 0x1a5   : > { %v1489_v1 = vsel %vm1464_vm0, %v8374_v34, %v8373_v19  ;;  %v1446_v25 = vrot.slane %v6514_v13, 1  ;;  %v1447_v52 = vrot.slane %v6529_v31, 1  ;;  %v8375_v62 = vmov 0  ;;  %v5608_v19 = vld [vmem:[#allocation7 + $0xd8] sm:$0xff]   ;;  %1833 = vmatprep.mubr.bf16.mxu1 %v6586_v56  ;;  %vm6725_vm10 = vmpackc.low %vm6548_vm13, %vm8234_vm4 }
 0x1a6   : > { %8371 = vst [vmem:[#allocation28_spill] sm:$0xff] %v6552_v45  ;;  %v8376_v62 = vsel %vm6574_vm14, 4294967295, %v8375_v62  ;;  %5281 = vmatprep.mubr.msk.bf16.mxu0 %vm6542_vm12, %v6552_v45  ;;  %v6581_v61 = vpack.c.bf16 %v1488_v50, %v1489_v1  ;;  %v835_v0 = vadd.f32 %v6227_v2, %v796_v58  ;;  %v8379_v36 = vrot.slane %v6395_v29, 1  ;;  %4924 = vmatpush3.bf16.msra.mxu0 %v5608_v19 }
 0x1a7   : > { %8377 = vst [vmem:[#allocation29_spill] sm:$0xff] %v8376_v62  ;;  %v8380_v6 = vand.u32 15, %v6213_v60  ;;  %v8219_v50 = vrot.slane %v6569_v63, 7  ;;  %v6601_v58 = vmax.f32 %v851_v43, 0.0  ;;  %v1487_v60 = vsel %vm1464_vm0, %v1440_v41, %v1441_v38  ;;  %4925 = vmatprep.subr.bf16.mxu0 %v5609_v15 }
 0x1a8   : > { %8378 = vst [vmem:[#allocation30_spill] sm:$0xff] %v6581_v61  ;;  %v1486_v40 = vsel %vm1464_vm0, %v1441_v38, %v8379_v36  ;;  %5282 = vmatmul.mubr.msk.bf16.gmra.mrb[20].mxu0 %vm6574_vm14, %v6581_v61  ;;  %v6606_v36 = vmax.f32 %v835_v0, 0.0  ;;  %v1484_v43 = vsel %vm1464_vm0, %v1443_v44, %v1444_v24  ;;  %v8386_v1 = vrot.slane %v6395_v29, 1 }
 0x1a9   : > { %vm6594_vm15 = vcmp.ge.s32.totalorder %v8380_v6, 1  ;;  %v8383_v6 = vmov 0  ;;  %v8387_v2 = vrot.slane %v6285_v49, 7  ;;  %v6630_v3 = vpack.c.bf16 %v1486_v40, %v1487_v60 }
 0x1aa   : > { %v8384_v6 = vsel %vm6614_vm2, 4294967295, %v8383_v6  ;;  %v1485_v0 = vsel %vm1464_vm0, %v8386_v1, %v1443_v44  ;;  %v8390_v62 = vmov 0  ;;  %v6643_v44 = vpack.c.bf16 %v6298_v26, %v6274_v39  ;;  %vm6799_vm13 = vmpackc.low %vm8234_vm4, %vm6594_vm15 }
 0x1ab   : > { %8385 = vst [vmem:[#allocation31_spill] sm:$0xff] %v8384_v6  ;;  %v1367_v38 = vsel %vm8246_vm1, %v8219_v50, %v8387_v2  ;;  %8388 = vst [vmem:[#allocation32_spill] sm:$0xff] %v6630_v3  ;;  %v6632_v41 = vpack.c.bf16 %v1484_v43, %v1485_v0  ;;  %v8391_v62 = vsel %vm6637_vm3, 4294967295, %v8390_v62  ;;  %v1445_v40 = vrot.slane %v6606_v36, 1  ;;  %v5601_v50 = vld [vmem:[#allocation7 + $0x148] sm:$0xff]   ;;  %5285 = vmatprep.mubr.msk.bf16.mxu0 %vm6614_vm2, %v6630_v3 }
 0x1ac   : > { %8392 = vst [vmem:[#allocation34_spill] sm:$0xff] %v8391_v62  ;;  %8393 = vst [vmem:[#allocation35_spill] sm:$0xff] %v6643_v44  ;;  %v6647_v2 = vpack.c.bf16 %v6325_v21, %v1367_v38  ;;  %v8394_v60 = vrot.slane %v6283_v47, 1  ;;  %v8395_v43 = vand.u32 15, %v6210_v59  ;;  %v1481_v21 = vsel %vm1464_vm0, %v1446_v25, %v1447_v52 }
 0x1ad   : > { %8389 = vst [vmem:[#allocation33_spill] sm:$0xff] %v6632_v41  ;;  %v8398_v19 = vrot.slane %v6298_v26, 7  ;;  %v8399_v38 = vrot.slane %v6274_v39, 7  ;;  %v8402_v1 = vrot.slane %v6267_v35, 1  ;;  %v8403_v6 = vrot.slane %v6311_v46, 1 }
 0x1ae   : > { %v1480_v5 = vsel %vm1464_vm0, %v1447_v52, %v8394_v60  ;;  %vm6656_vm7 = vcmp.lt.s32.totalorder %v8395_v43, 15  ;;  %v8401_v43 = vrot.slane %v6300_v27, 7  ;;  %v8404_v3 = vand.u32 15, %v6236_v11  ;;  %4245 = vmatmul.mubr.msk.bf16.vlgmr.msra.gmra.mrb[16].mxu1 %vm6637_vm3, %v6647_v2 }
 0x1af   : > { %v1364_v59 = vsel %vm8246_vm1, %v8399_v38, %v8398_v19  ;;  %v8400_v60 = vmov %v8399_v38  ;;  %v1478_v52 = vsel %vm1464_vm0, %v8403_v6, %v8402_v1  ;;  %v5611_v19 = vld [vmem:[#allocation7 + $0xe0] sm:$0xff]   ;;  %v1482_v39 = vsel %vm1464_vm0, %v1445_v40, %v1446_v25  ;;  %5310 = vmatpush3.bf16.msra.mxu1 %v6183_v48  ;;  %1841 = vmatprep.mubr.bf16.mxu1 %v6643_v44 }
 0x1b0   : > { %v1365_v15 = vsel %vm8246_vm1, %v8401_v43, %v8400_v60  ;;  %vm6685_vm8 = vcmp.lt.s32.totalorder %v8404_v3, 15  ;;  %v1483_v27 = vsel %vm1464_vm0, %v1444_v24, %v1445_v40  ;;  %v6696_v38 = vpack.c.bf16 %v1480_v5, %v1481_v21  ;;  %5311 = vmatprep.subr.bf16.mxu1 %v5601_v50  ;;  %4926 = vmatpush3.bf16.msra.mxu0 %v5611_v19 }
 0x1b1   : > { %v6698_v6 = vpack.c.bf16 %v1364_v59, %v1365_v15  ;;  %v1461_v11 = vrot.slane %v6601_v58, 1  ;;  %v8408_v3 = vmov 0  ;;  %v6710_v25 = vpack.c.bf16 %v1482_v39, %v1483_v27  ;;  %5286 = vmatmul.mubr.msk.bf16.gmra.mrb[24].mxu0 %vm6704_vm9, %v6632_v41 }
 0x1b2   : > { %v8409_v3 = vsel %vm6704_vm9, 4294967295, %v8408_v3  ;;  %v8412_v24 = vrot.slane %v6311_v46, 1  ;;  %v8413_v1 = vrot.slane %v6283_v47, 1  ;;  %v6720_v20 = vpack.c.bf16 %v6390_v9, %v6330_v32 }
 0x1b3   : > { %8407 = vst [vmem:[#allocation36_spill] sm:$0xff] %v6698_v6  ;;  %8410 = vst [vmem:[#allocation37_spill] sm:$0xff] %v8409_v3  ;;  %v8415_v48 = vmov 0  ;;  %v8418_v21 = vrot.slane %v6361_v30, 1  ;;  %v8419_v59 = vrot.slane %v6293_v16, 1  ;;  %v8421_v15 = vrot.slane %v6267_v35, 1  ;;  %5289 = vmatprep.mubr.msk.bf16.mxu0 %vm6725_vm10, %v6710_v25  ;;  %5312 = vmatpush3.bf16.msra.mxu1 %v5601_v50 }
 0x1b4   : > { %8411 = vst [vmem:[#allocation38_spill] sm:$0xff] %v6710_v25  ;;  %v1479_v40 = vsel %vm1464_vm0, %v8413_v1, %v8412_v24  ;;  %8414 = vst [vmem:[#allocation39_spill] sm:$0xff] %v6720_v20  ;;  %v8416_v48 = vsel %vm6725_vm10, 4294967295, %v8415_v48  ;;  %v8422_v39 = vrot.slane %v6390_v9, 7  ;;  %v8424_v24 = vand.u32 15, %v6244_v17 }
 0x1b5   : > { %8417 = vst [vmem:[#allocation40_spill] sm:$0xff] %v8416_v48  ;;  %v6729_v5 = vpack.c.bf16 %v1478_v52, %v1479_v40  ;;  %v1476_v60 = vsel %vm1464_vm0, %v8419_v59, %v8418_v21  ;;  %v8420_v43 = vmov %v8419_v59  ;;  %v8423_v52 = vrot.slane %v6330_v32, 7  ;;  %v5610_v40 = vld [vmem:[#allocation7 + $0x150] sm:$0xff]   ;;  %v5612_v32 = vld [vmem:[#allocation7 + $0x128] sm:$0xff]  }
 0x1b6   : > { %v1477_v10 = vsel %vm1464_vm0, %v8421_v15, %v8420_v43  ;;  %vm6751_vm11 = vcmp.ge.s32.totalorder %v8424_v24, 1  ;;  %v8428_v43 = vrot.slane %v6298_v26, 7  ;;  %v8429_v57 = vrot.slane %v6351_v14, 1  ;;  %5313 = vmatprep.subr.bf16.mxu1 %v5610_v40  ;;  %4927 = vmatprep.subr.bf16.mxu0 %v5612_v32 }
 0x1b7   : > { %v1362_v27 = vsel %vm8246_vm1, %v8423_v52, %v8422_v39  ;;  %v6755_v21 = vpack.c.bf16 %v1476_v60, %v1477_v10  ;;  %v8427_v59 = vmov %v8423_v52  ;;  %v8430_v39 = vrot.slane %v6383_v28, 1  ;;  %4248 = vmatmul.mubr.msk.bf16.gmra.mrb[20].mxu1 %vm6799_vm13, %v6698_v6  ;;  %v5619_v6 = vld [vmem:[#allocation7 + $0x160] sm:$0xff]  }
 0x1b8   : > { %v1363_v15 = vsel %vm8246_vm1, %v8428_v43, %v8427_v59  ;;  %v8432_v24 = vrot.slane %v6361_v30, 1  ;;  %v8434_v59 = vrot.slane %v6448_v22, 1  ;;  %v8435_v43 = vrot.slane %v6375_v42, 1  ;;  %1849 = vmatprep.mubr.bf16.mxu1 %v6720_v20  ;;  %5314 = vmatpush3.bf16.msra.mxu1 %v5610_v40 }
 0x1b9   : > { %v1474_v17 = vsel %vm1464_vm0, %v8430_v39, %v8429_v57  ;;  %v8431_v52 = vmov %v8430_v39  ;;  %v6778_v26 = vpack.c.bf16 %v1362_v27, %v1363_v15  ;;  %v6784_v57 = vpack.c.bf16 %v6388_v53, %v6340_v7 }
 0x1ba   : > { %v1475_v60 = vsel %vm1464_vm0, %v8432_v24, %v8431_v52  ;;  %v1472_v19 = vsel %vm1464_vm0, %v8435_v43, %v8434_v59  ;;  %v1316_v39 = vrot.slane %v6606_v36, 7  ;;  %v8436_v27 = vmov 0 }
 0x1bb   : > { %v6780_v10 = vpack.c.bf16 %v1474_v17, %v1475_v60  ;;  %8433 = vst [vmem:[#allocation41_spill] sm:$0xff] %v6784_v57  ;;  %v8437_v27 = vsel %vm6799_vm13, 4294967295, %v8436_v27  ;;  %v8439_v15 = vmov %v8435_v43  ;;  %v8440_v17 = vrot.slane %v6351_v14, 1 }
 0x1bc   : > { %8438 = vst [vmem:[#allocation42_spill] sm:$0xff] %v8437_v27  ;;  %v8441_v24 = vrot.slane %v6388_v53, 7  ;;  %v8442_v60 = vrot.slane %v6340_v7, 7  ;;  %v8444_v43 = vrot.slane %v6390_v9, 7  ;;  %v8445_v48 = vand.u32 15, %v6239_v12 }
 0x1bd   : > { %v1473_v52 = vsel %vm1464_vm0, %v8440_v17, %v8439_v15  ;;  %v8448_v3 = vrot.slane %v6417_v37, 1  ;;  %v8460_v41 = vrot.slane %v6489_v54, 7  ;;  %vm8465_vm10 = vmmov 1  }
 0x1be   : > { %v1360_v34 = vsel %vm8246_vm1, %v8442_v60, %v8441_v24  ;;  %v8443_v59 = vmov %v8442_v60  ;;  %vm6823_vm15 = vcmp.lt.s32.totalorder %v8445_v48, 15  ;;  %v6827_v15 = vpack.c.bf16 %v1472_v19, %v1473_v52  ;;  %v5613_v48 = vld [vmem:[#allocation7 + $0xe8] sm:$0xff]   ;;  %vm6892_vm9 = vmpackc.low %vm6656_vm7, %vm8465_vm10  ;;  %v5621_v52 = vld [vmem:[#allocation7 + $0x170] sm:$0xff]  }
 0x1bf   : > { %v1361_v50 = vsel %vm8246_vm1, %v8444_v43, %v8443_v59  ;;  %v8449_v24 = vrot.slane %v6464_v33, 1  ;;  %v8451_v60 = vrot.slane %v6448_v22, 1  ;;  %v8452_v19 = vand.u32 15, %v6247_v18  ;;  %v8456_v43 = vld [vmem:[#allocation25_spill] sm:$0xff]  ;;  %vm6910_vm7 = vmpackc.low %vm6685_vm8, %vm8465_vm10  ;;  %4928 = vmatpush3.bf16.msra.mxu0 %v5613_v48 }
 0x1c0   : > { %v6829_v17 = vpack.c.bf16 %v1360_v34, %v1361_v50  ;;  %v8455_v59 = vrot.slane %v6521_v23, 1  ;;  %v8457_v50 = vrot.slane %v8456_v43, 1  ;;  %v8459_v18 = vrot.slane %v6417_v37, 1  ;;  %5290 = vmatmul.mubr.msk.bf16.gmra.mrb[28].mxu0 %vm6892_vm9, %v6696_v38 }
 0x1c1   : > { %v1470_v7 = vsel %vm1464_vm0, %v8449_v24, %v8448_v3  ;;  %v8450_v9 = vmov %v8449_v24  ;;  %vm6845_vm4 = vcmp.lt.s32.totalorder %v8452_v19, 15  ;;  %v6853_v3 = vpack.c.bf16 %v6489_v54, %v6446_v8  ;;  %5293 = vmatprep.mubr.msk.bf16.mxu0 %vm6910_vm7, %v6729_v5 }
 0x1c2   : > { %v1471_v12 = vsel %vm1464_vm0, %v8451_v60, %v8450_v9  ;;  %v1468_v24 = vsel %vm1464_vm0, %v8457_v50, %v8455_v59  ;;  %v8458_v9 = vmov %v8457_v50  ;;  %v8461_v59 = vrot.slane %v6446_v8, 7 }
 0x1c3   : > { %v6849_v34 = vpack.c.bf16 %v1470_v7, %v1471_v12  ;;  %v1469_v60 = vsel %vm1464_vm0, %v8459_v18, %v8458_v9  ;;  %v5614_v7 = vld [vmem:[#allocation7 + $0x130] sm:$0xff]   ;;  %v5618_v12 = vld [vmem:[#allocation7 + $0x158] sm:$0xff]   ;;  %v8463_v9 = vrot.slane %v6388_v53, 7  ;;  %v8464_v18 = vrot.slane %v6516_v4, 1 }
 0x1c4   : > { %v6870_v19 = vpack.c.bf16 %v1468_v24, %v1469_v60  ;;  %v1358_v50 = vsel %vm8246_vm1, %v8461_v59, %v8460_v41  ;;  %v8462_v45 = vmov %v8461_v59  ;;  %v1317_v60 = vrot.slane %v6514_v13, 7  ;;  %v8469_v41 = vld [vmem:[#allocation26_spill] sm:$0xff]  ;;  %4929 = vmatprep.subr.bf16.mxu0 %v5614_v7  ;;  %5315 = vmatprep.subr.bf16.mxu1 %v5618_v12 }
 0x1c5   : > { %v1359_v32 = vsel %vm8246_vm1, %v8463_v9, %v8462_v45  ;;  %v1466_v24 = vsel %vm1464_vm0, %v1461_v11, %v8464_v18  ;;  %v8466_v27 = vmov 0  ;;  %v8468_v8 = vrot.slane %v6521_v23, 1  ;;  %v8472_v9 = vld [vmem:[#allocation18_spill] sm:$0xff]  ;;  %5316 = vmatpush3.bf16.msra.mxu1 %v5618_v12 }
 0x1c6   : > { %v8467_v27 = vsel %vm6892_vm9, 4294967295, %v8466_v27  ;;  %v6897_v53 = vpack.c.bf16 %v1358_v50, %v1359_v32  ;;  %v6905_v59 = vpack.c.bf16 %v8469_v41, %v6395_v29  ;;  %v8470_v0 = vmov 0  ;;  %5317 = vmatprep.subr.bf16.mxu1 %v5619_v6 }
 0x1c7   : > { %v1467_v45 = vsel %vm1464_vm0, %v8468_v8, %v1461_v11  ;;  %v8471_v0 = vsel %vm6910_vm7, 4294967295, %v8470_v0  ;;  %v8473_v50 = vand.u32 15, %v8472_v9  ;;  %v8476_v11 = vrot.slane %v6569_v63, 1 }
 0x1c8   : > { %v6920_v18 = vpack.c.bf16 %v1466_v24, %v1467_v45  ;;  %v8477_v40 = vrot.slane %v6516_v4, 1  ;;  %v8478_v8 = vrot.slane %v6285_v49, 1  ;;  %v8481_v24 = vrot.slane %v6395_v29, 7  ;;  %v5615_v45 = vld [vmem:[#allocation7 + $0xf0] sm:$0xff]  }
 0x1c9   : > { %vm6916_vm1 = vcmp.ge.s32.totalorder %v8473_v50, 1  ;;  %v8479_v20 = vmov %v8476_v11  ;;  %v8480_v50 = vrot.slane %v8469_v41, 7  ;;  %vm8482_vm8 = vcmp.lt.s32.totalorder %v6186_v51, 1  ;;  %4930 = vmatpush3.bf16.msra.mxu0 %v5615_v45  ;;  %5318 = vmatpush3.bf16.msra.mxu1 %v5619_v6 }
 0x1ca   : > { %v1465_v61 = vsel %vm1464_vm0, %v8477_v40, %v8476_v11  ;;  %v1496_v9 = vsel %vm1464_vm0, %v8479_v20, %v8478_v8  ;;  %v1318_v44 = vrot.slane %v6529_v31, 7  ;;  %v8483_v49 = vmov %v8481_v24  ;;  %vm8485_vm0 = vmmov %vm8482_vm8  ;;  %v5616_v8 = vld [vmem:[#allocation7 + $0x138] sm:$0xff]  }
 0x1cb   : > { %v1356_v48 = vsel %vm8482_vm8, %v8481_v24, %v8480_v50  ;;  %v6941_v62 = vpack.c.bf16 %v1496_v9, %v1465_v61  ;;  %v8484_v11 = vrot.slane %v6489_v54, 7  ;;  %v6951_v40 = vpack.c.bf16 %v6606_v36, %v6501_v55  ;;  %vm8489_vm8 = vmmov %vm8485_vm0  ;;  %4931 = vmatprep.subr.bf16.mxu0 %v5616_v8 }
 0x1cc   : > { %v8488_v7 = vrot.slane %v6501_v55, 7  ;;  %v8491_v9 = vmov %v8480_v50  ;;  %v6970_v50 = vpack.c.bf16 %v6529_v31, %v6514_v13  ;;  %v8259_v24 = vrot.slane %v8456_v43, 7  ;;  %vm8496_vm9 = vmmov %vm8485_vm0 }
 0x1cd   : > { %v1357_v20 = vsel %vm8485_vm0, %v8484_v11, %v8483_v49  ;;  %8486 = vst [vmem:[#allocation25_spill] sm:$0xff] %v6951_v40  ;;  %v8493_v55 = vmov 0  ;;  %v1352_v13 = vsel %vm8485_vm0, %v1317_v60, %v1318_v44  ;;  %v1353_v31 = vsel %vm8496_vm9, %v1316_v39, %v1317_v60  ;;  %v5617_v49 = vld [vmem:[#allocation7 + $0xf8] sm:$0xff]   ;;  %vm8503_vm9 = vmmov %vm8485_vm0 }
 0x1ce   : > { %v6956_v61 = vpack.c.bf16 %v1356_v48, %v1357_v20  ;;  %v1354_v29 = vsel %vm8489_vm8, %v8488_v7, %v1316_v39  ;;  %v8490_v54 = vmov %v8488_v7  ;;  %8492 = vst [vmem:[#allocation18_spill] sm:$0xff] %v6970_v50  ;;  %vm6979_vm8 = vmpackc.low %vm8465_vm10, %vm6751_vm11  ;;  %v1328_v48 = vrot.slane %v6464_v33, 7  ;;  %4932 = vmatpush3.bf16.msra.mxu0 %v5617_v49 }
 0x1cf   : > { %v1355_v36 = vsel %vm8485_vm0, %v8491_v9, %v8490_v54  ;;  %v8494_v55 = vsel %vm6979_vm8, 4294967295, %v8493_v55  ;;  %v6990_v11 = vpack.c.bf16 %v1352_v13, %v1353_v31  ;;  %v6994_v1 = vpack.c.bf16 %v6311_v46, %v6283_v47  ;;  %vm8501_vm11 = vmmov %vm8485_vm0  ;;  %v7022_v31 = vld [vmem:[#allocation7 + $0x200] sm:$0xff]   ;;  %4251 = vmatmul.mubr.msk.bf16.gmra.mrb[24].mxu1 %vm6979_vm8, %v6778_v26 }
 0x1d0   : > { %8487 = vst [vmem:[#allocation26_spill] sm:$0xff] %v6956_v61  ;;  %v6983_v41 = vpack.c.bf16 %v1354_v29, %v1355_v36  ;;  %v8499_v20 = vrot.slane %v6311_v46, 7  ;;  %v8500_v12 = vrot.slane %v6283_v47, 7  ;;  %v5620_v29 = vld [vmem:[#allocation7 + $0x168] sm:$0xff]   ;;  %v7008_v45 = vpack.c.bf16 %v6293_v16, %v6267_v35  ;;  %1857 = vmatprep.mubr.bf16.mxu1 %v6784_v57  ;;  %5357 = vmatprep.subr.bf16.mxu0 %v7022_v31 }
 0x1d1   : > { %8497 = vst [vmem:[#allocation44_spill] sm:$0xff] %v6990_v11  ;;  %8498 = vst [vmem:[#allocation45_spill] sm:$0xff] %v6994_v1  ;;  %v8505_v54 = vrot.slane %v6293_v16, 7  ;;  %v8506_v9 = vrot.slane %v6267_v35, 7  ;;  %v8513_v35 = vrot.slane %v6383_v28, 7  ;;  %v8514_v46 = vrot.slane %v6361_v30, 7  ;;  %5319 = vmatprep.subr.bf16.mxu1 %v5620_v29 }
 0x1d2   : > { %8495 = vst [vmem:[#allocation43_spill] sm:$0xff] %v6983_v41  ;;  %v1350_v7 = vsel %vm8501_vm11, %v8500_v12, %v8499_v20  ;;  %v8502_v39 = vmov %v8500_v12  ;;  %8504 = vst [vmem:[#allocation46_spill] sm:$0xff] %v7008_v45  ;;  %v8508_v8 = vmov %v8499_v20  ;;  %v7033_v12 = vpack.c.bf16 %v6383_v28, %v6361_v30  ;;  %5320 = vmatpush3.bf16.msra.mxu1 %v5620_v29 }
 0x1d3   : > { %v1351_v60 = vsel %vm8503_vm9, %v1318_v44, %v8502_v39  ;;  %v1348_v36 = vsel %vm8485_vm0, %v8506_v9, %v8505_v54  ;;  %v8507_v13 = vmov %v8506_v9  ;;  %vm8509_vm11 = vmmov %vm8485_vm0  ;;  %v1332_v54 = vrot.slane %v6601_v58, 7  ;;  %5321 = vmatprep.subr.bf16.mxu1 %v5621_v52 }
 0x1d4   : > { %v1349_v47 = vsel %vm8509_vm11, %v8508_v8, %v8507_v13  ;;  %v7027_v44 = vpack.c.bf16 %v1350_v7, %v1351_v60  ;;  %8512 = vst [vmem:[#allocation49_spill] sm:$0xff] %v7033_v12  ;;  %vm8515_vm9 = vmmov %vm8485_vm0  ;;  %v8516_v7 = vmov 0  ;;  %v8518_v60 = vmov %v8514_v46 }
 0x1d5   : > { %v7029_v20 = vpack.c.bf16 %v1348_v36, %v1349_v47  ;;  %v1346_v39 = vsel %vm8515_vm9, %v8514_v46, %v8513_v35  ;;  %vm7045_vm0 = vmpackc.low %vm6823_vm15, %vm8465_vm10  ;;  %v8519_v9 = vrot.slane %v6293_v16, 7  ;;  %v7058_v13 = vpack.c.bf16 %v6375_v42, %v6351_v14 }
 0x1d6   : > { %8510 = vst [vmem:[#allocation47_spill] sm:$0xff] %v7027_v44  ;;  %v8517_v7 = vsel %vm7045_vm0, 4294967295, %v8516_v7  ;;  %vm8520_vm11 = vmmov %vm8515_vm9  ;;  %v8522_v25 = vrot.slane %v6375_v42, 7  ;;  %v8523_v8 = vrot.slane %v6351_v14, 7  ;;  %v1331_v6 = vrot.slane %v6521_v23, 7  ;;  %5294 = vmatmul.mubr.msk.bf16.gmra.mrb[32].mxu0 %vm7045_vm0, %v6755_v21  ;;  %5322 = vmatpush3.bf16.msra.mxu1 %v5621_v52 }
 0x1d7   : > { %8511 = vst [vmem:[#allocation48_spill] sm:$0xff] %v7029_v20  ;;  %v1347_v36 = vsel %vm8520_vm11, %v8519_v9, %v8518_v60  ;;  %8521 = vst [vmem:[#allocation50_spill] sm:$0xff] %v7058_v13  ;;  %v8525_v16 = vmov 0  ;;  %v8530_v46 = vrot.slane %v6383_v28, 7  ;;  %v7084_v9 = vpack.c.bf16 %v6464_v33, %v6448_v22  ;;  %v8536_v33 = vld [vmem:[#allocation17_spill] sm:$0xff] }
 0x1d8   : > { %vm8524_vm15 = vmmov %vm8515_vm9  ;;  %v7074_v30 = vpack.c.bf16 %v1346_v39, %v1347_v36  ;;  %v8529_v35 = vmov %v8523_v8  ;;  %v8534_v14 = vrot.slane %v6375_v42, 7  ;;  %v7100_v36 = vpack.c.bf16 %v8456_v43, %v6417_v37 }
 0x1d9   : > { %v1344_v47 = vsel %vm8524_vm15, %v8523_v8, %v8522_v25  ;;  %vm7070_vm9 = vmpackc.low %vm6845_vm4, %vm8465_vm10  ;;  %v1345_v60 = vsel %vm8520_vm11, %v8530_v46, %v8529_v35  ;;  %v8531_v8 = vrot.slane %v6448_v22, 7  ;;  %v914_v42 = vadd.s32 216, %v6186_v51  ;;  %v5624_v35 = vld [vmem:[#allocation7 + $0x1c0] sm:$0xff]  }
 0x1da   : > { %v8526_v16 = vsel %vm7070_vm9, 4294967295, %v8525_v16  ;;  %8528 = vst [vmem:[#allocation52_spill] sm:$0xff] %v7074_v30  ;;  %v7086_v25 = vpack.c.bf16 %v1344_v47, %v1345_v60  ;;  %vm8532_vm4 = vmmov %vm8520_vm11  ;;  %v8537_v47 = vand.u32 15, %v8536_v33  ;;  %v8540_v46 = vrot.slane %v6417_v37, 7  ;;  %5297 = vmatprep.mubr.msk.bf16.mxu0 %vm7070_vm9, %v6780_v10 }
 0x1db   : > { %8527 = vst [vmem:[#allocation51_spill] sm:$0xff] %v8526_v16  ;;  %v1342_v49 = vsel %vm8532_vm4, %v8531_v8, %v1328_v48  ;;  %v8533_v39 = vmov %v8531_v8  ;;  %vm8535_vm15 = vmmov %vm8532_vm4  ;;  %v1333_v8 = vrot.slane %v6516_v4, 7  ;;  %v8547_v29 = vrot.slane %v8456_v43, 7 }
 0x1dc   : > { %v1343_v28 = vsel %vm8535_vm15, %v8534_v14, %v8533_v39  ;;  %vm7108_vm11 = vcmp.lt.s32.totalorder %v8537_v47, 15  ;;  %v1340_v60 = vsel %vm8532_vm4, %v8540_v46, %v8259_v24  ;;  %vm7128_vm15 = vmpackc.low %vm8465_vm10, %vm6916_vm1  ;;  %v8541_v39 = vmov 0  ;;  %v8546_v47 = vld [vmem:[#allocation20_spill] sm:$0xff] }
 0x1dd   : > { %v7113_v22 = vpack.c.bf16 %v1342_v49, %v1343_v28  ;;  %v8542_v39 = vsel %vm7128_vm15, 4294967295, %v8541_v39  ;;  %v8543_v49 = vmov %v8540_v46  ;;  %vm8544_vm0 = vmmov %vm8532_vm4  ;;  %v7138_v28 = vpack.c.bf16 %v6601_v58, %v6521_v23  ;;  %v5622_v24 = vld [vmem:[#allocation7 + $0x178] sm:$0xff]   ;;  %v8549_v23 = vld [vmem:[#allocation19_spill] sm:$0xff]  ;;  %4254 = vmatmul.mubr.msk.bf16.gmra.mrb[28].mxu1 %vm7128_vm15, %v6829_v17 }
 0x1de   : > { %v1341_v14 = vsel %vm8544_vm0, %v1328_v48, %v8543_v49  ;;  %vm8545_vm4 = vmmov %vm8544_vm0  ;;  %v979_v32 = vand.u32 15, %v8546_v47  ;;  %v7151_v48 = vpack.c.bf16 %v6569_v63, %v6516_v4  ;;  %v8550_v58 = vand.u32 15, %v8549_v23  ;;  %1865 = vmatprep.mubr.bf16.mxu1 %v6853_v3  ;;  %5323 = vmatprep.subr.bf16.mxu1 %v5622_v24 }
 0x1df   : > { %v1338_v33 = vsel %vm8545_vm4, %v1331_v6, %v1332_v54  ;;  %v7143_v46 = vpack.c.bf16 %v1340_v60, %v1341_v14  ;;  %vm8548_vm1 = vmmov %vm8544_vm0  ;;  %v916_v49 = vadd.s32 232, %v6186_v51  ;;  %v8551_v60 = vrot.slane %v6569_v63, 7  ;;  %5324 = vmatpush3.bf16.msra.mxu1 %v5622_v24  ;;  %v8635_v24 = vld [vmem:[#allocation25_spill] sm:$0xff] }
 0x1e0   : > { %v1339_v37 = vsel %vm8548_vm1, %v8547_v29, %v1331_v6  ;;  %vm1522_vm0 = vcmp.lt.s32.totalorder %v8550_v58, 15  ;;  %vm8552_vm4 = vmmov %vm8548_vm1  ;;  %v1337_v4 = vsel %vm8548_vm1, %v1332_v54, %v1333_v8  ;;  %v8553_v43 = vmov 0  ;;  %5053 = vmatprep.subr.bf16.mxu1 %v5624_v35  ;;  %v8571_v35 = vld [vmem:[#allocation34_spill] sm:$0xff] }
 0x1e1   : > { %v7156_v16 = vpack.c.bf16 %v1338_v33, %v1339_v37  ;;  %v1336_v14 = vsel %vm8552_vm4, %v1333_v8, %v8551_v60  ;;  %vm7170_vm9 = vmpackc.low %vm7108_vm11, %vm8465_vm10  ;;  %v8555_v6 = vmov 0  ;;  %v1112_v33 = vand.u32 15, %v914_v42 }
 0x1e2   : > { %v8554_v43 = vsel %vm7170_vm9, 4294967295, %v8553_v43  ;;  %v7175_v63 = vpack.c.bf16 %v1336_v14, %v1337_v4  ;;  %vm7178_vm4 = vmpackc.low %vm1522_vm0, %vm8465_vm10  ;;  %vm1376_vm7 = vcmp.ge.s32.totalorder %v979_v32, 1  ;;  %v897_v54 = vadd.s32 80, %v6186_v51  ;;  %5298 = vmatmul.mubr.msk.bf16.gmra.mrb[36].mxu0 %vm7170_vm9, %v6827_v15 }
 0x1e3   : > { %v8556_v6 = vsel %vm7178_vm4, 4294967295, %v8555_v6  ;;  %v1126_v8 = vand.u32 15, %v916_v49  ;;  %5301 = vmatprep.mubr.msk.bf16.mxu0 %vm7178_vm4, %v6849_v34  ;;  %vm7190_vm11 = vmpackc.low %vm8465_vm10, %vm1376_vm7  ;;  %v8557_v52 = vmov 0  ;;  %vm1524_vm0 = vcmp.lt.s32.totalorder %v1112_v33, 15 }
 0x1e4   : > { %v8558_v52 = vsel %vm7190_vm11, 4294967295, %v8557_v52  ;;  %v918_v42 = vadd.s32 248, %v6186_v51  ;;  %v993_v47 = vand.u32 15, %v897_v54  ;;  %vm7199_vm9 = vmpackc.low %vm1524_vm0, %vm8465_vm10  ;;  %v8559_v32 = vmov 0  ;;  %v5628_v54 = vld [vmem:[#allocation7 + $0x208] sm:$0xff]  }
 0x1e5   : > { %vm1526_vm1 = vcmp.lt.s32.totalorder %v1126_v8, 15  ;;  %4257 = vmatmul.mubr.msk.bf16.gmra.mrb[32].mxu1 %vm7190_vm11, %v6897_v53  ;;  %v8560_v32 = vsel %vm7199_vm9, 4294967295, %v8559_v32  ;;  %v899_v37 = vadd.s32 96, %v6186_v51  ;;  %v8563_v23 = vmov 0  ;;  %v8572_v8 = vld [vmem:[#allocation35_spill] sm:$0xff] }
 0x1e6   : > { %1873 = vmatprep.mubr.bf16.mxu1 %v6905_v59  ;;  %vm7205_vm7 = vmpackc.low %vm1526_vm1, %vm8465_vm10  ;;  %v1140_v29 = vand.u32 15, %v918_v42  ;;  %vm1378_vm4 = vcmp.ge.s32.totalorder %v993_v47, 1  ;;  %v8566_v49 = vmov 0  ;;  %v901_v60 = vadd.s32 112, %v6186_v51 }
 0x1e7   : > { %vm7217_vm0 = vmpackc.low %vm8465_vm10, %vm1378_vm4  ;;  %v1007_v58 = vand.u32 15, %v899_v37  ;;  %v8568_v14 = vmov 0  ;;  %v903_v33 = vadd.s32 128, %v6186_v51  ;;  %v8573_v42 = vmov 0 }
 0x1e8   : > { %v8564_v23 = vsel %vm7217_vm0, 4294967295, %v8563_v23  ;;  %vm1528_vm1 = vcmp.lt.s32.totalorder %v1140_v29, 15  ;;  %v1021_v4 = vand.u32 15, %v901_v60  ;;  %v5632_v29 = vld [vmem:[#allocation7 + $0x210] sm:$0xff]   ;;  %v905_v37 = vadd.s32 144, %v6186_v51  ;;  %v8576_v60 = vld [vmem:[#allocation36_spill] sm:$0xff] }
 0x1e9   : > { %8565 = vst [vmem:[#allocation17_spill] sm:$0xff] %v8564_v23  ;;  %vm7225_vm2 = vmpackc.low %vm1528_vm1, %vm8465_vm10  ;;  %v1035_v47 = vand.u32 15, %v903_v33  ;;  %v8579_v33 = vmov 0  ;;  %v5635_v23 = vld [vmem:[#allocation7 + $0x1e0] sm:$0xff]  }
 0x1ea   : > { %5302 = vmatmul.mubr.msk.bf16.gmra.mrb[40].mxu0 %vm7199_vm9, %v6870_v19  ;;  %v8567_v49 = vsel %vm7225_vm2, 4294967295, %v8566_v49  ;;  %vm1380_vm9 = vcmp.ge.s32.totalorder %v1007_v58, 1  ;;  %vm1382_vm1 = vcmp.ge.s32.totalorder %v1021_v4, 1  ;;  %v5634_v58 = vld [vmem:[#allocation7 + $0x218] sm:$0xff]   ;;  %v8577_v4 = vld [vmem:[#allocation42_spill] sm:$0xff] }
 0x1eb   : > { %5305 = vmatprep.mubr.msk.bf16.mxu0 %vm7205_vm7, %v6920_v18  ;;  %vm7236_vm4 = vmpackc.low %vm8465_vm10, %vm1380_vm9 }
 0x1ec   : > { %v8569_v14 = vsel %vm7236_vm4, 4294967295, %v8568_v14  ;;  %vm7250_vm9 = vmpackc.low %vm8465_vm10, %vm1382_vm1 }
 0x1ed   : > { %4260 = vmatmul.mubr.msk.bf16.gmra.mrb[36].mxu1 %vm7217_vm0, %v6956_v61  ;;  %8570 = vst [vmem:[#allocation20_spill] sm:$0xff] %v8569_v14  ;;  %v8574_v42 = vsel %vm7250_vm9, 4294967295, %v8573_v42  ;;  %v5629_v14 = vld [vmem:[#allocation7 + $0x1d0] sm:$0xff]  }
 0x1ee   : > { %1881 = vmatprep.mubr.bf16.mxu1 %v6951_v40  ;;  %8575 = vst [vmem:[#allocation19_spill] sm:$0xff] %v8574_v42 }
 0x1f2   : > { %5306 = vmatmul.mubr.msk.bf16.gmra.mrb[44].mxu0 %vm7225_vm2, %v6941_v62 }
 0x1f3   : > { %2444 = vmatprep.mubr.bf16.mxu0 %v6586_v56 }
 0x1f5   : > { %4263 = vmatmul.mubr.msk.bf16.gmra.mrb[40].mxu1 %vm7236_vm4, %v6983_v41 }
 0x1f6   : > { %1889 = vmatprep.mubr.bf16.mxu1 %v6970_v50 }
 0x1fa   : > { %4365 = vmatmul.mubr.msk.bf16.vlgmr.msra.gmra.mrb[48].mxu0 %vm6637_vm3, %v6647_v2  ;;  %vm1384_vm3 = vcmp.ge.s32.totalorder %v1035_v47, 1  ;;  %v907_v47 = vadd.s32 160, %v6186_v51 }
 0x1fb   : > { %2452 = vmatprep.mubr.bf16.mxu0 %v8572_v8  ;;  %5358 = vmatpush3.bf16.msra.mxu0 %v7022_v31  ;;  %v8578_v31 = vld [vmem:[#allocation39_spill] sm:$0xff]  ;;  %vm7265_vm1 = vmpackc.low %vm8465_vm10, %vm1384_vm3  ;;  %v1049_v8 = vand.u32 15, %v905_v37 }
 0x1fc   : > { %5359 = vmatprep.subr.bf16.mxu0 %v5628_v54  ;;  %v8580_v33 = vsel %vm7265_vm1, 4294967295, %v8579_v33  ;;  %v1063_v37 = vand.u32 15, %v907_v47 }
 0x1fd   : > { %4266 = vmatmul.mubr.msk.bf16.gmra.mrb[44].mxu1 %vm7250_vm9, %v6990_v11  ;;  %8581 = vst [vmem:[#allocation34_spill] sm:$0xff] %v8580_v33  ;;  %vm1386_vm2 = vcmp.ge.s32.totalorder %v1049_v8, 1  ;;  %v909_v8 = vadd.s32 176, %v6186_v51  ;;  %v8600_v33 = vld [vmem:[#allocation21_spill] sm:$0xff] }
 0x1fe   : > { %1897 = vmatprep.mubr.bf16.mxu1 %v6994_v1  ;;  %vm7279_vm3 = vmpackc.low %vm8465_vm10, %vm1386_vm2 }
 0x1ff   : > { %5360 = vmatpush3.bf16.msra.mxu0 %v5628_v54  ;;  %v5636_v54 = vld [vmem:[#allocation7 + $0x220] sm:$0xff]   ;;  %v1077_v47 = vand.u32 15, %v909_v8  ;;  %v8590_v8 = vmov 0 }
 0x200   : > { %5361 = vmatprep.subr.bf16.mxu0 %v5632_v29 }
 0x202   : > { %4368 = vmatmul.mubr.msk.bf16.gmra.mrb[52].mxu0 %vm6799_vm13, %v8576_v60  ;;  %vm1388_vm13 = vcmp.ge.s32.totalorder %v1063_v37, 1  ;;  %v8588_v37 = vmov 0 }
 0x203   : > { %2460 = vmatprep.mubr.bf16.mxu0 %v8578_v31  ;;  %5362 = vmatpush3.bf16.msra.mxu0 %v5632_v29  ;;  %v5638_v31 = vld [vmem:[#allocation7 + $0x228] sm:$0xff]   ;;  %v8582_v29 = vmov 0  ;;  %vm7293_vm2 = vmpackc.low %vm8465_vm10, %vm1388_vm13 }
 0x204   : > { %5363 = vmatprep.subr.bf16.mxu0 %v5634_v58  ;;  %v8583_v29 = vsel %vm7279_vm3, 4294967295, %v8582_v29 }
 0x205   : > { %4269 = vmatmul.mubr.msk.bf16.gmra.mrb[48].mxu1 %vm7265_vm1, %v7027_v44  ;;  %8584 = vst [vmem:[#allocation36_spill] sm:$0xff] %v8583_v29  ;;  %v5631_v29 = vld [vmem:[#allocation7 + $0x1d8] sm:$0xff]  }
 0x206   : > { %1905 = vmatprep.mubr.bf16.mxu1 %v7008_v45 }
 0x207   : > { %5364 = vmatpush3.bf16.msra.mxu0 %v5634_v58  ;;  %v5640_v58 = vld [vmem:[#allocation7 + $0x230] sm:$0xff]  }
 0x208   : > { %5365 = vmatprep.subr.bf16.mxu0 %v5636_v54 }
 0x20a   : > { %4371 = vmatmul.mubr.msk.bf16.gmra.mrb[56].mxu0 %vm6979_vm8, %v6778_v26  ;;  %vm1390_vm8 = vcmp.ge.s32.totalorder %v1077_v47, 1 }
 0x20b   : > { %2468 = vmatprep.mubr.bf16.mxu0 %v6784_v57  ;;  %5366 = vmatpush3.bf16.msra.mxu0 %v5636_v54  ;;  %v5642_v57 = vld [vmem:[#allocation7 + $0x238] sm:$0xff]   ;;  %v8585_v54 = vmov 0  ;;  %vm7307_vm13 = vmpackc.low %vm8465_vm10, %vm1390_vm8 }
 0x20c   : > { %5367 = vmatprep.subr.bf16.mxu0 %v5638_v31  ;;  %v8586_v54 = vsel %vm7293_vm2, 4294967295, %v8585_v54  ;;  %v8589_v37 = vsel %vm7307_vm13, 4294967295, %v8588_v37 }
 0x20d   : > { %4272 = vmatmul.mubr.msk.bf16.gmra.mrb[52].mxu1 %vm7279_vm3, %v7029_v20  ;;  %8587 = vst [vmem:[#allocation42_spill] sm:$0xff] %v8586_v54  ;;  %v8610_v54 = vld [vmem:[#allocation37_spill] sm:$0xff] }
 0x20e   : > { %1913 = vmatprep.mubr.bf16.mxu1 %v7033_v12 }
 0x20f   : > { %5368 = vmatpush3.bf16.msra.mxu0 %v5638_v31  ;;  %v911_v31 = vadd.s32 192, %v6186_v51 }
 0x210   : > { %5369 = vmatprep.subr.bf16.mxu0 %v5640_v58 }
 0x212   : > { %4374 = vmatmul.mubr.msk.bf16.gmra.mrb[60].mxu0 %vm7128_vm15, %v6829_v17 }
 0x213   : > { %2476 = vmatprep.mubr.bf16.mxu0 %v6853_v3  ;;  %5370 = vmatpush3.bf16.msra.mxu0 %v5640_v58  ;;  %v1091_v58 = vand.u32 15, %v911_v31  ;;  %v915_v31 = vadd.s32 224, %v6186_v51 }
 0x214   : > { %5371 = vmatprep.subr.bf16.mxu0 %v5642_v57 }
 0x215   : > { %4275 = vmatmul.mubr.msk.bf16.gmra.mrb[56].mxu1 %vm7293_vm2, %v7074_v30  ;;  %vm1392_vm15 = vcmp.ge.s32.totalorder %v1091_v58, 1  ;;  %v8592_v58 = vmov 0 }
 0x216   : > { %1921 = vmatprep.mubr.bf16.mxu1 %v7058_v13  ;;  %vm7321_vm8 = vmpackc.low %vm8465_vm10, %vm1392_vm15 }
 0x217   : > { %5372 = vmatpush3.bf16.msra.mxu0 %v5642_v57  ;;  %v913_v57 = vadd.s32 208, %v6186_v51  ;;  %v8591_v8 = vsel %vm7321_vm8, 4294967295, %v8590_v8 }
 0x219   : > { %v1105_v47 = vand.u32 15, %v913_v57  ;;  %v1119_v57 = vand.u32 15, %v915_v31 }
 0x21a   : > { %4377 = vmatmul.mubr.msk.bf16.gmra.mrb[64].mxu0 %vm7190_vm11, %v6897_v53 }
 0x21b   : > { %2484 = vmatprep.mubr.bf16.mxu0 %v6905_v59  ;;  %vm1394_vm11 = vcmp.ge.s32.totalorder %v1105_v47, 1  ;;  %v917_v47 = vadd.s32 240, %v6186_v51  ;;  %v8596_v51 = vmov 0 }
 0x21c   : > { %vm7335_vm15 = vmpackc.low %vm8465_vm10, %vm1394_vm11 }
 0x21d   : > { %4278 = vmatmul.mubr.msk.bf16.gmra.mrb[60].mxu1 %vm7307_vm13, %v7086_v25  ;;  %v8593_v58 = vsel %vm7335_vm15, 4294967295, %v8592_v58  ;;  %v1133_v31 = vand.u32 15, %v917_v47 }
 0x21e   : > { %1929 = vmatprep.mubr.bf16.mxu1 %v7084_v9 }
 0x222   : > { %4380 = vmatmul.mubr.msk.bf16.gmra.mrb[68].mxu0 %vm7217_vm0, %v6956_v61  ;;  %vm1396_vm0 = vcmp.ge.s32.totalorder %v1119_v57, 1  ;;  %v8598_v57 = vld [vmem:[#allocation23_spill] sm:$0xff]  ;;  %v8613_v61 = vld [vmem:[#allocation40_spill] sm:$0xff] }
 0x223   : > { %2492 = vmatprep.mubr.bf16.mxu0 %v6951_v40  ;;  %vm7349_vm11 = vmpackc.low %vm8465_vm10, %vm1396_vm0  ;;  %v8607_v40 = vld [vmem:[#allocation31_spill] sm:$0xff]  ;;  %vm8611_vm0 = vnez %v8610_v54 }
 0x225   : > { %4281 = vmatmul.mubr.msk.bf16.gmra.mrb[64].mxu1 %vm7321_vm8, %v7113_v22 }
 0x226   : > { %1937 = vmatprep.mubr.bf16.mxu1 %v7100_v36 }
 0x22a   : > { %4383 = vmatmul.mubr.msk.bf16.gmra.mrb[72].mxu0 %vm7236_vm4, %v6983_v41  ;;  %vm1398_vm4 = vcmp.ge.s32.totalorder %v1133_v31, 1  ;;  %v5625_v31 = vld [vmem:[#allocation7 + $0x180] sm:$0xff]  }
 0x22b   : > { %2500 = vmatprep.mubr.bf16.mxu0 %v6970_v50  ;;  %v8594_v50 = vmov 0 }
 0x22c   : > { %v8595_v50 = vsel %vm7349_vm11, 4294967295, %v8594_v50 }
 0x22d   : > { %4284 = vmatmul.mubr.msk.bf16.gmra.mrb[68].mxu1 %vm7335_vm15, %v7143_v46 }
 0x22e   : > { %1945 = vmatprep.mubr.bf16.mxu1 %v7138_v28 }
 0x232   : > { %4386 = vmatmul.mubr.msk.bf16.gmra.mrb[76].mxu0 %vm7250_vm9, %v6990_v11  ;;  %vm7362_vm9 = vmpackc.low %vm8465_vm10, %vm1398_vm4  ;;  %v5627_v11 = vld [vmem:[#allocation7 + $0x188] sm:$0xff]   ;;  %vm8608_vm10 = vnez %v8607_v40  ;;  %vm8614_vm4 = vnez %v8613_v61  ;;  %v8627_v40 = vld [vmem:[#allocation39_spill] sm:$0xff] }
 0x233   : > { %2508 = vmatprep.mubr.bf16.mxu0 %v6994_v1  ;;  %v8597_v51 = vsel %vm7362_vm9, 4294967295, %v8596_v51  ;;  %v8602_v1 = vld [vmem:[#allocation28_spill] sm:$0xff] }
 0x235   : > { %4287 = vmatmul.mubr.msk.bf16.gmra.mrb[72].mxu1 %vm7349_vm11, %v7156_v16 }
 0x236   : > { %1953 = vmatprep.mubr.bf16.mxu1 %v7151_v48 }
 0x23a   : > { %4389 = vmatmul.mubr.msk.bf16.gmra.mrb[80].mxu0 %vm7265_vm1, %v7027_v44  ;;  %vm8621_vm1 = vnez %v8556_v6  ;;  %v8625_v44 = vld [vmem:[#allocation35_spill] sm:$0xff] }
 0x23b   : > { %2516 = vmatprep.mubr.bf16.mxu0 %v7008_v45  ;;  %v5626_v45 = vld [vmem:[#allocation7 + $0x1c8] sm:$0xff]  }
 0x23d   : > { %4290 = vmatmul.mubr.msk.bf16.gmra.mrb[76].mxu1 %vm7362_vm9, %v7175_v63 }
 0x23e   : > { %5325 = vmatprep.mubr.msk.bf16.mxu1 %vm6422_vm5, %v8598_v57 }
 0x242   : > { %4392 = vmatmul.mubr.msk.bf16.gmra.mrb[84].mxu0 %vm7279_vm3, %v7029_v20  ;;  %v8604_v20 = vld [vmem:[#allocation30_spill] sm:$0xff] }
 0x243   : > { %2524 = vmatprep.mubr.bf16.mxu0 %v7033_v12  ;;  %v5630_v12 = vld [vmem:[#allocation7 + $0x190] sm:$0xff]  }
 0x245   : > { %5326 = vmatmul.mubr.msk.bf16.vlgmr.msra.gmra.mrb[80].mxu1 %vm6432_vm6, %v8600_v33 }
 0x246   : > { %5054 = vmatpush3.bf16.msra.mxu1 %v5625_v31  ;;  %5329 = vmatprep.mubr.msk.bf16.mxu1 %vm6542_vm12, %v8602_v1  ;;  %v8606_v31 = vld [vmem:[#allocation32_spill] sm:$0xff] }
 0x247   : > { %5055 = vmatprep.subr.bf16.mxu1 %v5626_v45  ;;  %v5633_v45 = vld [vmem:[#allocation7 + $0x198] sm:$0xff]  }
 0x24a   : > { %4395 = vmatmul.mubr.msk.bf16.gmra.mrb[88].mxu0 %vm7293_vm2, %v7074_v30  ;;  %5056 = vmatpush3.bf16.msra.mxu1 %v5627_v11  ;;  %v5637_v11 = vld [vmem:[#allocation7 + $0x1a0] sm:$0xff]   ;;  %v8612_v30 = vld [vmem:[#allocation38_spill] sm:$0xff]  ;;  %vm8616_vm2 = vnez %v8471_v0 }
 0x24b   : > { %2532 = vmatprep.mubr.bf16.mxu0 %v7058_v13  ;;  %5057 = vmatprep.subr.bf16.mxu1 %v5629_v14  ;;  %v5639_v14 = vld [vmem:[#allocation7 + $0x1e8] sm:$0xff]   ;;  %v8609_v13 = vld [vmem:[#allocation33_spill] sm:$0xff] }
 0x24d   : > { %5330 = vmatmul.mubr.msk.bf16.gmra.mrb[84].mxu1 %vm6574_vm14, %v8604_v20 }
 0x24e   : > { %5333 = vmatprep.mubr.msk.bf16.mxu1 %vm8608_vm10, %v8606_v31  ;;  %5058 = vmatpush3.bf16.msra.mxu1 %v5630_v12  ;;  %v5641_v12 = vld [vmem:[#allocation7 + $0x1a8] sm:$0xff]  }
 0x24f   : > { %5059 = vmatprep.subr.bf16.mxu1 %v5631_v29  ;;  %v5643_v29 = vld [vmem:[#allocation7 + $0x1f0] sm:$0xff]  }
 0x252   : > { %4398 = vmatmul.mubr.msk.bf16.gmra.mrb[92].mxu0 %vm7307_vm13, %v7086_v25  ;;  %5060 = vmatpush3.bf16.msra.mxu1 %v5633_v45  ;;  %v5645_v45 = vld [vmem:[#allocation7 + $0x1f8] sm:$0xff]   ;;  %vm8615_vm13 = vnez %v8467_v27 }
 0x253   : > { %2540 = vmatprep.mubr.bf16.mxu0 %v7084_v9  ;;  %5061 = vmatprep.subr.bf16.mxu1 %v5635_v23  ;;  %v5644_v23 = vld [vmem:[#allocation7 + $0x1b0] sm:$0xff]  }
 0x255   : > { %5334 = vmatmul.mubr.msk.bf16.gmra.mrb[88].mxu1 %vm8611_vm0, %v8609_v13 }
 0x256   : > { %5337 = vmatprep.mubr.msk.bf16.mxu1 %vm8614_vm4, %v8612_v30  ;;  %5062 = vmatpush3.bf16.msra.mxu1 %v5637_v11  ;;  %v5646_v11 = vld [vmem:[#allocation7 + $0x1b8] sm:$0xff]  }
 0x257   : > { %5063 = vmatprep.subr.bf16.mxu1 %v5639_v14  ;;  %v8618_v14 = vld [vmem:[#allocation51_spill] sm:$0xff] }
 0x258   : > { %vm8619_vm3 = vnez %v8618_v14 }
 0x25a   : > { %4401 = vmatmul.mubr.msk.bf16.gmra.mrb[96].mxu0 %vm7321_vm8, %v7113_v22  ;;  %5064 = vmatpush3.bf16.msra.mxu1 %v5641_v12  ;;  %vm8617_vm8 = vnez %v8517_v7 }
 0x25b   : > { %2548 = vmatprep.mubr.bf16.mxu0 %v7100_v36  ;;  %5065 = vmatprep.subr.bf16.mxu1 %v5643_v29 }
 0x25d   : > { %5338 = vmatmul.mubr.msk.bf16.gmra.mrb[92].mxu1 %vm8615_vm13, %v6696_v38 }
 0x25e   : > { %5341 = vmatprep.mubr.msk.bf16.mxu1 %vm8616_vm2, %v6729_v5  ;;  %5066 = vmatpush3.bf16.msra.mxu1 %v5644_v23 }
 0x25f   : > { %5067 = vmatprep.subr.bf16.mxu1 %v5645_v45 }
 0x262   : > { %4404 = vmatmul.mubr.msk.bf16.gmra.mrb[100].mxu0 %vm7335_vm15, %v7143_v46  ;;  %5068 = vmatpush3.bf16.msra.mxu1 %v5646_v11  ;;  %vm8620_vm15 = vnez %v8554_v43 }
 0x263   : > { %2556 = vmatprep.mubr.bf16.mxu0 %v7138_v28 }
 0x265   : > { %5342 = vmatmul.mubr.msk.bf16.gmra.mrb[96].mxu1 %vm8617_vm8, %v6755_v21 }
 0x266   : > { %5345 = vmatprep.mubr.msk.bf16.mxu1 %vm8619_vm3, %v6780_v10 }
 0x26a   : > { %4407 = vmatmul.mubr.msk.bf16.gmra.mrb[104].mxu0 %vm7349_vm11, %v7156_v16  ;;  %vm8622_vm11 = vnez %v8560_v32 }
 0x26b   : > { %2564 = vmatprep.mubr.bf16.mxu0 %v7151_v48 }
 0x26d   : > { %5346 = vmatmul.mubr.msk.bf16.gmra.mrb[100].mxu1 %vm8620_vm15, %v6827_v15 }
 0x26e   : > { %5349 = vmatprep.mubr.msk.bf16.mxu1 %vm8621_vm1, %v6849_v34 }
 0x272   : > { %4410 = vmatmul.mubr.msk.bf16.gmra.mrb[108].mxu0 %vm7362_vm9, %v7175_v63  ;;  %vm8623_vm9 = vnez %v8567_v49 }
 0x273   : > { %5373 = vmatprep.mubr.msk.bf16.mxu0 %vm6422_vm5, %v8598_v57  ;;  %vm8624_vm5 = vnez %v8571_v35 }
 0x275   : > { %5350 = vmatmul.mubr.msk.bf16.gmra.mrb[104].mxu1 %vm8622_vm11, %v6870_v19 }
 0x276   : > { %5353 = vmatprep.mubr.msk.bf16.mxu1 %vm7205_vm7, %v6920_v18 }
 0x27a   : > { %5374 = vmatmul.mubr.msk.bf16.vlgmr.msra.gmra.mrb[112].mxu0 %vm6432_vm6, %v8600_v33  ;;  %vm8626_vm6 = vnez %v8577_v4 }
 0x27b   : > { %5377 = vmatprep.mubr.msk.bf16.mxu0 %vm6542_vm12, %v8602_v1  ;;  %v5279_v1 = vpop.f32.mrb[16].mxu0  ;;  %vm8628_vm12 = vnez %v8494_v55 }
 0x27c   : > { %v1996_v42 = vpop.f32.mrb[17].mxu0 }
 0x27d   : > { %5354 = vmatmul.mubr.msk.bf16.gmra.mrb[108].mxu1 %vm8623_vm9, %v6941_v62 }
 0x27e   : > { %2991 = vmatprep.mubr.bf16.mxu1 %v6586_v56  ;;  %v5280_v56 = vpop.f32.mrb[18].mxu0 }
 0x27f   : > { %v1999_v41 = vpop.f32.mrb[19].mxu0 }
 0x281   : > { %v4797_v35 = vpop.f32.mrb[16].mxu1 }
 0x282   : > { %5378 = vmatmul.mubr.msk.bf16.gmra.mrb[116].mxu0 %vm6574_vm14, %v8604_v20  ;;  %v8629_v20 = vld [vmem:[#allocation41_spill] sm:$0xff]  ;;  %vm8630_vm14 = vnez %v8542_v39 }
 0x283   : > { %5381 = vmatprep.mubr.msk.bf16.mxu0 %vm8608_vm10, %v8606_v31  ;;  %vm8658_vm10 = vnez %v8593_v58 }
 0x285   : > { %4485 = vmatmul.mubr.msk.bf16.vlgmr.msra.gmra.mrb[112].mxu1 %vm8624_vm5, %v6647_v2  ;;  %v5283_v2 = vpop.f32.mrb[20].mxu0 }
 0x286   : > { %2999 = vmatprep.mubr.bf16.mxu1 %v8625_v44  ;;  %v2012_v61 = vpop.f32.mrb[21].mxu0  ;;  %v8632_v44 = vld [vmem:[#allocation26_spill] sm:$0xff] }
 0x28a   : > { %5382 = vmatmul.mubr.msk.bf16.gmra.mrb[120].mxu0 %vm8611_vm0, %v8609_v13  ;;  %v5284_v13 = vpop.f32.mrb[22].mxu0  ;;  %vm8659_vm0 = vnez %v8595_v50 }
 0x28b   : > { %5385 = vmatprep.mubr.msk.bf16.mxu0 %vm8614_vm4, %v8612_v30  ;;  %v2015_v30 = vpop.f32.mrb[23].mxu0  ;;  %vm8660_vm4 = vnez %v8597_v51 }
 0x28d   : > { %4488 = vmatmul.mubr.msk.bf16.gmra.mrb[116].mxu1 %vm8626_vm6, %v8576_v60  ;;  %v7492_v60 = vpop.f32.mrb[24].mxu0 }
 0x28e   : > { %3007 = vmatprep.mubr.bf16.mxu1 %v8627_v40  ;;  %v2028_v4 = vpop.f32.mrb[25].mxu0 }
 0x292   : > { %5386 = vmatmul.mubr.msk.bf16.gmra.mrb[124].mxu0 %vm8615_vm13, %v6696_v38  ;;  %v4798_v38 = vpop.f32.mrb[17].mxu1 }
 0x293   : > { %5389 = vmatprep.mubr.msk.bf16.mxu0 %vm8616_vm2, %v6729_v5  ;;  %v4799_v5 = vadd.f32 %v4798_v38, %v4797_v35  ;;  %v4800_v27 = vpop.f32.mrb[18].mxu1 }
 0x294   : > { %v4801_v0 = vpop.f32.mrb[19].mxu1 }
 0x295   : > { %4491 = vmatmul.mubr.msk.bf16.gmra.mrb[120].mxu1 %vm8628_vm12, %v6778_v26  ;;  %v7490_v55 = vadd.f32 %v4799_v5, %v1996_v42  ;;  %v4802_v26 = vadd.f32 %v4801_v0, %v4800_v27  ;;  %v4803_v33 = vpop.f32.mrb[20].mxu1  ;;  %v8636_v5 = vld [vmem:[#allocation43_spill] sm:$0xff]  ;;  %v8637_v27 = vld [vmem:[#allocation20_spill] sm:$0xff] }
 0x296   : > { %3015 = vmatprep.mubr.bf16.mxu1 %v8629_v20  ;;  %v4804_v54 = vpop.f32.mrb[21].mxu1 }
 0x297   : > { %v7497_v7 = vadd.f32 %v4802_v26, %v1999_v41  ;;  %v4805_v57 = vadd.f32 %v4804_v54, %v4803_v33  ;;  %v4806_v39 = vpop.f32.mrb[22].mxu1 }
 0x299   : > { %v7510_v31 = vadd.f32 %v5279_v1, %v4805_v57  ;;  %v8633_v1 = vld [vmem:[#allocation17_spill] sm:$0xff] }
 0x29a   : > { %5390 = vmatmul.mubr.msk.bf16.gmra.mrb[128].mxu0 %vm8617_vm8, %v6755_v21  ;;  %v7499_v21 = vpop.f32.mrb[26].mxu0 }
 0x29b   : > { %5393 = vmatprep.mubr.msk.bf16.mxu0 %vm8619_vm3, %v6780_v10  ;;  %v2031_v10 = vpop.f32.mrb[27].mxu0  ;;  %vm8631_vm3 = vnez %v8558_v52 }
 0x29c   : > { %v7508_v47 = vpop.f32.mrb[28].mxu0 }
 0x29d   : > { %4494 = vmatmul.mubr.msk.bf16.gmra.mrb[124].mxu1 %vm8630_vm14, %v6829_v17  ;;  %v4807_v17 = vpop.f32.mrb[23].mxu1 }
 0x29e   : > { %3023 = vmatprep.mubr.bf16.mxu1 %v6853_v3  ;;  %v4808_v12 = vadd.f32 %v4807_v17, %v4806_v39  ;;  %v7512_v3 = vpop.f32.mrb[29].mxu0 }
 0x2a0   : > { %v7519_v43 = vadd.f32 %v5280_v56, %v4808_v12 }
 0x2a2   : > { %5394 = vmatmul.mubr.msk.bf16.gmra.mrb[132].mxu0 %vm8620_vm15, %v6827_v15  ;;  %v7517_v15 = vpop.f32.mrb[30].mxu0  ;;  %v4809_v6 = vpop.f32.mrb[24].mxu1  ;;  %vm8656_vm15 = vnez %v8589_v37 }
 0x2a3   : > { %5397 = vmatprep.mubr.msk.bf16.mxu0 %vm8621_vm1, %v6849_v34  ;;  %v7522_v34 = vpop.f32.mrb[31].mxu0  ;;  %v4810_v29 = vpop.f32.mrb[25].mxu1  ;;  %vm8634_vm1 = vnez %v8633_v1 }
 0x2a4   : > { %v4811_v52 = vadd.f32 %v4810_v29, %v4809_v6 }
 0x2a5   : > { %4497 = vmatmul.mubr.msk.bf16.gmra.mrb[128].mxu1 %vm8631_vm3, %v6897_v53  ;;  %v4812_v53 = vpop.f32.mrb[26].mxu1 }
 0x2a6   : > { %3031 = vmatprep.mubr.bf16.mxu1 %v6905_v59  ;;  %v4813_v23 = vpop.f32.mrb[27].mxu1  ;;  %v7532_v11 = vadd.f32 %v4811_v52, %v2012_v61  ;;  %v8640_v52 = vld [vmem:[#allocation44_spill] sm:$0xff] }
 0x2a7   : > { %v4814_v59 = vadd.f32 %v4813_v23, %v4812_v53  ;;  %v8641_v53 = vld [vmem:[#allocation19_spill] sm:$0xff] }
 0x2a9   : > { %v7530_v45 = vpop.f32.mrb[32].mxu0  ;;  %v7541_v32 = vadd.f32 %v4814_v59, %v2015_v30  ;;  %v8643_v59 = vld [vmem:[#allocation45_spill] sm:$0xff] }
 0x2aa   : > { %5398 = vmatmul.mubr.msk.bf16.gmra.mrb[136].mxu0 %vm8622_vm11, %v6870_v19  ;;  %v7534_v14 = vpop.f32.mrb[33].mxu0  ;;  %vm8657_vm11 = vnez %v8591_v8  ;;  %v5650_v8 = vld [vmem:[#allocation8 + $0x18] sm:$0xff]  }
 0x2ab   : > { %5401 = vmatprep.mubr.msk.bf16.mxu0 %vm7205_vm7, %v6920_v18  ;;  %v7539_v19 = vpop.f32.mrb[34].mxu0  ;;  %vm8638_vm7 = vnez %v8637_v27  ;;  %v8645_v27 = vld [vmem:[#allocation34_spill] sm:$0xff] }
 0x2ac   : > { %v7544_v18 = vpop.f32.mrb[35].mxu0  ;;  %vm8646_vm2 = vnez %v8645_v27 }
 0x2ad   : > { %4500 = vmatmul.mubr.msk.bf16.gmra.mrb[132].mxu1 %vm8634_vm1, %v8632_v44 }
 0x2ae   : > { %3039 = vmatprep.mubr.bf16.mxu1 %v8635_v24 }
 0x2b0   : > { %v4815_v42 = vpop.f32.mrb[28].mxu1 }
 0x2b1   : > { %v4816_v56 = vpop.f32.mrb[29].mxu1 }
 0x2b2   : > { %5402 = vmatmul.mubr.msk.bf16.gmra.mrb[140].mxu0 %vm8623_vm9, %v6941_v62  ;;  %v4817_v41 = vadd.f32 %v4816_v56, %v4815_v42  ;;  %v4818_v40 = vpop.f32.mrb[30].mxu1  ;;  %v8639_v62 = vld [vmem:[#allocation18_spill] sm:$0xff]  ;;  %vm8642_vm9 = vnez %v8641_v53 }
 0x2b3   : > { %v4819_v61 = vpop.f32.mrb[31].mxu1 }
 0x2b4   : > { %v7551_v35 = vadd.f32 %v5283_v2, %v4817_v41  ;;  %v4820_v38 = vadd.f32 %v4819_v61, %v4818_v40 }
 0x2b5   : > { %v7549_v20 = vpop.f32.mrb[36].mxu0  ;;  %4503 = vmatmul.mubr.msk.bf16.gmra.mrb[136].mxu1 %vm8638_vm7, %v8636_v5  ;;  %v8644_v5 = vld [vmem:[#allocation47_spill] sm:$0xff] }
 0x2b6   : > { %v7553_v30 = vpop.f32.mrb[37].mxu0  ;;  %v7560_v26 = vadd.f32 %v5284_v13, %v4820_v38  ;;  %3047 = vmatprep.mubr.bf16.mxu1 %v8639_v62 }
 0x2b7   : > { %v7558_v0 = vpop.f32.mrb[38].mxu0 }
 0x2b8   : > { %v7563_v49 = vpop.f32.mrb[39].mxu0  ;;  %v4821_v33 = vpop.f32.mrb[32].mxu1 }
 0x2b9   : > { %v4822_v54 = vpop.f32.mrb[33].mxu1 }
 0x2ba   : > { %v4823_v57 = vadd.f32 %v4822_v54, %v4821_v33  ;;  %v4824_v2 = vpop.f32.mrb[34].mxu1  ;;  %v8647_v33 = vld [vmem:[#allocation46_spill] sm:$0xff] }
 0x2bb   : > { %v4825_v39 = vpop.f32.mrb[35].mxu1 }
 0x2bc   : > { %v7567_v12 = vadd.f32 %v4823_v57, %v2028_v4  ;;  %v4826_v6 = vadd.f32 %v4825_v39, %v4824_v2 }
 0x2bd   : > { %v7565_v17 = vpop.f32.mrb[40].mxu0  ;;  %4506 = vmatmul.mubr.msk.bf16.gmra.mrb[140].mxu1 %vm8642_vm9, %v8640_v52 }
 0x2be   : > { %v7569_v29 = vpop.f32.mrb[41].mxu0  ;;  %v7576_v23 = vadd.f32 %v4826_v6, %v2031_v10  ;;  %3055 = vmatprep.mubr.bf16.mxu1 %v8643_v59 }
 0x2bf   : > { %v7574_v13 = vpop.f32.mrb[42].mxu0 }
 0x2c0   : > { %v7579_v44 = vpop.f32.mrb[43].mxu0  ;;  %v4827_v1 = vpop.f32.mrb[36].mxu1 }
 0x2c1   : > { %v4828_v24 = vpop.f32.mrb[37].mxu1 }
 0x2c2   : > { %v4829_v42 = vadd.f32 %v4828_v24, %v4827_v1  ;;  %v4830_v4 = vpop.f32.mrb[38].mxu1  ;;  %v8648_v24 = vld [vmem:[#allocation48_spill] sm:$0xff] }
 0x2c3   : > { %v4831_v56 = vpop.f32.mrb[39].mxu1 }
 0x2c4   : > { %v7582_v40 = vadd.f32 %v7492_v60, %v4829_v42  ;;  %v4832_v61 = vadd.f32 %v4831_v56, %v4830_v4  ;;  %v8649_v42 = vld [vmem:[#allocation36_spill] sm:$0xff] }
 0x2c5   : > { %v5307_v41 = vpop.f32.mrb[44].mxu0  ;;  %4509 = vmatmul.mubr.msk.bf16.gmra.mrb[144].mxu1 %vm8646_vm2, %v8644_v5  ;;  %vm8650_vm13 = vnez %v8649_v42  ;;  %v8655_v42 = vld [vmem:[#allocation50_spill] sm:$0xff] }
 0x2c6   : > { %v7584_v38 = vpop.f32.mrb[45].mxu0  ;;  %v7590_v62 = vadd.f32 %v7499_v21, %v4832_v61  ;;  %3063 = vmatprep.mubr.bf16.mxu1 %v8647_v33  ;;  %v8651_v41 = vld [vmem:[#allocation49_spill] sm:$0xff] }
 0x2c7   : > { %v5308_v10 = vpop.f32.mrb[46].mxu0 }
 0x2c8   : > { %v7593_v54 = vpop.f32.mrb[47].mxu0  ;;  %v4833_v57 = vpop.f32.mrb[40].mxu1 }
 0x2c9   : > { %v4834_v2 = vpop.f32.mrb[41].mxu1 }
 0x2ca   : > { %v4835_v39 = vadd.f32 %v4834_v2, %v4833_v57  ;;  %v4836_v60 = vpop.f32.mrb[42].mxu1 }
 0x2cb   : > { %v4837_v6 = vpop.f32.mrb[43].mxu1 }
 0x2cc   : > { %v7596_v53 = vadd.f32 %v4835_v39, %v7512_v3  ;;  %v4838_v59 = vadd.f32 %v4837_v6, %v4836_v60 }
 0x2cd   : > { %v4933_v52 = vpop.f32.mrb[48].mxu0  ;;  %4512 = vmatmul.mubr.msk.bf16.gmra.mrb[148].mxu1 %vm8650_vm13, %v8648_v24 }
 0x2ce   : > { %v4934_v1 = vpop.f32.mrb[49].mxu0  ;;  %v7604_v56 = vadd.f32 %v4838_v59, %v7522_v34  ;;  %3071 = vmatprep.mubr.bf16.mxu1 %v8651_v41 }
 0x2cf   : > { %v7601_v21 = vadd.f32 %v4934_v1, %v4933_v52  ;;  %v4936_v4 = vpop.f32.mrb[50].mxu0  ;;  %v8652_v52 = vld [vmem:[#allocation52_spill] sm:$0xff]  ;;  %v8653_v1 = vld [vmem:[#allocation42_spill] sm:$0xff] }
 0x2d0   : > { %v4937_v61 = vpop.f32.mrb[51].mxu0  ;;  %v4839_v27 = vpop.f32.mrb[44].mxu1  ;;  %vm8654_vm8 = vnez %v8653_v1 }
 0x2d1   : > { %v7607_v5 = vadd.f32 %v4937_v61, %v4936_v4  ;;  %v4840_v3 = vpop.f32.mrb[45].mxu1 }
 0x2d2   : > { %v4841_v10 = vadd.f32 %v4840_v3, %v4839_v27  ;;  %v4842_v33 = vpop.f32.mrb[46].mxu1 }
 0x2d3   : > { %v4843_v57 = vpop.f32.mrb[47].mxu1 }
 0x2d4   : > { %v7610_v39 = vadd.f32 %v7508_v47, %v4841_v10  ;;  %v4844_v60 = vadd.f32 %v4843_v57, %v4842_v33 }
 0x2d5   : > { %v4939_v2 = vpop.f32.mrb[52].mxu0  ;;  %4515 = vmatmul.mubr.msk.bf16.gmra.mrb[152].mxu1 %vm8654_vm8, %v8652_v52 }
 0x2d6   : > { %v4940_v6 = vpop.f32.mrb[53].mxu0  ;;  %v7618_v24 = vadd.f32 %v7517_v15, %v4844_v60  ;;  %3079 = vmatprep.mubr.bf16.mxu1 %v8655_v42  ;;  %v5648_v42 = vld [vmem:[#allocation8 + $0x8] sm:$0xff]  }
 0x2d7   : > { %v7615_v34 = vadd.f32 %v4940_v6, %v4939_v2  ;;  %v4942_v59 = vpop.f32.mrb[54].mxu0 }
 0x2d8   : > { %v4943_v4 = vpop.f32.mrb[55].mxu0  ;;  %v4845_v61 = vpop.f32.mrb[48].mxu1 }
 0x2d9   : > { %v7621_v41 = vadd.f32 %v4943_v4, %v4942_v59  ;;  %v4846_v47 = vpop.f32.mrb[49].mxu1  ;;  %v5647_v59 = vld [vmem:[#allocation8] sm:$0xff]  }
 0x2da   : > { %v4847_v27 = vadd.f32 %v4846_v47, %v4845_v61  ;;  %v4848_v3 = vpop.f32.mrb[50].mxu1  ;;  %5405 = vmatprep.subr.bf16.mxu0 %v5647_v59 }
 0x2db   : > { %v4849_v10 = vpop.f32.mrb[51].mxu1  ;;  %5406 = vmatpush3.bf16.msra.mxu0 %v5647_v59 }
 0x2dc   : > { %v7624_v57 = vadd.f32 %v4847_v27, %v7534_v14  ;;  %v4850_v2 = vadd.f32 %v4849_v10, %v4848_v3  ;;  %5407 = vmatprep.subr.bf16.mxu0 %v5648_v42 }
 0x2dd   : > { %v4945_v33 = vpop.f32.mrb[56].mxu0  ;;  %4518 = vmatmul.mubr.msk.bf16.gmra.mrb[156].mxu1 %vm8656_vm15, %v7086_v25 }
 0x2de   : > { %v4946_v6 = vpop.f32.mrb[57].mxu0  ;;  %v7632_v52 = vadd.f32 %v4850_v2, %v7544_v18  ;;  %3087 = vmatprep.mubr.bf16.mxu1 %v7084_v9 }
 0x2df   : > { %v7629_v15 = vadd.f32 %v4946_v6, %v4945_v33  ;;  %v4948_v60 = vpop.f32.mrb[58].mxu0  ;;  %5408 = vmatpush3.bf16.msra.mxu0 %v5648_v42 }
 0x2e0   : > { %v4949_v1 = vpop.f32.mrb[59].mxu0  ;;  %v4851_v14 = vpop.f32.mrb[52].mxu1 }
 0x2e1   : > { %v7635_v4 = vadd.f32 %v4949_v1, %v4948_v60  ;;  %v4852_v61 = vpop.f32.mrb[53].mxu1  ;;  %v5649_v1 = vld [vmem:[#allocation8 + $0x10] sm:$0xff]  }
 0x2e2   : > { %v4853_v47 = vadd.f32 %v4852_v61, %v4851_v14  ;;  %v4854_v27 = vpop.f32.mrb[54].mxu1  ;;  %5409 = vmatprep.subr.bf16.mxu0 %v5649_v1 }
 0x2e3   : > { %v4855_v25 = vpop.f32.mrb[55].mxu1  ;;  %5410 = vmatpush3.bf16.msra.mxu0 %v5649_v1 }
 0x2e4   : > { %v7638_v3 = vadd.f32 %v7530_v45, %v4853_v47  ;;  %v4856_v18 = vadd.f32 %v4855_v25, %v4854_v27  ;;  %5411 = vmatprep.subr.bf16.mxu0 %v5650_v8 }
 0x2e5   : > { %v4951_v37 = vpop.f32.mrb[60].mxu0  ;;  %4521 = vmatmul.mubr.msk.bf16.gmra.mrb[160].mxu1 %vm8657_vm11, %v7113_v22 }
 0x2e6   : > { %v4952_v10 = vpop.f32.mrb[61].mxu0  ;;  %v7646_v2 = vadd.f32 %v7539_v19, %v4856_v18  ;;  %3095 = vmatprep.mubr.bf16.mxu1 %v7100_v36 }
 0x2e7   : > { %v7643_v9 = vadd.f32 %v4952_v10, %v4951_v37  ;;  %v4954_v33 = vpop.f32.mrb[62].mxu0  ;;  %5412 = vmatpush3.bf16.msra.mxu0 %v5650_v8 }
 0x2e8   : > { %v4955_v6 = vpop.f32.mrb[63].mxu0  ;;  %v4857_v45 = vpop.f32.mrb[56].mxu1 }
 0x2e9   : > { %v7649_v60 = vadd.f32 %v4955_v6, %v4954_v33  ;;  %v4858_v59 = vpop.f32.mrb[57].mxu1 }
 0x2ea   : > { %v4859_v14 = vadd.f32 %v4858_v59, %v4857_v45  ;;  %v4860_v61 = vpop.f32.mrb[58].mxu1 }
 0x2eb   : > { %v4861_v22 = vpop.f32.mrb[59].mxu1 }
 0x2ec   : > { %v7652_v27 = vadd.f32 %v4859_v14, %v7553_v30  ;;  %v4862_v19 = vadd.f32 %v4861_v22, %v4860_v61  ;;  %v5651_v14 = vld [vmem:[#allocation8 + $0x20] sm:$0xff]  }
 0x2ed   : > { %v4957_v47 = vpop.f32.mrb[64].mxu0  ;;  %4524 = vmatmul.mubr.msk.bf16.gmra.mrb[164].mxu1 %vm8658_vm10, %v7143_v46  ;;  %5413 = vmatprep.subr.bf16.mxu0 %v5651_v14 }
 0x2ee   : > { %v4958_v36 = vpop.f32.mrb[65].mxu0  ;;  %v7660_v37 = vadd.f32 %v4862_v19, %v7563_v49  ;;  %3103 = vmatprep.mubr.bf16.mxu1 %v7138_v28  ;;  %5414 = vmatpush3.bf16.msra.mxu0 %v5651_v14  ;;  %v5652_v19 = vld [vmem:[#allocation8 + $0x28] sm:$0xff]  }
 0x2ef   : > { %v7657_v42 = vadd.f32 %v4958_v36, %v4957_v47  ;;  %v4960_v25 = vpop.f32.mrb[66].mxu0  ;;  %v5653_v36 = vld [vmem:[#allocation8 + $0x30] sm:$0xff]   ;;  %5415 = vmatprep.subr.bf16.mxu0 %v5652_v19 }
 0x2f0   : > { %v4961_v18 = vpop.f32.mrb[67].mxu0  ;;  %v4863_v30 = vpop.f32.mrb[60].mxu1 }
 0x2f1   : > { %v7663_v10 = vadd.f32 %v4961_v18, %v4960_v25  ;;  %v4864_v33 = vpop.f32.mrb[61].mxu1 }
 0x2f2   : > { %v4865_v6 = vadd.f32 %v4864_v33, %v4863_v30  ;;  %v4866_v45 = vpop.f32.mrb[62].mxu1  ;;  %5416 = vmatpush3.bf16.msra.mxu0 %v5652_v19 }
 0x2f3   : > { %v4867_v1 = vpop.f32.mrb[63].mxu1  ;;  %5417 = vmatprep.subr.bf16.mxu0 %v5653_v36 }
 0x2f4   : > { %v7666_v46 = vadd.f32 %v7549_v20, %v4865_v6  ;;  %v4868_v58 = vadd.f32 %v4867_v1, %v4866_v45 }
 0x2f5   : > { %v4963_v59 = vpop.f32.mrb[68].mxu0  ;;  %4527 = vmatmul.mubr.msk.bf16.gmra.mrb[168].mxu1 %vm8659_vm0, %v7156_v16 }
 0x2f6   : > { %v4964_v61 = vpop.f32.mrb[69].mxu0  ;;  %v7674_v8 = vadd.f32 %v7558_v0, %v4868_v58  ;;  %3111 = vmatprep.mubr.bf16.mxu1 %v7151_v48  ;;  %v5654_v48 = vld [vmem:[#allocation8 + $0x38] sm:$0xff]   ;;  %5418 = vmatpush3.bf16.msra.mxu0 %v5653_v36 }
 0x2f7   : > { %v7671_v28 = vadd.f32 %v4964_v61, %v4963_v59  ;;  %v4966_v49 = vpop.f32.mrb[70].mxu0  ;;  %5419 = vmatprep.subr.bf16.mxu0 %v5654_v48 }
 0x2f8   : > { %v4967_v22 = vpop.f32.mrb[71].mxu0  ;;  %v4869_v47 = vpop.f32.mrb[64].mxu1 }
 0x2f9   : > { %v7677_v20 = vadd.f32 %v4967_v22, %v4966_v49  ;;  %v4870_v25 = vpop.f32.mrb[65].mxu1 }
 0x2fa   : > { %v4871_v18 = vadd.f32 %v4870_v25, %v4869_v47  ;;  %v4872_v50 = vpop.f32.mrb[66].mxu1  ;;  %5420 = vmatpush3.bf16.msra.mxu0 %v5654_v48 }
 0x2fb   : > { %v4873_v16 = vpop.f32.mrb[67].mxu1 }
 0x2fc   : > { %v7680_v0 = vadd.f32 %v4871_v18, %v7569_v29  ;;  %v4874_v33 = vadd.f32 %v4873_v16, %v4872_v50 }
 0x2fd   : > { %v4969_v30 = vpop.f32.mrb[72].mxu0  ;;  %4530 = vmatmul.mubr.msk.bf16.gmra.mrb[172].mxu1 %vm8660_vm4, %v7175_v63 }
 0x2fe   : > { %v4970_v6 = vpop.f32.mrb[73].mxu0  ;;  %v7688_v59 = vadd.f32 %v4874_v33, %v7579_v44 }
 0x2ff   : > { %v7685_v45 = vadd.f32 %v4970_v6, %v4969_v30  ;;  %v4972_v1 = vpop.f32.mrb[74].mxu0 }
 0x300   : > { %v4973_v58 = vpop.f32.mrb[75].mxu0  ;;  %v4875_v29 = vpop.f32.mrb[68].mxu1 }
 0x301   : > { %v7690_v14 = vadd.f32 %v4973_v58, %v4972_v1  ;;  %v4876_v61 = vpop.f32.mrb[69].mxu1 }
 0x302   : > { %v4877_v49 = vadd.f32 %v4876_v61, %v4875_v29  ;;  %v4878_v22 = vpop.f32.mrb[70].mxu1 }
 0x303   : > { %v4879_v47 = vpop.f32.mrb[71].mxu1 }
 0x304   : > { %v7693_v63 = vadd.f32 %v7565_v17, %v4877_v49  ;;  %v4880_v51 = vadd.f32 %v4879_v47, %v4878_v22 }
 0x305   : > { %v4975_v19 = vpop.f32.mrb[76].mxu0 }
 0x306   : > { %v4976_v25 = vpop.f32.mrb[77].mxu0  ;;  %v7698_v36 = vadd.f32 %v7574_v13, %v4880_v51 }
 0x307   : > { %v7695_v18 = vadd.f32 %v4976_v25, %v4975_v19  ;;  %v4978_v44 = vpop.f32.mrb[78].mxu0 }
 0x308   : > { %8661 = vst [vmem:[#allocation23_spill] sm:$0xff] %v7698_v36  ;;  %v4979_v50 = vpop.f32.mrb[79].mxu0  ;;  %v4881_v30 = vpop.f32.mrb[72].mxu1 }
 0x309   : > { %v7700_v16 = vadd.f32 %v4979_v50, %v4978_v44  ;;  %v4882_v33 = vpop.f32.mrb[73].mxu1 }
 0x30a   : > { %v4883_v6 = vadd.f32 %v4882_v33, %v4881_v30  ;;  %v4884_v1 = vpop.f32.mrb[74].mxu1 }
 0x30b   : > { %v4885_v48 = vpop.f32.mrb[75].mxu1 }
 0x30c   : > { %v7703_v17 = vadd.f32 %v4883_v6, %v7584_v38  ;;  %v4886_v29 = vadd.f32 %v4885_v48, %v4884_v1 }
 0x30d   : > { %v4981_v58 = vpop.f32.mrb[80].mxu0 }
 0x30e   : > { %v4982_v61 = vpop.f32.mrb[81].mxu0  ;;  %v7708_v13 = vadd.f32 %v4886_v29, %v7593_v54 }
 0x30f   : > { %v7705_v49 = vadd.f32 %v4982_v61, %v4981_v58  ;;  %v4984_v22 = vpop.f32.mrb[82].mxu0 }
 0x310   : > { %v4985_v47 = vpop.f32.mrb[83].mxu0  ;;  %v4887_v51 = vpop.f32.mrb[76].mxu1 }
 0x311   : > { %v7710_v19 = vadd.f32 %v4985_v47, %v4984_v22  ;;  %v4888_v25 = vpop.f32.mrb[77].mxu1 }
 0x312   : > { %v4890_v44 = vpop.f32.mrb[78].mxu1 }
 0x313   : > { %v4891_v50 = vpop.f32.mrb[79].mxu1 }
 0x315   : > { %v4987_v30 = vpop.f32.mrb[84].mxu0 }
 0x316   : > { %v4988_v33 = vpop.f32.mrb[85].mxu0 }
 0x317   : > { %v7712_v36 = vadd.f32 %v4988_v33, %v4987_v30  ;;  %v4990_v38 = vpop.f32.mrb[86].mxu0 }
 0x318   : > { %v4991_v6 = vpop.f32.mrb[87].mxu0  ;;  %v5327_v48 = vpop.f32.mrb[80].mxu1 }
 0x319   : > { %v7714_v1 = vadd.f32 %v4991_v6, %v4990_v38  ;;  %v2616_v58 = vadd.f32 %v5327_v48, %v7615_v34  ;;  %v2607_v54 = vpop.f32.mrb[81].mxu1 }
 0x31a   : > { %v7718_v29 = vadd.f32 %v7601_v21, %v2607_v54  ;;  %v5328_v61 = vpop.f32.mrb[82].mxu1 }
 0x31b   : > { %v7721_v22 = vadd.f32 %v2616_v58, %v7490_v55  ;;  %v2619_v47 = vadd.f32 %v5328_v61, %v7621_v41  ;;  %v2610_v51 = vpop.f32.mrb[83].mxu1 }
 0x31c   : > { %v7725_v44 = vadd.f32 %v7607_v5, %v2610_v51 }
 0x31d   : > { %v4993_v25 = vpop.f32.mrb[88].mxu0  ;;  %v7728_v30 = vadd.f32 %v2619_v47, %v7497_v7 }
 0x31e   : > { %v4994_v50 = vpop.f32.mrb[89].mxu0 }
 0x31f   : > { %v7730_v34 = vadd.f32 %v4994_v50, %v4993_v25  ;;  %v4996_v33 = vpop.f32.mrb[90].mxu0 }
 0x320   : > { %v4997_v21 = vpop.f32.mrb[91].mxu0  ;;  %v5331_v6 = vpop.f32.mrb[84].mxu1 }
 0x321   : > { %v7732_v38 = vadd.f32 %v4997_v21, %v4996_v33  ;;  %v2632_v55 = vadd.f32 %v5331_v6, %v7643_v9  ;;  %v2623_v48 = vpop.f32.mrb[85].mxu1 }
 0x322   : > { %v2624_v41 = vadd.f32 %v7629_v15, %v2623_v48  ;;  %v5332_v58 = vpop.f32.mrb[86].mxu1 }
 0x323   : > { %v7737_v5 = vadd.f32 %v2632_v55, %v7532_v11  ;;  %v2635_v54 = vadd.f32 %v5332_v58, %v7649_v60  ;;  %v2626_v7 = vpop.f32.mrb[87].mxu1 }
 0x324   : > { %v7741_v47 = vadd.f32 %v2624_v41, %v7510_v31  ;;  %v2627_v51 = vadd.f32 %v7635_v4, %v2626_v7 }
 0x325   : > { %v4999_v61 = vpop.f32.mrb[92].mxu0  ;;  %v7745_v50 = vadd.f32 %v2635_v54, %v7541_v32 }
 0x326   : > { %v5000_v25 = vpop.f32.mrb[93].mxu0  ;;  %v7748_v15 = vadd.f32 %v2627_v51, %v7519_v43 }
 0x327   : > { %v5001_v9 = vadd.f32 %v5000_v25, %v4999_v61  ;;  %v5002_v33 = vpop.f32.mrb[94].mxu0 }
 0x328   : > { %v5003_v11 = vpop.f32.mrb[95].mxu0  ;;  %v5335_v6 = vpop.f32.mrb[88].mxu1 }
 0x329   : > { %v5004_v21 = vadd.f32 %v5003_v11, %v5002_v33  ;;  %v2648_v60 = vadd.f32 %v5335_v6, %v7671_v28  ;;  %v2639_v55 = vpop.f32.mrb[89].mxu1 }
 0x32a   : > { %v2640_v31 = vadd.f32 %v7657_v42, %v2639_v55  ;;  %v5336_v48 = vpop.f32.mrb[90].mxu1 }
 0x32b   : > { %v7753_v4 = vadd.f32 %v2648_v60, %v7567_v12  ;;  %v2651_v32 = vadd.f32 %v5336_v48, %v7677_v20  ;;  %v2642_v41 = vpop.f32.mrb[91].mxu1 }
 0x32c   : > { %v7757_v54 = vadd.f32 %v2640_v31, %v7551_v35  ;;  %v2643_v43 = vadd.f32 %v7663_v10, %v2642_v41 }
 0x32d   : > { %v5005_v58 = vpop.f32.mrb[96].mxu0  ;;  %v7761_v61 = vadd.f32 %v2651_v32, %v7576_v23 }
 0x32e   : > { %v5006_v7 = vpop.f32.mrb[97].mxu0  ;;  %v7764_v42 = vadd.f32 %v2643_v43, %v7560_v26 }
 0x32f   : > { %v5007_v28 = vadd.f32 %v5006_v7, %v5005_v58  ;;  %v5008_v51 = vpop.f32.mrb[98].mxu0 }
 0x330   : > { %v5009_v12 = vpop.f32.mrb[99].mxu0  ;;  %v5339_v20 = vpop.f32.mrb[92].mxu1 }
 0x331   : > { %v7766_v25 = vadd.f32 %v5009_v12, %v5008_v51  ;;  %v2664_v33 = vadd.f32 %v5339_v20, %v7695_v18  ;;  %v2655_v11 = vpop.f32.mrb[93].mxu1 }
 0x332   : > { %v2656_v35 = vadd.f32 %v7685_v45, %v2655_v11  ;;  %v5340_v6 = vpop.f32.mrb[94].mxu1 }
 0x333   : > { %v7771_v10 = vadd.f32 %v2664_v33, %v7596_v53  ;;  %v2667_v23 = vadd.f32 %v5340_v6, %v7700_v16  ;;  %v2658_v60 = vpop.f32.mrb[95].mxu1 }
 0x334   : > { %v7775_v26 = vadd.f32 %v2656_v35, %v7582_v40  ;;  %v2659_v31 = vadd.f32 %v7690_v14, %v2658_v60 }
 0x335   : > { %v5011_v55 = vpop.f32.mrb[100].mxu0  ;;  %v7779_v32 = vadd.f32 %v2667_v23, %v7604_v56 }
 0x336   : > { %v5012_v48 = vpop.f32.mrb[101].mxu0  ;;  %v7782_v45 = vadd.f32 %v2659_v31, %v7590_v62 }
 0x337   : > { %v5013_v18 = vadd.f32 %v5012_v48, %v5011_v55  ;;  %v5014_v41 = vpop.f32.mrb[102].mxu0 }
 0x338   : > { %v5015_v53 = vpop.f32.mrb[103].mxu0  ;;  %v5343_v43 = vpop.f32.mrb[96].mxu1 }
 0x339   : > { %v5016_v58 = vadd.f32 %v5015_v53, %v5014_v41  ;;  %v2680_v16 = vadd.f32 %v5343_v43, %v7712_v36  ;;  %v2671_v7 = vpop.f32.mrb[97].mxu1 }
 0x33a   : > { %v2672_v40 = vadd.f32 %v7705_v49, %v2671_v7  ;;  %v5344_v51 = vpop.f32.mrb[98].mxu1 }
 0x33b   : > { %v7787_v14 = vadd.f32 %v2680_v16, %v7624_v57  ;;  %v2683_v56 = vadd.f32 %v5344_v51, %v7714_v1  ;;  %v2674_v12 = vpop.f32.mrb[99].mxu1 }
 0x33c   : > { %v7791_v33 = vadd.f32 %v2672_v40, %v7610_v39  ;;  %v2675_v62 = vadd.f32 %v7710_v19, %v2674_v12 }
 0x33d   : > { %v5017_v20 = vpop.f32.mrb[104].mxu0  ;;  %v7795_v35 = vadd.f32 %v2683_v56, %v7632_v52 }
 0x33e   : > { %v5018_v11 = vpop.f32.mrb[105].mxu0  ;;  %v7798_v49 = vadd.f32 %v2675_v62, %v7618_v24 }
 0x33f   : > { %v5019_v36 = vadd.f32 %v5018_v11, %v5017_v20  ;;  %v5020_v6 = vpop.f32.mrb[106].mxu0 }
 0x340   : > { %v5021_v57 = vpop.f32.mrb[107].mxu0  ;;  %v5347_v60 = vpop.f32.mrb[100].mxu1 }
 0x341   : > { %v5022_v23 = vadd.f32 %v5021_v57, %v5020_v6  ;;  %v2696_v1 = vadd.f32 %v5347_v60, %v5001_v9  ;;  %v2687_v55 = vpop.f32.mrb[101].mxu1 }
 0x342   : > { %v2688_v31 = vadd.f32 %v7730_v34, %v2687_v55  ;;  %v5348_v39 = vpop.f32.mrb[102].mxu1 }
 0x343   : > { %v7802_v48 = vadd.f32 %v2696_v1, %v7652_v27  ;;  %v2699_v19 = vadd.f32 %v5348_v39, %v5004_v21  ;;  %v2690_v41 = vpop.f32.mrb[103].mxu1 }
 0x344   : > { %v7805_v53 = vadd.f32 %v2688_v31, %v7638_v3  ;;  %v2691_v24 = vadd.f32 %v7732_v38, %v2690_v41 }
 0x345   : > { %v5023_v52 = vpop.f32.mrb[108].mxu0  ;;  %v7809_v16 = vadd.f32 %v2699_v19, %v7660_v37 }
 0x346   : > { %v5024_v43 = vpop.f32.mrb[109].mxu0  ;;  %v7812_v34 = vadd.f32 %v2691_v24, %v7646_v2 }
 0x347   : > { %v5025_v9 = vadd.f32 %v5024_v43, %v5023_v52  ;;  %v5026_v7 = vpop.f32.mrb[110].mxu0  ;;  %v7841_v52 = vld [vmem:[%s8187_s6] ss:$0 sm:$0xff] }
 0x348   : > { %v5027_v40 = vpop.f32.mrb[111].mxu0  ;;  %v5351_v51 = vpop.f32.mrb[104].mxu1 }
 0x349   : > { %v5028_v27 = vadd.f32 %v5027_v40, %v5026_v7  ;;  %v2712_v21 = vadd.f32 %v5351_v51, %v5013_v18  ;;  %v2703_v56 = vpop.f32.mrb[105].mxu1 }
 0x34a   : > { %v2704_v12 = vadd.f32 %v5007_v28, %v2703_v56  ;;  %v5352_v20 = vpop.f32.mrb[106].mxu1 }
 0x34b   : > { %v7815_v3 = vadd.f32 %v2712_v21, %v7680_v0  ;;  %v2715_v38 = vadd.f32 %v5352_v20, %v5016_v58  ;;  %v2706_v62 = vpop.f32.mrb[107].mxu1  ;;  %v7830_v58 = vld [vmem:[%s8186_s5] ss:$0 sm:$0xff] }
 0x34c   : > { %v7818_v37 = vadd.f32 %v2704_v12, %v7666_v46  ;;  %v2707_v6 = vadd.f32 %v7766_v25, %v2706_v62 }
 0x34d   : > { %v5375_v11 = vpop.f32.mrb[112].mxu0  ;;  %v7822_v57 = vadd.f32 %v2715_v38, %v7688_v59 }
 0x34e   : > { %v3154_v2 = vpop.f32.mrb[113].mxu0  ;;  %v7825_v18 = vadd.f32 %v2707_v6, %v7674_v8 }
 0x34f   : > { %v5376_v60 = vpop.f32.mrb[114].mxu0 }
 0x350   : > { %v3157_v28 = vpop.f32.mrb[115].mxu0  ;;  %v5355_v1 = vpop.f32.mrb[108].mxu1 }
 0x351   : > { %v2728_v0 = vadd.f32 %v5355_v1, %v5025_v9  ;;  %v2719_v55 = vpop.f32.mrb[109].mxu1 }
 0x352   : > { %v2720_v46 = vadd.f32 %v5019_v36, %v2719_v55  ;;  %v5356_v31 = vpop.f32.mrb[110].mxu1 }
 0x353   : > { %v2764_v25 = vadd.f32 %v2728_v0, %v7703_v17  ;;  %v2731_v39 = vadd.f32 %v5356_v31, %v5028_v27  ;;  %v2722_v59 = vpop.f32.mrb[111].mxu1  ;;  %v8662_v17 = vld [vmem:[#allocation23_spill] sm:$0xff] }
 0x354   : > { %v7836_v8 = vadd.f32 %v2720_v46, %v7693_v63  ;;  %v2723_v41 = vadd.f32 %v5022_v23, %v2722_v59 }
 0x355   : > { %v7833_v19 = vpop.f32.mrb[116].mxu0  ;;  %v3414_v24 = vmul.f32 %v7830_v58, %v2764_v25  ;;  %v2765_v36 = vadd.f32 %v2731_v39, %v7708_v13 }
 0x356   : > { %v3170_v43 = vpop.f32.mrb[117].mxu0  ;;  %v7848_v7 = vadd.f32 %v2723_v41, %v8662_v17 }
 0x357   : > { %v7845_v9 = vpop.f32.mrb[118].mxu0  ;;  %v3415_v40 = vmul.f32 %v7830_v58, %v2765_v36  ;;  %v3453_v23 = vadd.f32 %v7841_v52, %v3414_v24 }
 0x358   : > { %v3173_v63 = vpop.f32.mrb[119].mxu0  ;;  %v5069_v27 = vpop.f32.mrb[112].mxu1 }
 0x359   : > { %v5070_v51 = vpop.f32.mrb[113].mxu1  ;;  %v3454_v21 = vadd.f32 %v7841_v52, %v3415_v40  ;;  %v3485_v20 = vmax.f32 %v3453_v23, 0.0 }
 0x35a   : > { %v5072_v56 = vpop.f32.mrb[114].mxu1 }
 0x35b   : > { %v5073_v12 = vpop.f32.mrb[115].mxu1  ;;  %v3486_v38 = vmax.f32 %v3454_v21, 0.0 }
 0x35d   : > { %v7853_v62 = vpop.f32.mrb[120].mxu0  ;;  %v7857_v6 = vpack.c.bf16 %v3486_v38, %v3485_v20 }
 0x35e   : > { %v7855_v13 = vpop.f32.mrb[121].mxu0 }
 0x35f   : > { %v7859_v2 = vpop.f32.mrb[122].mxu0 }
 0x360   : > { %v7861_v28 = vpop.f32.mrb[123].mxu0  ;;  %v5075_v1 = vpop.f32.mrb[116].mxu1 }
 0x361   : > { %v5076_v0 = vpop.f32.mrb[117].mxu1 }
 0x362   : > { %v5077_v55 = vadd.f32 %v5076_v0, %v5075_v1  ;;  %v5078_v46 = vpop.f32.mrb[118].mxu1 }
 0x363   : > { %v5079_v31 = vpop.f32.mrb[119].mxu1 }
 0x364   : > { %v3163_v39 = vadd.f32 %v5375_v11, %v5077_v55  ;;  %v5080_v59 = vadd.f32 %v5079_v31, %v5078_v46 }
 0x365   : > { %v7863_v25 = vpop.f32.mrb[124].mxu0 }
 0x366   : > { %v7865_v41 = vpop.f32.mrb[125].mxu0  ;;  %v3345_v24 = vadd.f32 %v3163_v39, %v7718_v29  ;;  %v3166_v17 = vadd.f32 %v5376_v60, %v5080_v59 }
 0x367   : > { %v7868_v36 = vpop.f32.mrb[126].mxu0 }
 0x368   : > { %v7870_v40 = vpop.f32.mrb[127].mxu0  ;;  %v3384_v23 = vmul.f32 %v7830_v58, %v3345_v24  ;;  %v3346_v27 = vadd.f32 %v3166_v17, %v7725_v44  ;;  %v5081_v51 = vpop.f32.mrb[120].mxu1 }
 0x369   : > { %v5082_v21 = vpop.f32.mrb[121].mxu1 }
 0x36a   : > { %v3385_v56 = vmul.f32 %v7830_v58, %v3346_v27  ;;  %v5083_v12 = vadd.f32 %v5082_v21, %v5081_v51  ;;  %v5084_v11 = vpop.f32.mrb[122].mxu1  ;;  %v3423_v20 = vadd.f32 %v7841_v52, %v3384_v23 }
 0x36b   : > { %v5085_v38 = vpop.f32.mrb[123].mxu1 }
 0x36c   : > { %v3171_v29 = vadd.f32 %v5083_v12, %v3170_v43  ;;  %v5086_v0 = vadd.f32 %v5085_v38, %v5084_v11  ;;  %v3424_v60 = vadd.f32 %v7841_v52, %v3385_v56  ;;  %v3455_v39 = vmax.f32 %v3423_v20, 0.0 }
 0x36d   : > { %v7876_v1 = vpop.f32.mrb[128].mxu0 }
 0x36e   : > { %v7879_v55 = vpop.f32.mrb[129].mxu0  ;;  %v3347_v46 = vadd.f32 %v3171_v29, %v7721_v22  ;;  %v3174_v31 = vadd.f32 %v5086_v0, %v3173_v63  ;;  %v3456_v59 = vmax.f32 %v3424_v60, 0.0 }
 0x36f   : > { %v7882_v44 = vpop.f32.mrb[130].mxu0 }
 0x370   : > { %v7884_v24 = vpop.f32.mrb[131].mxu0  ;;  %v3386_v17 = vmul.f32 %v7830_v58, %v3347_v46  ;;  %v3348_v23 = vadd.f32 %v3174_v31, %v7728_v30  ;;  %v5087_v27 = vpop.f32.mrb[124].mxu1  ;;  %v3487_v43 = vpack.c.bf16 %v3456_v59, %v3455_v39 }
 0x371   : > { %v5088_v51 = vpop.f32.mrb[125].mxu1 }
 0x372   : > { %v3425_v21 = vadd.f32 %v7841_v52, %v3386_v17  ;;  %v3387_v56 = vmul.f32 %v7830_v58, %v3348_v23  ;;  %v5089_v12 = vadd.f32 %v5088_v51, %v5087_v27  ;;  %v5090_v22 = vpop.f32.mrb[126].mxu1  ;;  %5421 = vmatprep.mubr.bf16.mxu0 %v3487_v43 }
 0x373   : > { %v5091_v11 = vpop.f32.mrb[127].mxu1 }
 0x374   : > { %v3426_v63 = vadd.f32 %v7841_v52, %v3387_v56  ;;  %v3179_v38 = vadd.f32 %v7833_v19, %v5089_v12  ;;  %v5092_v29 = vadd.f32 %v5091_v11, %v5090_v22  ;;  %v3457_v30 = vmax.f32 %v3425_v21, 0.0 }
 0x375   : > { %v7891_v20 = vpop.f32.mrb[132].mxu0 }
 0x376   : > { %v7894_v0 = vpop.f32.mrb[133].mxu0  ;;  %v3458_v60 = vmax.f32 %v3426_v63, 0.0  ;;  %v3349_v46 = vadd.f32 %v3179_v38, %v7741_v47  ;;  %v3182_v39 = vadd.f32 %v7845_v9, %v5092_v29 }
 0x377   : > { %v7897_v31 = vpop.f32.mrb[134].mxu0 }
 0x378   : > { %v7900_v59 = vpop.f32.mrb[135].mxu0  ;;  %v3488_v17 = vpack.c.bf16 %v3458_v60, %v3457_v30  ;;  %v3388_v23 = vmul.f32 %v7830_v58, %v3349_v46  ;;  %v3350_v27 = vadd.f32 %v3182_v39, %v7748_v15  ;;  %v5093_v43 = vpop.f32.mrb[128].mxu1 }
 0x379   : > { %v5094_v19 = vpop.f32.mrb[129].mxu1 }
 0x37a   : > { %v3389_v51 = vmul.f32 %v7830_v58, %v3350_v27  ;;  %v5095_v56 = vadd.f32 %v5094_v19, %v5093_v43  ;;  %v5096_v21 = vpop.f32.mrb[130].mxu1  ;;  %5422 = vmatmul.mubr.bf16.vlgmr.msra.gmra.mrb[144].mxu0 %v3488_v17  ;;  %v3427_v47 = vadd.f32 %v7841_v52, %v3388_v23 }
 0x37b   : > { %v5097_v12 = vpop.f32.mrb[131].mxu1 }
 0x37c   : > { %v3187_v9 = vadd.f32 %v5095_v56, %v7855_v13  ;;  %v5098_v11 = vadd.f32 %v5097_v12, %v5096_v21  ;;  %v3428_v63 = vadd.f32 %v7841_v52, %v3389_v51  ;;  %v3459_v60 = vmax.f32 %v3427_v47, 0.0 }
 0x37d   : > { %v7906_v22 = vpop.f32.mrb[136].mxu0 }
 0x37e   : > { %v7910_v38 = vpop.f32.mrb[137].mxu0  ;;  %v3351_v15 = vadd.f32 %v3187_v9, %v7737_v5  ;;  %v3190_v30 = vadd.f32 %v5098_v11, %v7861_v28  ;;  %v3460_v46 = vmax.f32 %v3428_v63, 0.0 }
 0x37f   : > { %v7913_v29 = vpop.f32.mrb[138].mxu0 }
 0x380   : > { %v7916_v39 = vpop.f32.mrb[139].mxu0  ;;  %v3390_v17 = vmul.f32 %v7830_v58, %v3351_v15  ;;  %v3352_v23 = vadd.f32 %v3190_v30, %v7745_v50  ;;  %v5099_v13 = vpop.f32.mrb[132].mxu1  ;;  %v3489_v27 = vpack.c.bf16 %v3460_v46, %v3459_v60 }
 0x381   : > { %v5100_v43 = vpop.f32.mrb[133].mxu1 }
 0x382   : > { %v3391_v19 = vmul.f32 %v7830_v58, %v3352_v23  ;;  %v5101_v51 = vadd.f32 %v5100_v43, %v5099_v13  ;;  %v5102_v56 = vpop.f32.mrb[134].mxu1  ;;  %5425 = vmatprep.mubr.bf16.mxu0 %v3489_v27  ;;  %v3429_v5 = vadd.f32 %v7841_v52, %v3390_v17 }
 0x383   : > { %v5103_v21 = vpop.f32.mrb[135].mxu1 }
 0x384   : > { %v3195_v47 = vadd.f32 %v7853_v62, %v5101_v51  ;;  %v5104_v12 = vadd.f32 %v5103_v21, %v5102_v56  ;;  %v3430_v9 = vadd.f32 %v7841_v52, %v3391_v19  ;;  %v3461_v30 = vmax.f32 %v3429_v5, 0.0 }
 0x385   : > { %v7922_v28 = vpop.f32.mrb[140].mxu0 }
 0x386   : > { %v7926_v11 = vpop.f32.mrb[141].mxu0  ;;  %v3353_v50 = vadd.f32 %v3195_v47, %v7757_v54  ;;  %v3198_v15 = vadd.f32 %v7859_v2, %v5104_v12  ;;  %v3462_v60 = vmax.f32 %v3430_v9, 0.0 }
 0x387   : > { %v7929_v63 = vpop.f32.mrb[142].mxu0 }
 0x388   : > { %v7932_v46 = vpop.f32.mrb[143].mxu0  ;;  %v3392_v17 = vmul.f32 %v7830_v58, %v3353_v50  ;;  %v3354_v23 = vadd.f32 %v3198_v15, %v7764_v42  ;;  %v5105_v62 = vpop.f32.mrb[136].mxu1  ;;  %v3490_v13 = vpack.c.bf16 %v3462_v60, %v3461_v30 }
 0x389   : > { %v5106_v27 = vpop.f32.mrb[137].mxu1 }
 0x38a   : > { %v3393_v43 = vmul.f32 %v7830_v58, %v3354_v23  ;;  %v5107_v19 = vadd.f32 %v5106_v27, %v5105_v62  ;;  %v5108_v51 = vpop.f32.mrb[138].mxu1  ;;  %5426 = vmatmul.mubr.bf16.gmra.mrb[148].mxu0 %v3490_v13  ;;  %v3431_v54 = vadd.f32 %v7841_v52, %v3392_v17 }
 0x38b   : > { %v5109_v56 = vpop.f32.mrb[139].mxu1 }
 0x38c   : > { %v3203_v2 = vadd.f32 %v5107_v19, %v7865_v41  ;;  %v5110_v5 = vadd.f32 %v5109_v56, %v5108_v51  ;;  %v3432_v21 = vadd.f32 %v7841_v52, %v3393_v43  ;;  %v3463_v12 = vmax.f32 %v3431_v54, 0.0 }
 0x38e   : > { %v3355_v47 = vadd.f32 %v3203_v2, %v7753_v4  ;;  %v3206_v42 = vadd.f32 %v5110_v5, %v7870_v40  ;;  %v3464_v9 = vmax.f32 %v3432_v21, 0.0 }
 0x390   : > { %v3394_v50 = vmul.f32 %v7830_v58, %v3355_v47  ;;  %v3356_v15 = vadd.f32 %v3206_v42, %v7761_v61  ;;  %v5111_v30 = vpop.f32.mrb[140].mxu1  ;;  %v3491_v60 = vpack.c.bf16 %v3464_v9, %v3463_v12 }
 0x391   : > { %v5112_v23 = vpop.f32.mrb[141].mxu1 }
 0x392   : > { %v3395_v17 = vmul.f32 %v7830_v58, %v3356_v15  ;;  %v5113_v62 = vadd.f32 %v5112_v23, %v5111_v30  ;;  %v5114_v41 = vpop.f32.mrb[142].mxu1  ;;  %5429 = vmatprep.mubr.bf16.mxu0 %v3491_v60  ;;  %v3433_v13 = vadd.f32 %v7841_v52, %v3394_v50 }
 0x393   : > { %v5115_v27 = vpop.f32.mrb[143].mxu1 }
 0x394   : > { %v3211_v4 = vadd.f32 %v7863_v25, %v5113_v62  ;;  %v5116_v40 = vadd.f32 %v5115_v27, %v5114_v41  ;;  %v3434_v43 = vadd.f32 %v7841_v52, %v3395_v17  ;;  %v3465_v51 = vmax.f32 %v3433_v13, 0.0 }
 0x396   : > { %v3357_v19 = vadd.f32 %v3211_v4, %v7775_v26  ;;  %v3214_v61 = vadd.f32 %v7868_v36, %v5116_v40  ;;  %v3466_v54 = vmax.f32 %v3434_v43, 0.0 }
 0x398   : > { %v3396_v56 = vmul.f32 %v7830_v58, %v3357_v19  ;;  %v3358_v2 = vadd.f32 %v3214_v61, %v7782_v45  ;;  %v5117_v5 = vpop.f32.mrb[144].mxu1  ;;  %v3492_v21 = vpack.c.bf16 %v3466_v54, %v3465_v51 }
 0x399   : > { %v5118_v47 = vpop.f32.mrb[145].mxu1 }
 0x39a   : > { %v3397_v42 = vmul.f32 %v7830_v58, %v3358_v2  ;;  %v5119_v12 = vadd.f32 %v5118_v47, %v5117_v5  ;;  %v5120_v25 = vpop.f32.mrb[146].mxu1  ;;  %5430 = vmatmul.mubr.bf16.gmra.mrb[152].mxu0 %v3492_v21  ;;  %v3435_v9 = vadd.f32 %v7841_v52, %v3396_v56 }
 0x39b   : > { %v5121_v50 = vpop.f32.mrb[147].mxu1 }
 0x39c   : > { %v3219_v26 = vadd.f32 %v5119_v12, %v7879_v55  ;;  %v5122_v36 = vadd.f32 %v5121_v50, %v5120_v25  ;;  %v3436_v15 = vadd.f32 %v7841_v52, %v3397_v42  ;;  %v3467_v60 = vmax.f32 %v3435_v9, 0.0 }
 0x39e   : > { %v3359_v30 = vadd.f32 %v3219_v26, %v7771_v10  ;;  %v3222_v45 = vadd.f32 %v5122_v36, %v7884_v24  ;;  %v3468_v23 = vmax.f32 %v3436_v15, 0.0 }
 0x3a0   : > { %v3398_v17 = vmul.f32 %v7830_v58, %v3359_v30  ;;  %v3360_v62 = vadd.f32 %v3222_v45, %v7779_v32  ;;  %v5123_v41 = vpop.f32.mrb[148].mxu1  ;;  %v3493_v13 = vpack.c.bf16 %v3468_v23, %v3467_v60 }
 0x3a1   : > { %v5124_v27 = vpop.f32.mrb[149].mxu1 }
 0x3a2   : > { %v3399_v4 = vmul.f32 %v7830_v58, %v3360_v62  ;;  %v5125_v40 = vadd.f32 %v5124_v27, %v5123_v41  ;;  %v5126_v55 = vpop.f32.mrb[150].mxu1  ;;  %5433 = vmatprep.mubr.bf16.mxu0 %v3493_v13  ;;  %v3437_v43 = vadd.f32 %v7841_v52, %v3398_v17 }
 0x3a3   : > { %v5127_v19 = vpop.f32.mrb[151].mxu1 }
 0x3a4   : > { %v3227_v10 = vadd.f32 %v7876_v1, %v5125_v40  ;;  %v5128_v24 = vadd.f32 %v5127_v19, %v5126_v55  ;;  %v3438_v61 = vadd.f32 %v7841_v52, %v3399_v4  ;;  %v3469_v54 = vmax.f32 %v3437_v43, 0.0 }
 0x3a6   : > { %v3361_v51 = vadd.f32 %v3227_v10, %v7791_v33  ;;  %v3230_v32 = vadd.f32 %v7882_v44, %v5128_v24  ;;  %v3470_v56 = vmax.f32 %v3438_v61, 0.0 }
 0x3a8   : > { %v3400_v2 = vmul.f32 %v7830_v58, %v3361_v51  ;;  %v3362_v5 = vadd.f32 %v3230_v32, %v7798_v49  ;;  %v5129_v21 = vpop.f32.mrb[152].mxu1  ;;  %v3494_v47 = vpack.c.bf16 %v3470_v56, %v3469_v54 }
 0x3a9   : > { %v5130_v42 = vpop.f32.mrb[153].mxu1 }
 0x3aa   : > { %v3401_v12 = vmul.f32 %v7830_v58, %v3362_v5  ;;  %v5131_v25 = vadd.f32 %v5130_v42, %v5129_v21  ;;  %v5132_v1 = vpop.f32.mrb[154].mxu1  ;;  %5434 = vmatmul.mubr.bf16.gmra.mrb[156].mxu0 %v3494_v47  ;;  %v3439_v9 = vadd.f32 %v7841_v52, %v3400_v2 }
 0x3ab   : > { %v5133_v50 = vpop.f32.mrb[155].mxu1 }
 0x3ac   : > { %v3235_v33 = vadd.f32 %v5131_v25, %v7894_v0  ;;  %v5134_v44 = vadd.f32 %v5133_v50, %v5132_v1  ;;  %v3440_v26 = vadd.f32 %v7841_v52, %v3401_v12  ;;  %v3471_v15 = vmax.f32 %v3439_v9, 0.0 }
 0x3ae   : > { %v3363_v36 = vadd.f32 %v3235_v33, %v7787_v14  ;;  %v3238_v49 = vadd.f32 %v5134_v44, %v7900_v59  ;;  %v3472_v30 = vmax.f32 %v3440_v26, 0.0 }
 0x3b0   : > { %v3402_v45 = vmul.f32 %v7830_v58, %v3363_v36  ;;  %v3364_v60 = vadd.f32 %v3238_v49, %v7795_v35  ;;  %v5135_v23 = vpop.f32.mrb[156].mxu1  ;;  %v3495_v17 = vpack.c.bf16 %v3472_v30, %v3471_v15 }
 0x3b1   : > { %v5136_v62 = vpop.f32.mrb[157].mxu1 }
 0x3b2   : > { %v3403_v41 = vmul.f32 %v7830_v58, %v3364_v60  ;;  %v5137_v13 = vadd.f32 %v5136_v62, %v5135_v23  ;;  %v5138_v0 = vpop.f32.mrb[158].mxu1  ;;  %5437 = vmatprep.mubr.bf16.mxu0 %v3495_v17  ;;  %v3441_v27 = vadd.f32 %v7841_v52, %v3402_v45 }
 0x3b3   : > { %v5139_v4 = vpop.f32.mrb[159].mxu1 }
 0x3b4   : > { %v3243_v14 = vadd.f32 %v7891_v20, %v5137_v13  ;;  %v5140_v59 = vadd.f32 %v5139_v4, %v5138_v0  ;;  %v3442_v40 = vadd.f32 %v7841_v52, %v3403_v41  ;;  %v3473_v43 = vmax.f32 %v3441_v27, 0.0 }
 0x3b6   : > { %v3365_v55 = vadd.f32 %v3243_v14, %v7805_v53  ;;  %v3246_v35 = vadd.f32 %v7897_v31, %v5140_v59  ;;  %v3474_v19 = vmax.f32 %v3442_v40, 0.0 }
 0x3b8   : > { %v3404_v10 = vmul.f32 %v7830_v58, %v3365_v55  ;;  %v3366_v24 = vadd.f32 %v3246_v35, %v7812_v34  ;;  %v5141_v61 = vpop.f32.mrb[160].mxu1  ;;  %v3496_v51 = vpack.c.bf16 %v3474_v19, %v3473_v43 }
 0x3b9   : > { %v5142_v32 = vpop.f32.mrb[161].mxu1 }
 0x3ba   : > { %v3405_v54 = vmul.f32 %v7830_v58, %v3366_v24  ;;  %v5143_v56 = vadd.f32 %v5142_v32, %v5141_v61  ;;  %v5144_v20 = vpop.f32.mrb[162].mxu1  ;;  %5438 = vmatmul.mubr.bf16.gmra.mrb[160].mxu0 %v3496_v51  ;;  %v3443_v2 = vadd.f32 %v7841_v52, %v3404_v10 }
 0x3bb   : > { %v5145_v5 = vpop.f32.mrb[163].mxu1 }
 0x3bc   : > { %v3251_v53 = vadd.f32 %v5143_v56, %v7910_v38  ;;  %v5146_v31 = vadd.f32 %v5145_v5, %v5144_v20  ;;  %v3444_v21 = vadd.f32 %v7841_v52, %v3405_v54  ;;  %v3475_v42 = vmax.f32 %v3443_v2, 0.0 }
 0x3be   : > { %v3367_v47 = vadd.f32 %v3251_v53, %v7802_v48  ;;  %v3254_v34 = vadd.f32 %v5146_v31, %v7916_v39  ;;  %v3476_v12 = vmax.f32 %v3444_v21, 0.0 }
 0x3c0   : > { %v3406_v25 = vmul.f32 %v7830_v58, %v3367_v47  ;;  %v3368_v1 = vadd.f32 %v3254_v34, %v7809_v16  ;;  %v5147_v9 = vpop.f32.mrb[164].mxu1  ;;  %v3497_v50 = vpack.c.bf16 %v3476_v12, %v3475_v42 }
 0x3c1   : > { %v5148_v33 = vpop.f32.mrb[165].mxu1 }
 0x3c2   : > { %v3407_v44 = vmul.f32 %v7830_v58, %v3368_v1  ;;  %v5149_v26 = vadd.f32 %v5148_v33, %v5147_v9  ;;  %v5150_v38 = vpop.f32.mrb[166].mxu1  ;;  %5441 = vmatprep.mubr.bf16.mxu0 %v3497_v50  ;;  %v3445_v36 = vadd.f32 %v7841_v52, %v3406_v25  ;;  %v5671_v1 = vld [vmem:[%s6153_s9 + $0x8] sm:$0xff]   ;;  %v5672_v33 = vld [vmem:[%s6153_s9] sm:$0xff]  }
 0x3c3   : > { %v5151_v49 = vpop.f32.mrb[167].mxu1  ;;  %v3808_v9 = vunpack.c.l.bf16 %v5671_v1 }
 0x3c4   : > { %v3259_v48 = vadd.f32 %v7906_v22, %v5149_v26  ;;  %v5152_v39 = vadd.f32 %v5151_v49, %v5150_v38  ;;  %v3446_v15 = vadd.f32 %v7841_v52, %v3407_v44  ;;  %v3477_v45 = vmax.f32 %v3445_v36, 0.0 }
 0x3c5   : > { %v3806_v44 = vunpack.c.l.bf16 %v5672_v33  ;;  %v3809_v38 = vunpack.c.h.bf16 %v5671_v1 }
 0x3c6   : > { %v3369_v30 = vadd.f32 %v3259_v48, %v7818_v37  ;;  %v3262_v16 = vadd.f32 %v7913_v29, %v5152_v39  ;;  %v3478_v60 = vmax.f32 %v3446_v15, 0.0  ;;  %v3807_v39 = vunpack.c.h.bf16 %v5672_v33 }
 0x3c8   : > { %v3408_v23 = vmul.f32 %v7830_v58, %v3369_v30  ;;  %v3370_v17 = vadd.f32 %v3262_v16, %v7825_v18  ;;  %v5153_v62 = vpop.f32.mrb[168].mxu1  ;;  %v3498_v41 = vpack.c.bf16 %v3478_v60, %v3477_v45 }
 0x3c9   : > { %v5154_v13 = vpop.f32.mrb[169].mxu1 }
 0x3ca   : > { %v3409_v0 = vmul.f32 %v7830_v58, %v3370_v17  ;;  %v5155_v27 = vadd.f32 %v5154_v13, %v5153_v62  ;;  %v5156_v22 = vpop.f32.mrb[170].mxu1  ;;  %5442 = vmatmul.mubr.bf16.gmra.mrb[164].mxu0 %v3498_v41  ;;  %v3447_v4 = vadd.f32 %v7841_v52, %v3408_v23 }
 0x3cb   : > { %v5157_v14 = vpop.f32.mrb[171].mxu1 }
 0x3cc   : > { %v3267_v37 = vadd.f32 %v5155_v27, %v7926_v11  ;;  %v5158_v29 = vadd.f32 %v5157_v14, %v5156_v22  ;;  %v3448_v59 = vadd.f32 %v7841_v52, %v3409_v0  ;;  %v3479_v55 = vmax.f32 %v3447_v4, 0.0 }
 0x3ce   : > { %v3371_v40 = vadd.f32 %v3267_v37, %v7815_v3  ;;  %v3270_v18 = vadd.f32 %v5158_v29, %v7932_v46  ;;  %v3480_v35 = vmax.f32 %v3448_v59, 0.0  ;;  %v5673_v37 = vld [vmem:[%s6153_s9 + $0x18] sm:$0xff]  }
 0x3cf   : > { %v3812_v29 = vunpack.c.l.bf16 %v5673_v37 }
 0x3d0   : > { %v3410_v43 = vmul.f32 %v7830_v58, %v3371_v40  ;;  %v3372_v19 = vadd.f32 %v3270_v18, %v7822_v57  ;;  %v5159_v10 = vpop.f32.mrb[172].mxu1  ;;  %v3499_v24 = vpack.c.bf16 %v3480_v35, %v3479_v55  ;;  %v5674_v18 = vld [vmem:[%s6153_s9 + $0x10] sm:$0xff]  }
 0x3d1   : > { %v5160_v61 = vpop.f32.mrb[173].mxu1  ;;  %v3810_v55 = vunpack.c.l.bf16 %v5674_v18 }
 0x3d2   : > { %v3411_v51 = vmul.f32 %v7830_v58, %v3372_v19  ;;  %v5161_v32 = vadd.f32 %v5160_v61, %v5159_v10  ;;  %v5162_v11 = vpop.f32.mrb[174].mxu1  ;;  %5445 = vmatprep.mubr.bf16.mxu0 %v3499_v24  ;;  %v3449_v54 = vadd.f32 %v7841_v52, %v3410_v43  ;;  %v3813_v19 = vunpack.c.h.bf16 %v5673_v37 }
 0x3d3   : > { %v5163_v56 = vpop.f32.mrb[175].mxu1 }
 0x3d4   : > { %v3275_v3 = vadd.f32 %v7922_v28, %v5161_v32  ;;  %v5164_v46 = vadd.f32 %v5163_v56, %v5162_v11  ;;  %v3450_v20 = vadd.f32 %v7841_v52, %v3411_v51  ;;  %v3481_v5 = vmax.f32 %v3449_v54, 0.0 }
 0x3d5   : > { %v3811_v51 = vunpack.c.h.bf16 %v5674_v18 }
 0x3d6   : > { %v3373_v2 = vadd.f32 %v3275_v3, %v7836_v8  ;;  %v3278_v57 = vadd.f32 %v7929_v63, %v5164_v46  ;;  %v3482_v53 = vmax.f32 %v3450_v20, 0.0  ;;  %v8023_v63 = vld [vmem:[%s8189_s8] ss:$0 sm:$0xff] }
 0x3d8   : > { %v3412_v31 = vmul.f32 %v7830_v58, %v3373_v2  ;;  %v3374_v21 = vadd.f32 %v3278_v57, %v7848_v7  ;;  %v3500_v47 = vpack.c.bf16 %v3482_v53, %v3481_v5 }
 0x3da   : > { %v3413_v34 = vmul.f32 %v7830_v58, %v3374_v21  ;;  %5446 = vmatmul.mubr.bf16.gmra.mrb[168].mxu0 %v3500_v47  ;;  %v3451_v28 = vadd.f32 %v7841_v52, %v3412_v31  ;;  %v8028_v58 = vld [vmem:[%s8663_s19] ss:$0 sm:$0xff] }
 0x3dc   : > { %v3452_v42 = vadd.f32 %v7841_v52, %v3413_v34  ;;  %v3483_v12 = vmax.f32 %v3451_v28, 0.0  ;;  %v5675_v28 = vld [vmem:[%s6153_s9 + $0x28] sm:$0xff]  }
 0x3de   : > { %v3484_v8 = vmax.f32 %v3452_v42, 0.0  ;;  %v3816_v42 = vunpack.c.l.bf16 %v5675_v28 }
 0x3e0   : > { %v3501_v25 = vpack.c.bf16 %v3484_v8, %v3483_v12 }
 0x3e2   : > { %5449 = vmatprep.mubr.bf16.mxu0 %v3501_v25  ;;  %v5676_v25 = vld [vmem:[%s6153_s9 + $0x20] sm:$0xff]  }
 0x3e3   : > { %5450 = vmatmul.mubr.bf16.gmra.mrb[172].mxu0 %v7857_v6 }
 0x44d   : > { %v5423_v7 = vpop.f32.mrb[144].mxu0 }
 0x44e   : > { %v3737_v52 = vmul.f32 %v5423_v7, %v8023_v63  ;;  %v3601_v50 = vpop.f32.mrb[145].mxu0  ;;  %v3814_v7 = vunpack.c.l.bf16 %v5676_v25 }
 0x44f   : > { %v3735_v6 = vmul.f32 %v8023_v63, %v3601_v50  ;;  %v5424_v26 = vpop.f32.mrb[146].mxu0 }
 0x450   : > { %v3776_v36 = vadd.f32 %v8028_v58, %v3737_v52  ;;  %v3738_v49 = vmul.f32 %v5424_v26, %v8023_v63  ;;  %v3604_v48 = vpop.f32.mrb[147].mxu0  ;;  %v3817_v52 = vunpack.c.h.bf16 %v5675_v28 }
 0x451   : > { %v3774_v15 = vadd.f32 %v8028_v58, %v3735_v6  ;;  %v3736_v30 = vmul.f32 %v8023_v63, %v3604_v48  ;;  %v3815_v6 = vunpack.c.h.bf16 %v5676_v25 }
 0x452   : > { %v3840_v16 = vadd.f32 %v3808_v9, %v3776_v36  ;;  %v3777_v45 = vadd.f32 %v8028_v58, %v3738_v49 }
 0x453   : > { %v3838_v60 = vadd.f32 %v3806_v44, %v3774_v15  ;;  %v3775_v23 = vadd.f32 %v8028_v58, %v3736_v30 }
 0x454   : > { %v3841_v17 = vadd.f32 %v3809_v38, %v3777_v45  ;;  %v3872_v41 = vmax.f32 %v3840_v16, 0.0 }
 0x455   : > { %v3839_v62 = vadd.f32 %v3807_v39, %v3775_v23  ;;  %v3870_v0 = vmax.f32 %v3838_v60, 0.0 }
 0x456   : > { %v3873_v13 = vmax.f32 %v3841_v17, 0.0 }
 0x457   : > { %v3871_v27 = vmax.f32 %v3839_v62, 0.0 }
 0x458   : > { %v4670_v22 = vpack.c.bf16 %v3873_v13, %v3872_v41  ;;  %v5677_v13 = vld [vmem:[%s6153_s9 + $0x38] sm:$0xff]  }
 0x459   : > { %v4665_v4 = vpack.c.bf16 %v3871_v27, %v3870_v0  ;;  %v3820_v0 = vunpack.c.l.bf16 %v5677_v13 }
 0x45a   : > { %4742 = vst [vmem:[%s8042_s21 + $0x8] sm:$0xff] %v4670_v22  }
 0x45b   : > { %4666 = vst [vmem:[%s8042_s21] sm:$0xff] %v4665_v4   ;;  %v5678_v4 = vld [vmem:[%s6153_s9 + $0x30] sm:$0xff]  }
 0x45d   : > { %v5427_v14 = vpop.f32.mrb[148].mxu0 }
 0x45e   : > { %v3741_v59 = vmul.f32 %v5427_v14, %v8023_v63  ;;  %v3617_v40 = vpop.f32.mrb[149].mxu0  ;;  %v3818_v14 = vunpack.c.l.bf16 %v5678_v4 }
 0x45f   : > { %v3739_v35 = vmul.f32 %v8023_v63, %v3617_v40  ;;  %v5428_v43 = vpop.f32.mrb[150].mxu0 }
 0x460   : > { %v3780_v10 = vadd.f32 %v8028_v58, %v3741_v59  ;;  %v3742_v24 = vmul.f32 %v5428_v43, %v8023_v63  ;;  %v3620_v61 = vpop.f32.mrb[151].mxu0  ;;  %v3821_v59 = vunpack.c.h.bf16 %v5677_v13 }
 0x461   : > { %v3778_v32 = vadd.f32 %v8028_v58, %v3739_v35  ;;  %v3740_v11 = vmul.f32 %v8023_v63, %v3620_v61  ;;  %v3819_v35 = vunpack.c.h.bf16 %v5678_v4 }
 0x462   : > { %v3844_v54 = vadd.f32 %v3812_v29, %v3780_v10  ;;  %v3781_v56 = vadd.f32 %v8028_v58, %v3742_v24 }
 0x463   : > { %v3842_v3 = vadd.f32 %v3810_v55, %v3778_v32  ;;  %v3779_v46 = vadd.f32 %v8028_v58, %v3740_v11 }
 0x464   : > { %v3845_v20 = vadd.f32 %v3813_v19, %v3781_v56  ;;  %v3876_v57 = vmax.f32 %v3844_v54, 0.0 }
 0x465   : > { %v3843_v2 = vadd.f32 %v3811_v51, %v3779_v46  ;;  %v3874_v53 = vmax.f32 %v3842_v3, 0.0 }
 0x466   : > { %v3877_v5 = vmax.f32 %v3845_v20, 0.0 }
 0x467   : > { %v3875_v31 = vmax.f32 %v3843_v2, 0.0 }
 0x468   : > { %v4680_v21 = vpack.c.bf16 %v3877_v5, %v3876_v57  ;;  %v5679_v5 = vld [vmem:[%s6153_s9 + $0x48] sm:$0xff]  }
 0x469   : > { %v4675_v47 = vpack.c.bf16 %v3875_v31, %v3874_v53  ;;  %v3824_v53 = vunpack.c.l.bf16 %v5679_v5 }
 0x46a   : > { %4744 = vst [vmem:[%s8042_s21 + $0x18] sm:$0xff] %v4680_v21  }
 0x46b   : > { %4743 = vst [vmem:[%s8042_s21 + $0x10] sm:$0xff] %v4675_v47   ;;  %v5680_v47 = vld [vmem:[%s6153_s9 + $0x40] sm:$0xff]  }
 0x46d   : > { %v5431_v34 = vpop.f32.mrb[152].mxu0 }
 0x46e   : > { %v3745_v12 = vmul.f32 %v5431_v34, %v8023_v63  ;;  %v3633_v8 = vpop.f32.mrb[153].mxu0  ;;  %v3822_v34 = vunpack.c.l.bf16 %v5680_v47 }
 0x46f   : > { %v3743_v1 = vmul.f32 %v8023_v63, %v3633_v8  ;;  %v5432_v9 = vpop.f32.mrb[154].mxu0 }
 0x470   : > { %v3784_v50 = vadd.f32 %v8028_v58, %v3745_v12  ;;  %v3746_v33 = vmul.f32 %v5432_v9, %v8023_v63  ;;  %v3636_v44 = vpop.f32.mrb[155].mxu0  ;;  %v3825_v12 = vunpack.c.h.bf16 %v5679_v5 }
 0x471   : > { %v3782_v26 = vadd.f32 %v8028_v58, %v3743_v1  ;;  %v3744_v38 = vmul.f32 %v8023_v63, %v3636_v44  ;;  %v3823_v1 = vunpack.c.h.bf16 %v5680_v47 }
 0x472   : > { %v3848_v36 = vadd.f32 %v3816_v42, %v3784_v50  ;;  %v3785_v49 = vadd.f32 %v8028_v58, %v3746_v33 }
 0x473   : > { %v3846_v48 = vadd.f32 %v3814_v7, %v3782_v26  ;;  %v3783_v39 = vadd.f32 %v8028_v58, %v3744_v38 }
 0x474   : > { %v3849_v15 = vadd.f32 %v3817_v52, %v3785_v49  ;;  %v3880_v16 = vmax.f32 %v3848_v36, 0.0 }
 0x475   : > { %v3847_v30 = vadd.f32 %v3815_v6, %v3783_v39  ;;  %v3878_v60 = vmax.f32 %v3846_v48, 0.0 }
 0x476   : > { %v3881_v45 = vmax.f32 %v3849_v15, 0.0 }
 0x477   : > { %v3879_v23 = vmax.f32 %v3847_v30, 0.0 }
 0x478   : > { %v4690_v17 = vpack.c.bf16 %v3881_v45, %v3880_v16  ;;  %v5681_v45 = vld [vmem:[%s6153_s9 + $0x58] sm:$0xff]  }
 0x479   : > { %v4685_v62 = vpack.c.bf16 %v3879_v23, %v3878_v60  ;;  %v3828_v60 = vunpack.c.l.bf16 %v5681_v45 }
 0x47a   : > { %4746 = vst [vmem:[%s8042_s21 + $0x28] sm:$0xff] %v4690_v17  }
 0x47b   : > { %4745 = vst [vmem:[%s8042_s21 + $0x20] sm:$0xff] %v4685_v62   ;;  %v5682_v62 = vld [vmem:[%s6153_s9 + $0x50] sm:$0xff]  }
 0x47d   : > { %v5435_v41 = vpop.f32.mrb[156].mxu0 }
 0x47e   : > { %v3749_v27 = vmul.f32 %v5435_v41, %v8023_v63  ;;  %v3649_v22 = vpop.f32.mrb[157].mxu0  ;;  %v3826_v41 = vunpack.c.l.bf16 %v5682_v62 }
 0x47f   : > { %v3747_v37 = vmul.f32 %v8023_v63, %v3649_v22  ;;  %v5436_v29 = vpop.f32.mrb[158].mxu0 }
 0x480   : > { %v3788_v40 = vadd.f32 %v8028_v58, %v3749_v27  ;;  %v3750_v18 = vmul.f32 %v5436_v29, %v8023_v63  ;;  %v3652_v55 = vpop.f32.mrb[159].mxu0  ;;  %v3829_v27 = vunpack.c.h.bf16 %v5681_v45 }
 0x481   : > { %v3786_v43 = vadd.f32 %v8028_v58, %v3747_v37  ;;  %v3748_v19 = vmul.f32 %v8023_v63, %v3652_v55  ;;  %v3827_v37 = vunpack.c.h.bf16 %v5682_v62 }
 0x482   : > { %v3852_v10 = vadd.f32 %v3820_v0, %v3788_v40  ;;  %v3789_v24 = vadd.f32 %v8028_v58, %v3750_v18 }
 0x483   : > { %v3850_v61 = vadd.f32 %v3818_v14, %v3786_v43  ;;  %v3787_v51 = vadd.f32 %v8028_v58, %v3748_v19 }
 0x484   : > { %v3853_v32 = vadd.f32 %v3821_v59, %v3789_v24  ;;  %v3884_v54 = vmax.f32 %v3852_v10, 0.0 }
 0x485   : > { %v3851_v11 = vadd.f32 %v3819_v35, %v3787_v51  ;;  %v3882_v3 = vmax.f32 %v3850_v61, 0.0 }
 0x486   : > { %v3885_v56 = vmax.f32 %v3853_v32, 0.0 }
 0x487   : > { %v3883_v46 = vmax.f32 %v3851_v11, 0.0 }
 0x488   : > { %v4700_v20 = vpack.c.bf16 %v3885_v56, %v3884_v54  ;;  %v5683_v56 = vld [vmem:[%s6153_s9 + $0x68] sm:$0xff]  }
 0x489   : > { %v4695_v2 = vpack.c.bf16 %v3883_v46, %v3882_v3  ;;  %v3832_v3 = vunpack.c.l.bf16 %v5683_v56 }
 0x48a   : > { %4748 = vst [vmem:[%s8042_s21 + $0x38] sm:$0xff] %v4700_v20  }
 0x48b   : > { %4747 = vst [vmem:[%s8042_s21 + $0x30] sm:$0xff] %v4695_v2   ;;  %v5684_v2 = vld [vmem:[%s6153_s9 + $0x60] sm:$0xff]  }
 0x48d   : > { %v5439_v57 = vpop.f32.mrb[160].mxu0 }
 0x48e   : > { %v3753_v31 = vmul.f32 %v5439_v57, %v8023_v63  ;;  %v3665_v21 = vpop.f32.mrb[161].mxu0  ;;  %v3830_v57 = vunpack.c.l.bf16 %v5684_v2 }
 0x48f   : > { %v3751_v28 = vmul.f32 %v8023_v63, %v3665_v21  ;;  %v5440_v42 = vpop.f32.mrb[162].mxu0 }
 0x490   : > { %v3792_v8 = vadd.f32 %v8028_v58, %v3753_v31  ;;  %v3754_v25 = vmul.f32 %v5440_v42, %v8023_v63  ;;  %v3668_v7 = vpop.f32.mrb[163].mxu0  ;;  %v3833_v31 = vunpack.c.h.bf16 %v5683_v56 }
 0x491   : > { %v3790_v9 = vadd.f32 %v8028_v58, %v3751_v28  ;;  %v3752_v52 = vmul.f32 %v8023_v63, %v3668_v7  ;;  %v3831_v28 = vunpack.c.h.bf16 %v5684_v2 }
 0x492   : > { %v3856_v50 = vadd.f32 %v3824_v53, %v3792_v8  ;;  %v3793_v33 = vadd.f32 %v8028_v58, %v3754_v25 }
 0x493   : > { %v3854_v44 = vadd.f32 %v3822_v34, %v3790_v9  ;;  %v3791_v6 = vadd.f32 %v8028_v58, %v3752_v52 }
 0x494   : > { %v3857_v26 = vadd.f32 %v3825_v12, %v3793_v33  ;;  %v3888_v36 = vmax.f32 %v3856_v50, 0.0 }
 0x495   : > { %v3855_v38 = vadd.f32 %v3823_v1, %v3791_v6  ;;  %v3886_v48 = vmax.f32 %v3854_v44, 0.0  ;;  %v5685_v6 = vld [vmem:[%s6153_s9 + $0x78] sm:$0xff]  }
 0x496   : > { %v3889_v49 = vmax.f32 %v3857_v26, 0.0  ;;  %v3836_v26 = vunpack.c.l.bf16 %v5685_v6 }
 0x497   : > { %v3887_v39 = vmax.f32 %v3855_v38, 0.0 }
 0x498   : > { %v4710_v15 = vpack.c.bf16 %v3889_v49, %v3888_v36 }
 0x499   : > { %v4705_v30 = vpack.c.bf16 %v3887_v39, %v3886_v48  ;;  %v5686_v39 = vld [vmem:[%s6153_s9 + $0x70] sm:$0xff]   ;;  %s4076_s9 = sshll.u32 %s8042_s21, 4  ;;  %s8135_s9 = int_to_ptr.vmem [resolvable:$true] %s4076_s9 }
 0x49a   : > { %4750 = vst [vmem:[%s8042_s21 + $0x48] sm:$0xff] %v4710_v15   ;;  %v3834_v15 = vunpack.c.l.bf16 %v5686_v39  ;;  %s5801_s24 = scalar_lea.vmem %s8135_s9, 2048  ;;  %p5808_p12 = scmp.lt.s32.totalorder %s8135_s9, %s5806_s18 }
 0x49b   : > { %4749 = vst [vmem:[%s8042_s21 + $0x40] sm:$0xff] %v4705_v30   ;;  %p5802_p10 = scmp.ne.s32.totalorder %s8135_s9, %s5801_s24  ;;  %p5809_p1 = scmp.lt.s32.totalorder %s5807_s28, %s5801_s24 }
 0x49d   : > { %v5443_v16 = vpop.f32.mrb[164].mxu0  ;;  %p5803_p3 = pnand %p5802_p10, %p6096_p5  ;;  %p5810_p2 = por %p5809_p1, %p5808_p12 }
 0x49e   : > { %v3757_v23 = vmul.f32 %v5443_v16, %v8023_v63  ;;  %v3681_v17 = vpop.f32.mrb[165].mxu0 }
 0x49f   : > { %v3755_v13 = vmul.f32 %v8023_v63, %v3681_v17  ;;  %v5444_v0 = vpop.f32.mrb[166].mxu0  ;;  %p5804_p7 = pneg %p5803_p3 }
 0x4a0   : > { %v3796_v22 = vadd.f32 %v8028_v58, %v3757_v23  ;;  %v3758_v4 = vmul.f32 %v5444_v0, %v8023_v63  ;;  %v3684_v14 = vpop.f32.mrb[167].mxu0 }
 0x4a1   : > { %v3794_v29 = vadd.f32 %v8028_v58, %v3755_v13  ;;  %v3756_v59 = vmul.f32 %v8023_v63, %v3684_v14  ;;  %v3835_v13 = vunpack.c.h.bf16 %v5686_v39  ;;  %p5811_p4 = pnand %p5810_p2, %p5804_p7 }
 0x4a2   : > { %v3860_v40 = vadd.f32 %v3828_v60, %v3796_v22  ;;  %v3797_v18 = vadd.f32 %v8028_v58, %v3758_v4  ;;  %v3837_v60 = vunpack.c.h.bf16 %v5685_v6 }
 0x4a3   : > { %v3858_v55 = vadd.f32 %v3826_v41, %v3794_v29  ;;  %v3795_v35 = vadd.f32 %v8028_v58, %v3756_v59 }
 0x4a4   : > { %v3861_v43 = vadd.f32 %v3829_v27, %v3797_v18  ;;  %v3892_v10 = vmax.f32 %v3860_v40, 0.0 }
 0x4a5   : > { %v3859_v19 = vadd.f32 %v3827_v37, %v3795_v35  ;;  %v3890_v61 = vmax.f32 %v3858_v55, 0.0 }
 0x4a6   : > { %v3893_v24 = vmax.f32 %v3861_v43, 0.0 }
 0x4a7   : > { %v3891_v51 = vmax.f32 %v3859_v19, 0.0 }
 0x4a8   : > { %v4720_v32 = vpack.c.bf16 %v3893_v24, %v3892_v10 }
 0x4a9   : > { %v4715_v11 = vpack.c.bf16 %v3891_v51, %v3890_v61 }
 0x4aa   : > { %4752 = vst [vmem:[%s8042_s21 + $0x58] sm:$0xff] %v4720_v32  }
 0x4ab   : > { %4751 = vst [vmem:[%s8042_s21 + $0x50] sm:$0xff] %v4715_v11  }
 0x4ad   : > { %v5447_v54 = vpop.f32.mrb[168].mxu0 }
 0x4ae   : > { %v3761_v46 = vmul.f32 %v5447_v54, %v8023_v63  ;;  %v3697_v20 = vpop.f32.mrb[169].mxu0 }
 0x4af   : > { %v3759_v5 = vmul.f32 %v8023_v63, %v3697_v20  ;;  %v5448_v53 = vpop.f32.mrb[170].mxu0 }
 0x4b0   : > { %v3800_v21 = vadd.f32 %v8028_v58, %v3761_v46  ;;  %v3762_v47 = vmul.f32 %v5448_v53, %v8023_v63  ;;  %v3700_v34 = vpop.f32.mrb[171].mxu0 }
 0x4b1   : > { %v3798_v42 = vadd.f32 %v8028_v58, %v3759_v5  ;;  %v3760_v12 = vmul.f32 %v8023_v63, %v3700_v34 }
 0x4b2   : > { %v3864_v8 = vadd.f32 %v3832_v3, %v3800_v21  ;;  %v3801_v25 = vadd.f32 %v8028_v58, %v3762_v47 }
 0x4b3   : > { %v3862_v7 = vadd.f32 %v3830_v57, %v3798_v42  ;;  %v3799_v1 = vadd.f32 %v8028_v58, %v3760_v12 }
 0x4b4   : > { %v3865_v9 = vadd.f32 %v3833_v31, %v3801_v25  ;;  %v3896_v50 = vmax.f32 %v3864_v8, 0.0 }
 0x4b5   : > { %v3863_v52 = vadd.f32 %v3831_v28, %v3799_v1  ;;  %v3894_v38 = vmax.f32 %v3862_v7, 0.0 }
 0x4b6   : > { %v3897_v33 = vmax.f32 %v3865_v9, 0.0  ;;  %v5451_v44 = vpop.f32.mrb[172].mxu0 }
 0x4b7   : > { %v3895_v36 = vmax.f32 %v3863_v52, 0.0  ;;  %v3765_v49 = vmul.f32 %v5451_v44, %v8023_v63  ;;  %v3713_v48 = vpop.f32.mrb[173].mxu0 }
 0x4b8   : > { %v4730_v30 = vpack.c.bf16 %v3897_v33, %v3896_v50  ;;  %v3763_v16 = vmul.f32 %v8023_v63, %v3713_v48  ;;  %v5452_v45 = vpop.f32.mrb[174].mxu0 }
 0x4b9   : > { %v4725_v23 = vpack.c.bf16 %v3895_v36, %v3894_v38  ;;  %v3804_v17 = vadd.f32 %v8028_v58, %v3765_v49  ;;  %v3766_v62 = vmul.f32 %v5452_v45, %v8023_v63  ;;  %v3716_v41 = vpop.f32.mrb[175].mxu0 }
 0x4ba   : > { %4754 = vst [vmem:[%s8042_s21 + $0x68] sm:$0xff] %v4730_v30   ;;  %v3802_v0 = vadd.f32 %v8028_v58, %v3763_v16  ;;  %v3764_v27 = vmul.f32 %v8023_v63, %v3716_v41 }
 0x4bb   : > { %4753 = vst [vmem:[%s8042_s21 + $0x60] sm:$0xff] %v4725_v23   ;;  %v3868_v22 = vadd.f32 %v3836_v26, %v3804_v17  ;;  %v3805_v4 = vadd.f32 %v8028_v58, %v3766_v62 }
 0x4bc   : > { %v3866_v14 = vadd.f32 %v3834_v15, %v3802_v0  ;;  %v3803_v37 = vadd.f32 %v8028_v58, %v3764_v27 }
 0x4bd   : > { %v3869_v29 = vadd.f32 %v3837_v60, %v3805_v4  ;;  %v3900_v40 = vmax.f32 %v3868_v22, 0.0 }
 0x4be   : > { %v3867_v59 = vadd.f32 %v3835_v13, %v3803_v37  ;;  %v3898_v55 = vmax.f32 %v3866_v14, 0.0 }
 0x4bf   : > { %v3901_v18 = vmax.f32 %v3869_v29, 0.0 }
 0x4c0   : > { %v3899_v35 = vmax.f32 %v3867_v59, 0.0 }
 0x4c1   : > { %v4740_v63 = vpack.c.bf16 %v3901_v18, %v3900_v40 }
 0x4c2   : > { %v4735_v58 = vpack.c.bf16 %v3899_v35, %v3898_v55 }
 0x4c3   : > { %4756 = vst [vmem:[%s8042_s21 + $0x78] sm:$0xff] %v4740_v63  }
 0x4c4   : > { %4755 = vst [vmem:[%s8042_s21 + $0x70] sm:$0xff] %v4735_v58  }
 0x4c5   : > { %5814 = shalt.err (!%p5811_p4)
}
 0x4c6   : > { %s5815_s27 = scalar_lea.hbm %s8133_s26, 2048  ;;  %s5819_s21 = scalar_lea.hbm %s8664_s29, 4096 }
 0x4c7   : > { %p5816_p9 = scmp.ne.s32.totalorder %s8133_s26, %s5815_s27  ;;  %p5820_p8 = scmp.lt.u32.totalorder %s8133_s26, %s8664_s29 }
 0x4c8   : > { %p5821_p13 = scmp.lt.u32.totalorder %s5819_s21, %s5815_s27  ;;  %p5823_p10 = scmp.lt.u32.totalorder %s5815_s27, %s8133_s26 }
 0x4c9   : > { %p5817_p0 = pnand %p5816_p9, %p6096_p5 }
 0x4ca   : > { %p5822_p6 = por %p5821_p13, %p5820_p8 }
 0x4cb   : > { %p5818_p11 = pneg %p5817_p0 }
 0x4cc   : > { %p5824_p3 = por %p5823_p10, %p5822_p6 }
 0x4ce   : > { %p5825_p7 = pnand %p5824_p3, %p5818_p11 }
 0x4d0   : > { %5828 = shalt.err (!%p5825_p7)
}
 0x4d1   : > { %s5885_s11 = smov 64   ;;  %s5886_s24 = smov 4  }
 0x4d2   : > { %5483 = dma.vmem_to_hbm [thread:$0]  (%p6096_p5), %s8135_s9, 2048, %s8133_s26, %s4063_s17, %s5885_s11, %s5885_s11, %s5886_s24  }
 0x4d3 PF: > { %s8665_s12 = sld [smem:[#allocation15_spill]]  ;;  %s8666_s18 = sld [smem:[#allocation16_spill]] }
 0x4d4   : > { %p8668_p1 = scmp.ge.s32.totalorder %s5875_s16, 2 }
 0x4d9   : > { %s4091_s28 = sand.u32 1, %s8665_s12   ;;  %p8667_p12 = scmp.ne.s32.totalorder %s8666_s18, 0 }
 0x4da   : > { %s4092_s27 = scalar_lea.sflag [#allocation4], %s4091_s28 }
 0x4db   : > { %p5500_p2 = pnand %p8668_p1, %p8667_p12 }
 0x4dd   : > { %5858 = dma.done.wait (!%p5500_p2), %s4092_s27, 2048  }
 0x4de   : > { %5860 = vsyncadd (!%p5500_p2), %s4092_s27, 4294965248  ;;  %s8669_s23 = smov %s6092_s13  ;;  %p25_p4 = scmp.ge.s32.totalorder %s6082_s22, 4  }
 0x4df   : > { %s8670_s13 = smov %s5867_s14  ;;  %s8671_s14 = smov %s5871_s15 }
 0x4e0   : > { %s8672_s15 = smov %s8669_s23  ;;  %s8673_s16 = smov %s6082_s22 }
 0x4e1   :  { %27 = sbr.rel (!%p25_p4) target bundleno = 10 (0xa), region = 119 }
 0x4e8   :  { %4097 = vsyncpa [#allocation3], 1 }
 0x4e9   :  { %4099 = vsyncpa [#allocation3 + $0x1], 1 }
 0x4ea   :  { %4100 = vsyncpa [#allocation6], 1 }
 0x4eb   :  { %4101 = vsyncpa [#allocation9], 1 }
 0x4ec   :  { %4102 = vsyncpa [#allocation4], 1 }
 0x4ed   :  { %4104 = vsyncpa [#allocation4 + $0x1], 1 }

</bundles_post_ra>
